<compile_context>
chip_gen: v6e
topology: v6e:2x2x1
jax: 0.10.0
libtpu: 0.0.40
codegen_flags: <defaults>
</compile_context>

<pallas_src>
import math

import jax
import jax.numpy as jnp
from jax.experimental import pallas as pl
from jax.experimental.pallas import tpu as pltpu

D_MODEL = 512
D_HIDDEN = 4 * D_MODEL          # 2048
DROPOUT_P = 0.1                 # inactive (eval mode)

TILE_M_MAX = 512                # rows per grid step at large M


def _round_up(x, m):
    return (x + m - 1) // m * m


def ffn_kernel(x_ref, w1_ref, b1_ref, w2_ref, b2_ref, o_ref):
    # x:  (tm, 512)  bf16                 w1: (512, 2048) bf16 (VMEM-resident)
    # b1: (1, 2048)  f32                  w2: (2048, 512) bf16 (VMEM-resident)
    # b2: (1, 512)   f32                  o:  (tm, 512)   f32
    # First matmul: bf16 operands, f32 accumulation on the MXU.
    h = jnp.dot(x_ref[...], w1_ref[...], preferred_element_type=jnp.float32)
    # Bias + ReLU in f32 on the VPU (no bf16 VPU on v5e).
    h = jnp.maximum(h + b1_ref[...], 0.0)
    # Second matmul + bias, written straight to the resident output block.
    out = jnp.dot(h.astype(jnp.bfloat16), w2_ref[...],
                  preferred_element_type=jnp.float32) + b2_ref[...]
    # Dropout in eval mode is the identity.
    o_ref[...] = out.astype(o_ref.dtype)


def feed_forward_network(x, w1, b1, w2, b2):
    """x: (batch, seq, d_model) f32 -> (batch, seq, d_model) f32."""
    batch, seq, d_model = x.shape
    assert d_model == D_MODEL
    m = batch * seq
    x2d = x.reshape(m, d_model)

    # Tile choice: whole (8-aligned) slab when small, else 512-row tiles.
    if m <= TILE_M_MAX:
        tile_m = max(8, _round_up(m, 8))
    else:
        tile_m = TILE_M_MAX
    m_pad = _round_up(m, tile_m)
    if m_pad != m:
        x2d = jnp.pad(x2d, ((0, m_pad - m), (0, 0)))

    # bf16 activations + weights: halve HBM traffic, feed the MXU at bf16 rate.
    x2d_bf16 = x2d.astype(jnp.bfloat16)
    w1_bf16 = w1.astype(jnp.bfloat16)
    w2_bf16 = w2.astype(jnp.bfloat16)
    b1_2d = b1.reshape(1, D_HIDDEN).astype(jnp.float32)
    b2_2d = b2.reshape(1, D_MODEL).astype(jnp.float32)

    grid = (m_pad // tile_m,)

    out2d = pl.pallas_call(
        ffn_kernel,
        out_shape=jax.ShapeDtypeStruct((m_pad, D_MODEL), jnp.float32),
        grid_spec=pltpu.PrefetchScalarGridSpec(
            num_scalar_prefetch=0,
            grid=grid,
            in_specs=[
                pl.BlockSpec((tile_m, D_MODEL), lambda i: (i, 0)),     # x tile
                pl.BlockSpec((D_MODEL, D_HIDDEN), lambda i: (0, 0)),   # W1 (resident)
                pl.BlockSpec((1, D_HIDDEN), lambda i: (0, 0)),         # b1
                pl.BlockSpec((D_HIDDEN, D_MODEL), lambda i: (0, 0)),   # W2 (resident)
                pl.BlockSpec((1, D_MODEL), lambda i: (0, 0)),          # b2
            ],
            out_specs=pl.BlockSpec((tile_m, D_MODEL), lambda i: (i, 0)),
        ),
        compiler_params=pltpu.CompilerParams(
            # Single parallel axis -> megacore sharding on v7x (2 TCs).
            dimension_semantics=("parallel",),
            # ~14 MiB actual budget at tile_m=512 (2+2 MiB resident weights,
            # double-buffered x/out tiles, f32 intermediate); 32 MiB leaves
            # headroom on every generation incl. v7x's 64 MiB physical VMEM.
            vmem_limit_bytes=32 << 20,
        ),
    )(x2d_bf16, w1_bf16, b1_2d, w2_bf16, b2_2d)

    return out2d[:m].reshape(batch, seq, d_model).astype(x.dtype)


def init_params(key):
    """Deterministic init mimicking nn.Linear defaults (uniform ±1/sqrt(fan_in))."""
    k1, k2, k3, k4 = jax.random.split(key, 4)
    bound1 = 1.0 / math.sqrt(D_MODEL)
    bound2 = 1.0 / math.sqrt(D_HIDDEN)
    # PyTorch stores weight as (out, in); we keep (in, out) so the kernel
    # computes x @ W directly (same math as x @ W_torch.T).
    w1 = jax.random.uniform(k1, (D_MODEL, D_HIDDEN), jnp.float32, -bound1, bound1)
    b1 = jax.random.uniform(k2, (D_HIDDEN,), jnp.float32, -bound1, bound1)
    w2 = jax.random.uniform(k3, (D_HIDDEN, D_MODEL), jnp.float32, -bound2, bound2)
    b2 = jax.random.uniform(k4, (D_MODEL,), jnp.float32, -bound2, bound2)
    return w1, b1, w2, b2


if __name__ == "__main__":
    key = jax.random.PRNGKey(0)
    k_x, k_p = jax.random.split(key)

    batch, seq = 2, 8
    x = jax.random.normal(k_x, (batch, seq, D_MODEL), jnp.float32)
    w1, b1, w2, b2 = init_params(k_p)

    out = feed_forward_network(x, w1, b1, w2, b2)
    out = jax.block_until_ready(out)

    # Pure-JAX f32 reference; bf16 MXU operands => relaxed tolerance.
    ref = jnp.maximum(x.reshape(-1, D_MODEL) @ w1 + b1, 0.0) @ w2 + b2
    ref = ref.reshape(batch, seq, D_MODEL)
    assert out.shape == (batch, seq, D_MODEL)
    assert jnp.allclose(out, ref, atol=2e-2, rtol=2e-2), float(
        jnp.max(jnp.abs(out - ref)))

    print("KERNEL_OK")
</pallas_src>

<mosaic_0001>
module attributes {stable_mosaic.version = 11 : i64} {
  func.func @ffn_kernel(%arg0: i32, %arg1: memref<16x512xbf16, #tpu.memory_space<vmem>>, %arg2: memref<512x2048xbf16, #tpu.memory_space<vmem>>, %arg3: memref<1x2048xf32, #tpu.memory_space<vmem>>, %arg4: memref<2048x512xbf16, #tpu.memory_space<vmem>>, %arg5: memref<1x512xf32, #tpu.memory_space<vmem>>, %arg6: memref<16x512xf32, #tpu.memory_space<vmem>>) attributes {dimension_semantics = [#tpu.dimension_semantics<parallel>], iteration_bounds = array<i64: 1>, scalar_prefetch = 0 : i64, scratch_operands = 0 : i64, tpu.core_type = #tpu.core_type<tc>, window_params = [{transform_indices = @transform_0, window_bounds = array<i64: 16, 512>}, {pipeline_mode = #tpu.pipeline_mode<synchronous>, transform_indices = @transform_1, window_bounds = array<i64: 512, 2048>}, {pipeline_mode = #tpu.pipeline_mode<synchronous>, transform_indices = @transform_2, window_bounds = array<i64: 1, 2048>}, {pipeline_mode = #tpu.pipeline_mode<synchronous>, transform_indices = @transform_3, window_bounds = array<i64: 2048, 512>}, {pipeline_mode = #tpu.pipeline_mode<synchronous>, transform_indices = @transform_4, window_bounds = array<i64: 1, 512>}, {transform_indices = @transform_5, window_bounds = array<i64: 16, 512>}]} {
    %c0 = arith.constant 0 : index
    %c0_0 = arith.constant 0 : index
    %0 = vector.load %arg1[%c0, %c0_0] : memref<16x512xbf16, #tpu.memory_space<vmem>>, vector<16x512xbf16>
    %c0_1 = arith.constant 0 : index
    %c0_2 = arith.constant 0 : index
    %1 = vector.load %arg2[%c0_1, %c0_2] : memref<512x2048xbf16, #tpu.memory_space<vmem>>, vector<512x2048xbf16>
    %cst = arith.constant dense<0.000000e+00> : vector<16x2048xf32>
    %2 = tpu.matmul %0, %1, %cst {dimension_numbers = #tpu.dot_dimension_numbers<[1], [0], [0], [1], [0, 0, 1, 1], [], []>} : vector<16x512xbf16>, vector<512x2048xbf16>, vector<16x2048xf32> -> vector<16x2048xf32>
    %c0_3 = arith.constant 0 : index
    %c0_4 = arith.constant 0 : index
    %3 = vector.load %arg3[%c0_3, %c0_4] : memref<1x2048xf32, #tpu.memory_space<vmem>>, vector<1x2048xf32>
    %4 = vector.broadcast %3 : vector<1x2048xf32> to vector<16x2048xf32>
    %5 = arith.addf %2, %4 : vector<16x2048xf32>
    %cst_5 = arith.constant 0.000000e+00 : f32
    %6 = vector.broadcast %cst_5 : f32 to vector<16x2048xf32>
    %7 = arith.maximumf %5, %6 : vector<16x2048xf32>
    %8 = arith.truncf %7 : vector<16x2048xf32> to vector<16x2048xbf16>
    %c0_6 = arith.constant 0 : index
    %c0_7 = arith.constant 0 : index
    %9 = vector.load %arg4[%c0_6, %c0_7] : memref<2048x512xbf16, #tpu.memory_space<vmem>>, vector<2048x512xbf16>
    %cst_8 = arith.constant dense<0.000000e+00> : vector<16x512xf32>
    %10 = tpu.matmul %8, %9, %cst_8 {dimension_numbers = #tpu.dot_dimension_numbers<[1], [0], [0], [1], [0, 0, 1, 1], [], []>} : vector<16x2048xbf16>, vector<2048x512xbf16>, vector<16x512xf32> -> vector<16x512xf32>
    %c0_9 = arith.constant 0 : index
    %c0_10 = arith.constant 0 : index
    %11 = vector.load %arg5[%c0_9, %c0_10] : memref<1x512xf32, #tpu.memory_space<vmem>>, vector<1x512xf32>
    %12 = vector.broadcast %11 : vector<1x512xf32> to vector<16x512xf32>
    %13 = arith.addf %10, %12 : vector<16x512xf32>
    %c0_11 = arith.constant 0 : index
    %c0_12 = arith.constant 0 : index
    %14 = vector.load %arg6[%c0_11, %c0_12] : memref<16x512xf32, #tpu.memory_space<vmem>>, vector<16x512xf32>
    tpu.vector_store %arg6[%c0_11, %c0_12], %13 {strides = array<i32>} : memref<16x512xf32, #tpu.memory_space<vmem>>, vector<16x512xf32>,
    return
  }
  func.func @transform_0(%arg0: i32) -> (i32, i32) {
    %c0_i32 = arith.constant 0 : i32
    %c0_i32_0 = arith.constant 0 : i32
    return %arg0, %c0_i32 : i32, i32
  }
  func.func @transform_1(%arg0: i32) -> (i32, i32) {
    %c0_i32 = arith.constant 0 : i32
    %c0_i32_0 = arith.constant 0 : i32
    %c0_i32_1 = arith.constant 0 : i32
    return %c0_i32, %c0_i32_0 : i32, i32
  }
  func.func @transform_2(%arg0: i32) -> (i32, i32) {
    %c0_i32 = arith.constant 0 : i32
    %c0_i32_0 = arith.constant 0 : i32
    %c0_i32_1 = arith.constant 0 : i32
    return %c0_i32, %c0_i32_0 : i32, i32
  }
  func.func @transform_3(%arg0: i32) -> (i32, i32) {
    %c0_i32 = arith.constant 0 : i32
    %c0_i32_0 = arith.constant 0 : i32
    %c0_i32_1 = arith.constant 0 : i32
    return %c0_i32, %c0_i32_0 : i32, i32
  }
  func.func @transform_4(%arg0: i32) -> (i32, i32) {
    %c0_i32 = arith.constant 0 : i32
    %c0_i32_0 = arith.constant 0 : i32
    %c0_i32_1 = arith.constant 0 : i32
    return %c0_i32, %c0_i32_0 : i32, i32
  }
  func.func @transform_5(%arg0: i32) -> (i32, i32) {
    %c0_i32 = arith.constant 0 : i32
    %c0_i32_0 = arith.constant 0 : i32
    return %arg0, %c0_i32 : i32, i32
  }
}

</mosaic_0001>

<bundles_post_ra>
// kernel: tpu_custom_call.1
= control target key start
LH: loop header
LB: loop body
LE: loop exit
PB: predicated region body
PF: predicated region fallthrough
CT: control target
= control target key end

     0   :  { %10 = vsyncpa [#allocation3], 0  ;;  %s10122_s0 = inlined_call_operand.hbm [shape: bf16[16,512], index: 0, kind: input, shape index: {}]   ;;  %s10123_s1 = inlined_call_operand.hbm [shape: bf16[512,2048], index: 1, kind: input, shape index: {}]   ;;  %s10124_s2 = inlined_call_operand.hbm [shape: f32[1,2048], index: 2, kind: input, shape index: {}]   ;;  %s10125_s3 = inlined_call_operand.hbm [shape: bf16[2048,512], index: 3, kind: input, shape index: {}]   ;;  %s10126_s4 = inlined_call_operand.hbm [shape: f32[1,512], index: 4, kind: input, shape index: {}]   ;;  %s10127_s5 = inlined_call_operand.hbm [shape: f32[16,512], index: 5, kind: output, shape index: {}]  }
   0x1   :  { %11 = vsyncpa [#allocation6], 0 }
   0x2   :  { %12 = vsyncpa [#allocation9], 0 }
   0x3   :  { %13 = vsyncpa [#allocation4], 0  ;;  %s9765_s18 = smov [#allocation5]  }
   0x4   :  { %s31_s19 = sshll.u32 %s9765_s18, 4  ;;  %s32_s19 = int_to_ptr.vmem [resolvable:$true] %s31_s19 }
   0x5   :  { %s9645_s20 = scalar_lea.vmem %s32_s19, 65536  ;;  %p9650_p1 = scmp.lt.s32.totalorder %s32_s19, %s32_s19 }
   0x6   :  { %p9646_p0 = scmp.ne.s32.totalorder %s32_s19, %s9645_s20  ;;  %p9651_p2 = scmp.lt.s32.totalorder %s9645_s20, %s9645_s20 }
   0x8   :  { %p9652_p3 = por %p9651_p2, %p9650_p1 }
   0xa   :  { %p9653_p4 = pnand %p9652_p3, %p9646_p0 }
   0xc   :  { %9656 = shalt.err (!%p9653_p4)
}
   0xd   :  { %s9766_s21 = smov 1024   ;;  %s9767_s22 = smov 64  }
   0xe   :  { %37 = dma.hbm_to_vmem [thread:$0]  %s10123_s1, 65536, %s32_s19, [#allocation6], %s9766_s21, %s9766_s21, %s9767_s22  }
   0xf   :  { %s9768_s25 = smov [#allocation8]   ;;  %s9769_s27 = smov [#allocation2]  }
  0x10   :  { %s53_s26 = sshll.u32 %s9768_s25, 4  ;;  %s19_s28 = sshll.u32 %s9769_s27, 4  ;;  %s54_s26 = int_to_ptr.vmem [resolvable:$true] %s53_s26  ;;  %s20_s28 = int_to_ptr.vmem [resolvable:$true] %s19_s28 }
  0x11   :  { %s9665_s29 = scalar_lea.vmem %s54_s26, 65536  ;;  %p9670_p6 = scmp.lt.s32.totalorder %s54_s26, %s54_s26 }
  0x12   :  { %p9666_p5 = scmp.ne.s32.totalorder %s54_s26, %s9665_s29  ;;  %p9671_p7 = scmp.lt.s32.totalorder %s9665_s29, %s9665_s29 }
  0x14   :  { %p9672_p8 = por %p9671_p7, %p9670_p6 }
  0x16   :  { %p9673_p9 = pnand %p9672_p8, %p9666_p5 }
  0x18   :  { %9676 = shalt.err (!%p9673_p9)
}
  0x19   :  { %s9770_s30 = smov 256   ;;  %s9771_s6 = smov 16  }
  0x1a   :  { %59 = dma.hbm_to_vmem [thread:$0]  %s10125_s3, 65536, %s54_s26, [#allocation9], %s9770_s30, %s9770_s30, %s9771_s6  }
  0x1b   :  { %s9685_s1 = scalar_lea.vmem %s20_s28, 512  ;;  %p9690_p11 = scmp.lt.s32.totalorder %s20_s28, %s20_s28 }
  0x1c   :  { %p9686_p10 = scmp.ne.s32.totalorder %s20_s28, %s9685_s1  ;;  %p9691_p12 = scmp.lt.s32.totalorder %s9685_s1, %s9685_s1 }
  0x1e   :  { %p9692_p13 = por %p9691_p12, %p9690_p11 }
  0x20   :  { %p9693_p0 = pnand %p9692_p13, %p9686_p10 }
  0x22   :  { %9696 = shalt.err (!%p9693_p0)
}
  0x23   :  { %25 = dma.hbm_to_vmem [thread:$0]  %s10122_s0, 512, %s20_s28, [#allocation3], %s9770_s30, %s9770_s30, %s9771_s6  }
  0x24   :  { %s9772_s11 = smov [#allocation7]   ;;  %s9773_s13 = smov [#allocation10]  }
  0x25   :  { %s44_s12 = sshll.u32 %s9772_s11, 4  ;;  %s66_s14 = sshll.u32 %s9773_s13, 4  ;;  %s45_s12 = int_to_ptr.vmem [resolvable:$true] %s44_s12  ;;  %s67_s14 = int_to_ptr.vmem [resolvable:$true] %s66_s14 }
  0x26   :  { %s9705_s15 = scalar_lea.vmem %s45_s12, 256  ;;  %p9710_p2 = scmp.lt.s32.totalorder %s45_s12, %s45_s12 }
  0x27   :  { %p9706_p1 = scmp.ne.s32.totalorder %s45_s12, %s9705_s15  ;;  %p9711_p3 = scmp.lt.s32.totalorder %s9705_s15, %s9705_s15 }
  0x29   :  { %p9712_p4 = por %p9711_p3, %p9710_p2 }
  0x2b   :  { %p9713_p5 = pnand %p9712_p4, %p9706_p1 }
  0x2d   :  { %9716 = shalt.err (!%p9713_p5)
}
  0x2e   :  { %47 = dma.hbm_to_vmem [thread:$0]  %s10124_s2, 256, %s45_s12, [#allocation6]  }
  0x2f   :  { %s9725_s17 = scalar_lea.vmem %s67_s14, 64  ;;  %p9730_p7 = scmp.lt.s32.totalorder %s67_s14, %s67_s14 }
  0x30   :  { %p9726_p6 = scmp.ne.s32.totalorder %s67_s14, %s9725_s17  ;;  %p9731_p8 = scmp.lt.s32.totalorder %s9725_s17, %s9725_s17 }
  0x32   :  { %p9732_p9 = por %p9731_p8, %p9730_p7 }
  0x34   :  { %p9733_p10 = pnand %p9732_p9, %p9726_p6 }
  0x36   :  { %9736 = shalt.err (!%p9733_p10)
}
  0x37   :  { %69 = dma.hbm_to_vmem [thread:$0]  %s10126_s4, 64, %s67_s14, [#allocation9]  }
  0x38   :  { %9757 = dma.done.wait [#allocation3], 512  }
  0x39   :  { %9758 = vsyncadd [#allocation3], 4294966784 }
  0x3a   :  { %9759 = dma.done.wait [#allocation6], 65792  }
  0x3b   :  { %9760 = vsyncadd [#allocation6], 4294901504 }
  0x3c   :  { %9761 = dma.done.wait [#allocation9], 65600  }
  0x3d   :  { %9762 = vsyncadd [#allocation9], 4294901696  ;;  %v201_v0 = vld [vmem:[#allocation5 + $0x380] sm:$0xff]  ;;  %v9824_v59 = vld [vmem:[#allocation2 + $0xc] ss:$16 sps:$4 sm:$0xff]   ;;  %s9774_s2 = smov [#allocation11]  }
  0x3e   :  { %v209_v1 = vld [vmem:[#allocation5 + $0x3c0] sm:$0xff]  ;;  %3340 = vmatprep.mubr.bf16.mxu1 %v9824_v59  ;;  %s7796_s4 = sshll.u32 %s9774_s2, 4  ;;  %s7797_s4 = int_to_ptr.vmem [resolvable:$true] %s7796_s4 }
  0x3f   :  { %v457_v2 = vld [vmem:[#allocation5 + $0xb80] sm:$0xff]  ;;  %v7927_v3 = vcombine.high %v201_v0, %v209_v1  ;;  %v7926_v5 = vcombine.low %v201_v0, %v209_v1  ;;  %s9737_s19 = scalar_lea.vmem %s7797_s4, 1024  ;;  %p9742_p12 = scmp.lt.s32.totalorder %s7797_s4, %s7797_s4 }
  0x40   :  { %v465_v4 = vld [vmem:[#allocation5 + $0xbc0] sm:$0xff]  ;;  %p9738_p11 = scmp.ne.s32.totalorder %s7797_s4, %s9737_s19  ;;  %p9743_p13 = scmp.lt.s32.totalorder %s9737_s19, %s9737_s19 }
  0x41   :  { %v185_v6 = vld [vmem:[#allocation5 + $0x300] sm:$0xff]  ;;  %v8183_v8 = vcombine.high %v457_v2, %v465_v4  ;;  %v8182_v9 = vcombine.low %v457_v2, %v465_v4  ;;  %3265 = vmatprep.subr.bf16.mxu0 %v7927_v3 }
  0x42   :  { %v193_v7 = vld [vmem:[#allocation5 + $0x340] sm:$0xff]  ;;  %3266 = vmatpush1.bf16.msra.mxu0 %v7926_v5  ;;  %p9744_p0 = por %p9743_p13, %p9742_p12 }
  0x43   :  { %v7911_v10 = vcombine.high %v185_v6, %v193_v7  ;;  %v441_v11 = vld [vmem:[#allocation5 + $0xb00] sm:$0xff]  ;;  %3308 = vmatprep.subr.bf16.mxu1 %v8183_v8  ;;  %v7910_v18 = vcombine.low %v185_v6, %v193_v7 }
  0x44   :  { %v449_v12 = vld [vmem:[#allocation5 + $0xb40] sm:$0xff]  ;;  %3309 = vmatpush1.bf16.msra.mxu1 %v8182_v9  ;;  %p9745_p1 = pnand %p9744_p0, %p9738_p11 }
  0x45   :  { %v169_v13 = vld [vmem:[#allocation5 + $0x280] sm:$0xff]  ;;  %v8167_v14 = vcombine.high %v441_v11, %v449_v12  ;;  %3267 = vmatprep.subr.bf16.mxu0 %v7911_v10  ;;  %v8166_v19 = vcombine.low %v441_v11, %v449_v12 }
  0x46   :  { %v177_v15 = vld [vmem:[#allocation5 + $0x2c0] sm:$0xff]  ;;  %3268 = vmatpush1.bf16.msra.mxu0 %v7910_v18 }
  0x47   :  { %v425_v16 = vld [vmem:[#allocation5 + $0xa80] sm:$0xff]  ;;  %v7895_v20 = vcombine.high %v169_v13, %v177_v15  ;;  %3310 = vmatprep.subr.bf16.mxu1 %v8167_v14  ;;  %v7894_v26 = vcombine.low %v169_v13, %v177_v15 }
  0x48   :  { %v433_v17 = vld [vmem:[#allocation5 + $0xac0] sm:$0xff]  ;;  %3311 = vmatpush1.bf16.msra.mxu1 %v8166_v19 }
  0x49   :  { %v8151_v21 = vcombine.high %v425_v16, %v433_v17  ;;  %v153_v22 = vld [vmem:[#allocation5 + $0x200] sm:$0xff]  ;;  %3269 = vmatprep.subr.bf16.mxu0 %v7895_v20  ;;  %v8150_v27 = vcombine.low %v425_v16, %v433_v17 }
  0x4a   :  { %v161_v23 = vld [vmem:[#allocation5 + $0x240] sm:$0xff]  ;;  %3270 = vmatpush1.bf16.msra.mxu0 %v7894_v26 }
  0x4b   :  { %v409_v24 = vld [vmem:[#allocation5 + $0xa00] sm:$0xff]  ;;  %v7879_v28 = vcombine.high %v153_v22, %v161_v23  ;;  %3312 = vmatprep.subr.bf16.mxu1 %v8151_v21  ;;  %v7878_v34 = vcombine.low %v153_v22, %v161_v23 }
  0x4c   :  { %v417_v25 = vld [vmem:[#allocation5 + $0xa40] sm:$0xff]  ;;  %3313 = vmatpush1.bf16.msra.mxu1 %v8150_v27 }
  0x4d   :  { %v8135_v29 = vcombine.high %v409_v24, %v417_v25  ;;  %v137_v30 = vld [vmem:[#allocation5 + $0x180] sm:$0xff]  ;;  %3271 = vmatprep.subr.bf16.mxu0 %v7879_v28  ;;  %v8134_v35 = vcombine.low %v409_v24, %v417_v25 }
  0x4e   :  { %v145_v31 = vld [vmem:[#allocation5 + $0x1c0] sm:$0xff]  ;;  %3272 = vmatpush1.bf16.msra.mxu0 %v7878_v34 }
  0x4f   :  { %v393_v32 = vld [vmem:[#allocation5 + $0x980] sm:$0xff]  ;;  %v7863_v36 = vcombine.high %v137_v30, %v145_v31  ;;  %3314 = vmatprep.subr.bf16.mxu1 %v8135_v29  ;;  %v7862_v42 = vcombine.low %v137_v30, %v145_v31 }
  0x50   :  { %v401_v33 = vld [vmem:[#allocation5 + $0x9c0] sm:$0xff]  ;;  %3315 = vmatpush1.bf16.msra.mxu1 %v8134_v35 }
  0x51   :  { %v8119_v37 = vcombine.high %v393_v32, %v401_v33  ;;  %v121_v38 = vld [vmem:[#allocation5 + $0x100] sm:$0xff]  ;;  %3273 = vmatprep.subr.bf16.mxu0 %v7863_v36  ;;  %v8118_v43 = vcombine.low %v393_v32, %v401_v33 }
  0x52   :  { %v129_v39 = vld [vmem:[#allocation5 + $0x140] sm:$0xff]  ;;  %3274 = vmatpush1.bf16.msra.mxu0 %v7862_v42 }
  0x53   :  { %v377_v40 = vld [vmem:[#allocation5 + $0x900] sm:$0xff]  ;;  %v7847_v44 = vcombine.high %v121_v38, %v129_v39  ;;  %3316 = vmatprep.subr.bf16.mxu1 %v8119_v37  ;;  %v7846_v50 = vcombine.low %v121_v38, %v129_v39 }
  0x54   :  { %v385_v41 = vld [vmem:[#allocation5 + $0x940] sm:$0xff]  ;;  %3317 = vmatpush1.bf16.msra.mxu1 %v8118_v43 }
  0x55   :  { %v8103_v45 = vcombine.high %v377_v40, %v385_v41  ;;  %v105_v46 = vld [vmem:[#allocation5 + $0x80] sm:$0xff]  ;;  %3275 = vmatprep.subr.bf16.mxu0 %v7847_v44  ;;  %v8102_v52 = vcombine.low %v377_v40, %v385_v41 }
  0x56   :  { %v113_v47 = vld [vmem:[#allocation5 + $0xc0] sm:$0xff]  ;;  %3276 = vmatpush1.bf16.msra.mxu0 %v7846_v50 }
  0x57   :  { %v361_v48 = vld [vmem:[#allocation5 + $0x880] sm:$0xff]  ;;  %v7831_v53 = vcombine.high %v105_v46, %v113_v47  ;;  %3318 = vmatprep.subr.bf16.mxu1 %v8103_v45  ;;  %v7830_v60 = vcombine.low %v105_v46, %v113_v47 }
  0x58   :  { %v369_v49 = vld [vmem:[#allocation5 + $0x8c0] sm:$0xff]  ;;  %3319 = vmatpush1.bf16.msra.mxu1 %v8102_v52 }
  0x59   :  { %v89_v51 = vld [vmem:[#allocation5] sm:$0xff]  ;;  %v8087_v55 = vcombine.high %v361_v48, %v369_v49  ;;  %3277 = vmatprep.subr.bf16.mxu0 %v7831_v53  ;;  %v8086_v61 = vcombine.low %v361_v48, %v369_v49 }
  0x5a   :  { %v97_v54 = vld [vmem:[#allocation5 + $0x40] sm:$0xff]  ;;  %3278 = vmatpush1.bf16.msra.mxu0 %v7830_v60 }
  0x5b   :  { %v9822_v56 = vld [vmem:[#allocation2 + $0x4] ss:$16 sps:$4 sm:$0xff]   ;;  %v7815_v62 = vcombine.high %v89_v51, %v97_v54  ;;  %3320 = vmatprep.subr.bf16.mxu1 %v8087_v55  ;;  %v7814_v4 = vcombine.low %v89_v51, %v97_v54 }
  0x5c   :  { %v345_v57 = vld [vmem:[#allocation5 + $0x800] sm:$0xff]  ;;  %3297 = vmatprep.mubr.bf16.mxu0 %v9822_v56  ;;  %3321 = vmatpush1.bf16.msra.mxu1 %v8086_v61 }
  0x5d   :  { %v353_v58 = vld [vmem:[#allocation5 + $0x840] sm:$0xff]  ;;  %3279 = vmatprep.subr.bf16.mxu0 %v7815_v62 }
  0x5e   :  { %v8071_v63 = vcombine.high %v345_v57, %v353_v58  ;;  %v329_v0 = vld [vmem:[#allocation5 + $0x780] sm:$0xff]  ;;  %v8070_v5 = vcombine.low %v345_v57, %v353_v58  ;;  %3280 = vmatpush1.bf16.msra.mxu0 %v7814_v4  ;;  %v458_v4 = vld [vmem:[#allocation5 + $0xb88] sm:$0xff] }
  0x5f   :  { %v337_v1 = vld [vmem:[#allocation5 + $0x7c0] sm:$0xff] }
  0x60   :  { %v585_v2 = vld [vmem:[#allocation5 + $0xf80] sm:$0xff]  ;;  %v8055_v6 = vcombine.high %v329_v0, %v337_v1  ;;  %3322 = vmatprep.subr.bf16.mxu1 %v8071_v63  ;;  %v8054_v12 = vcombine.low %v329_v0, %v337_v1 }
  0x61   :  { %v593_v3 = vld [vmem:[#allocation5 + $0xfc0] sm:$0xff]  ;;  %3323 = vmatpush1.bf16.msra.mxu1 %v8070_v5  ;;  %v466_v5 = vld [vmem:[#allocation5 + $0xbc8] sm:$0xff] }
  0x62   :  { %v8311_v7 = vcombine.high %v585_v2, %v593_v3  ;;  %v313_v8 = vld [vmem:[#allocation5 + $0x700] sm:$0xff]  ;;  %3281 = vmatprep.subr.bf16.mxu0 %v8055_v6  ;;  %v8310_v13 = vcombine.low %v585_v2, %v593_v3  ;;  %v202_v2 = vld [vmem:[#allocation5 + $0x388] sm:$0xff] }
  0x63   :  { %v321_v9 = vld [vmem:[#allocation5 + $0x740] sm:$0xff]  ;;  %3282 = vmatpush2.bf16.msra.mxu0 %v8054_v12  ;;  %v210_v3 = vld [vmem:[#allocation5 + $0x3c8] sm:$0xff] }
  0x64   :  { %v569_v10 = vld [vmem:[#allocation5 + $0xf00] sm:$0xff]  ;;  %v8039_v14 = vcombine.high %v313_v8, %v321_v9  ;;  %3324 = vmatprep.subr.bf16.mxu1 %v8311_v7  ;;  %v8038_v20 = vcombine.low %v313_v8, %v321_v9  ;;  %v7929_v8 = vcombine.high %v202_v2, %v210_v3  ;;  %v8185_v9 = vcombine.high %v458_v4, %v466_v5 }
  0x65   :  { %v577_v11 = vld [vmem:[#allocation5 + $0xf40] sm:$0xff]  ;;  %3325 = vmatpush2.bf16.msra.mxu1 %v8310_v13  ;;  %v442_v13 = vld [vmem:[#allocation5 + $0xb08] sm:$0xff] }
  0x66   :  { %v8295_v15 = vcombine.high %v569_v10, %v577_v11  ;;  %v297_v16 = vld [vmem:[#allocation5 + $0x680] sm:$0xff]  ;;  %3283 = vmatprep.subr.bf16.mxu0 %v8039_v14  ;;  %v8294_v21 = vcombine.low %v569_v10, %v577_v11  ;;  %v186_v10 = vld [vmem:[#allocation5 + $0x308] sm:$0xff] }
  0x67   :  { %v305_v17 = vld [vmem:[#allocation5 + $0x6c0] sm:$0xff]  ;;  %3284 = vmatpush2.bf16.msra.mxu0 %v8038_v20  ;;  %v194_v11 = vld [vmem:[#allocation5 + $0x348] sm:$0xff] }
  0x68   :  { %v553_v18 = vld [vmem:[#allocation5 + $0xe80] sm:$0xff]  ;;  %v8023_v22 = vcombine.high %v297_v16, %v305_v17  ;;  %3326 = vmatprep.subr.bf16.mxu1 %v8295_v15  ;;  %v8022_v28 = vcombine.low %v297_v16, %v305_v17  ;;  %v450_v14 = vld [vmem:[#allocation5 + $0xb48] sm:$0xff]  ;;  %v7928_v16 = vcombine.low %v202_v2, %v210_v3  ;;  %v8184_v17 = vcombine.low %v458_v4, %v466_v5 }
  0x69   :  { %v561_v19 = vld [vmem:[#allocation5 + $0xec0] sm:$0xff]  ;;  %3327 = vmatpush2.bf16.msra.mxu1 %v8294_v21  ;;  %v9830_v15 = vld [vmem:[#allocation2 + $0x8] ss:$16 sps:$4 sm:$0xff]  }
  0x6a   :  { %v8279_v23 = vcombine.high %v553_v18, %v561_v19  ;;  %v281_v24 = vld [vmem:[#allocation5 + $0x600] sm:$0xff]  ;;  %3285 = vmatprep.subr.bf16.mxu0 %v8023_v22  ;;  %v8278_v29 = vcombine.low %v553_v18, %v561_v19  ;;  %v7913_v18 = vcombine.high %v186_v10, %v194_v11  ;;  %v8169_v19 = vcombine.high %v442_v13, %v450_v14  ;;  %v170_v20 = vld [vmem:[#allocation5 + $0x288] sm:$0xff] }
  0x6b   :  { %v289_v25 = vld [vmem:[#allocation5 + $0x640] sm:$0xff]  ;;  %3286 = vmatpush2.bf16.msra.mxu0 %v8022_v28  ;;  %v178_v21 = vld [vmem:[#allocation5 + $0x2c8] sm:$0xff] }
  0x6c   :  { %v537_v26 = vld [vmem:[#allocation5 + $0xe00] sm:$0xff]  ;;  %v8007_v30 = vcombine.high %v281_v24, %v289_v25  ;;  %3328 = vmatprep.subr.bf16.mxu1 %v8279_v23  ;;  %v8006_v36 = vcombine.low %v281_v24, %v289_v25  ;;  %v426_v22 = vld [vmem:[#allocation5 + $0xa88] sm:$0xff]  ;;  %v7912_v24 = vcombine.low %v186_v10, %v194_v11  ;;  %v8168_v25 = vcombine.low %v442_v13, %v450_v14 }
  0x6d   :  { %v545_v27 = vld [vmem:[#allocation5 + $0xe40] sm:$0xff]  ;;  %3329 = vmatpush2.bf16.msra.mxu1 %v8278_v29  ;;  %v434_v23 = vld [vmem:[#allocation5 + $0xac8] sm:$0xff] }
  0x6e   :  { %v8263_v31 = vcombine.high %v537_v26, %v545_v27  ;;  %v265_v32 = vld [vmem:[#allocation5 + $0x580] sm:$0xff]  ;;  %3287 = vmatprep.subr.bf16.mxu0 %v8007_v30  ;;  %v8262_v37 = vcombine.low %v537_v26, %v545_v27  ;;  %v7897_v26 = vcombine.high %v170_v20, %v178_v21  ;;  %v154_v27 = vld [vmem:[#allocation5 + $0x208] sm:$0xff]  ;;  %v8153_v30 = vcombine.high %v426_v22, %v434_v23 }
  0x6f   :  { %v273_v33 = vld [vmem:[#allocation5 + $0x5c0] sm:$0xff]  ;;  %3288 = vmatpush2.bf16.msra.mxu0 %v8006_v36  ;;  %v162_v28 = vld [vmem:[#allocation5 + $0x248] sm:$0xff] }
  0x70   :  { %v521_v34 = vld [vmem:[#allocation5 + $0xd80] sm:$0xff]  ;;  %v7991_v38 = vcombine.high %v265_v32, %v273_v33  ;;  %3330 = vmatprep.subr.bf16.mxu1 %v8263_v31  ;;  %v7990_v44 = vcombine.low %v265_v32, %v273_v33  ;;  %v410_v29 = vld [vmem:[#allocation5 + $0xa08] sm:$0xff]  ;;  %v7896_v32 = vcombine.low %v170_v20, %v178_v21  ;;  %v8152_v33 = vcombine.low %v426_v22, %v434_v23 }
  0x71   :  { %v529_v35 = vld [vmem:[#allocation5 + $0xdc0] sm:$0xff]  ;;  %3331 = vmatpush2.bf16.msra.mxu1 %v8262_v37  ;;  %v418_v31 = vld [vmem:[#allocation5 + $0xa48] sm:$0xff] }
  0x72   :  { %v8247_v39 = vcombine.high %v521_v34, %v529_v35  ;;  %v249_v40 = vld [vmem:[#allocation5 + $0x500] sm:$0xff]  ;;  %3289 = vmatprep.subr.bf16.mxu0 %v7991_v38  ;;  %v8246_v45 = vcombine.low %v521_v34, %v529_v35  ;;  %v7881_v34 = vcombine.high %v154_v27, %v162_v28  ;;  %v138_v35 = vld [vmem:[#allocation5 + $0x188] sm:$0xff]  ;;  %v8137_v38 = vcombine.high %v410_v29, %v418_v31 }
  0x73   :  { %v257_v41 = vld [vmem:[#allocation5 + $0x540] sm:$0xff]  ;;  %3290 = vmatpush2.bf16.msra.mxu0 %v7990_v44  ;;  %v146_v36 = vld [vmem:[#allocation5 + $0x1c8] sm:$0xff] }
  0x74   :  { %v505_v42 = vld [vmem:[#allocation5 + $0xd00] sm:$0xff]  ;;  %v7975_v46 = vcombine.high %v249_v40, %v257_v41  ;;  %3332 = vmatprep.subr.bf16.mxu1 %v8247_v39  ;;  %v7974_v52 = vcombine.low %v249_v40, %v257_v41  ;;  %v394_v37 = vld [vmem:[#allocation5 + $0x988] sm:$0xff]  ;;  %v7880_v40 = vcombine.low %v154_v27, %v162_v28  ;;  %v8136_v41 = vcombine.low %v410_v29, %v418_v31 }
  0x75   :  { %v513_v43 = vld [vmem:[#allocation5 + $0xd40] sm:$0xff]  ;;  %3333 = vmatpush2.bf16.msra.mxu1 %v8246_v45  ;;  %v402_v39 = vld [vmem:[#allocation5 + $0x9c8] sm:$0xff] }
  0x76   :  { %v8231_v47 = vcombine.high %v505_v42, %v513_v43  ;;  %v233_v48 = vld [vmem:[#allocation5 + $0x480] sm:$0xff]  ;;  %3291 = vmatprep.subr.bf16.mxu0 %v7975_v46  ;;  %v8230_v53 = vcombine.low %v505_v42, %v513_v43  ;;  %v7865_v42 = vcombine.high %v138_v35, %v146_v36  ;;  %v122_v43 = vld [vmem:[#allocation5 + $0x108] sm:$0xff]  ;;  %v8121_v46 = vcombine.high %v394_v37, %v402_v39 }
  0x77   :  { %v241_v49 = vld [vmem:[#allocation5 + $0x4c0] sm:$0xff]  ;;  %3292 = vmatpush2.bf16.msra.mxu0 %v7974_v52  ;;  %v130_v44 = vld [vmem:[#allocation5 + $0x148] sm:$0xff] }
  0x78   :  { %v489_v50 = vld [vmem:[#allocation5 + $0xc80] sm:$0xff]  ;;  %v7959_v54 = vcombine.high %v233_v48, %v241_v49  ;;  %3334 = vmatprep.subr.bf16.mxu1 %v8231_v47  ;;  %v7958_v62 = vcombine.low %v233_v48, %v241_v49  ;;  %v378_v45 = vld [vmem:[#allocation5 + $0x908] sm:$0xff]  ;;  %v7864_v48 = vcombine.low %v138_v35, %v146_v36  ;;  %v8120_v49 = vcombine.low %v394_v37, %v402_v39 }
  0x79   :  { %v497_v51 = vld [vmem:[#allocation5 + $0xcc0] sm:$0xff]  ;;  %3335 = vmatpush2.bf16.msra.mxu1 %v8230_v53  ;;  %v386_v47 = vld [vmem:[#allocation5 + $0x948] sm:$0xff] }
  0x7a   :  { %v8215_v55 = vcombine.high %v489_v50, %v497_v51  ;;  %v217_v57 = vld [vmem:[#allocation5 + $0x400] sm:$0xff]  ;;  %3293 = vmatprep.subr.bf16.mxu0 %v7959_v54  ;;  %v8214_v63 = vcombine.low %v489_v50, %v497_v51  ;;  %v7849_v50 = vcombine.high %v122_v43, %v130_v44  ;;  %v106_v51 = vld [vmem:[#allocation5 + $0x88] sm:$0xff]  ;;  %v8105_v54 = vcombine.high %v378_v45, %v386_v47 }
  0x7b   :  { %v225_v58 = vld [vmem:[#allocation5 + $0x440] sm:$0xff]  ;;  %3294 = vmatpush2.bf16.msra.mxu0 %v7958_v62  ;;  %v114_v52 = vld [vmem:[#allocation5 + $0xc8] sm:$0xff] }
  0x7c   :  { %v473_v60 = vld [vmem:[#allocation5 + $0xc00] sm:$0xff]  ;;  %v7943_v0 = vcombine.high %v217_v57, %v225_v58  ;;  %3336 = vmatprep.subr.bf16.mxu1 %v8215_v55  ;;  %v7942_v6 = vcombine.low %v217_v57, %v225_v58  ;;  %v362_v53 = vld [vmem:[#allocation5 + $0x888] sm:$0xff]  ;;  %v7848_v57 = vcombine.low %v122_v43, %v130_v44  ;;  %v8104_v58 = vcombine.low %v378_v45, %v386_v47 }
  0x7d   :  { %v481_v61 = vld [vmem:[#allocation5 + $0xc40] sm:$0xff]  ;;  %3337 = vmatpush2.bf16.msra.mxu1 %v8214_v63  ;;  %v370_v55 = vld [vmem:[#allocation5 + $0x8c8] sm:$0xff]  ;;  %v7832_v2 = vcombine.low %v106_v51, %v114_v52 }
  0x7e   :  { %v8199_v1 = vcombine.high %v473_v60, %v481_v61  ;;  %3295 = vmatprep.subr.bf16.mxu0 %v7943_v0  ;;  %v8198_v7 = vcombine.low %v473_v60, %v481_v61  ;;  %v9828_v12 = vld [vmem:[#allocation2] ss:$16 sps:$4 sm:$0xff]   ;;  %v7833_v60 = vcombine.high %v106_v51, %v114_v52  ;;  %v90_v61 = vld [vmem:[#allocation5 + $0x8] sm:$0xff]  ;;  %v8089_v0 = vcombine.high %v362_v53, %v370_v55 }
  0x7f   :  { %3296 = vmatpush2.bf16.msra.mxu0 %v7942_v6  ;;  %v98_v62 = vld [vmem:[#allocation5 + $0x48] sm:$0xff]  ;;  %v8088_v3 = vcombine.low %v362_v53, %v370_v55 }
  0x80   :  { %3338 = vmatprep.subr.bf16.mxu1 %v8199_v1  ;;  %3351 = vmatprep.subr.bf16.mxu0 %v7929_v8  ;;  %v346_v63 = vld [vmem:[#allocation5 + $0x808] sm:$0xff]  ;;  %v7817_v4 = vcombine.high %v90_v61, %v98_v62  ;;  %v7816_v10 = vcombine.low %v90_v61, %v98_v62 }
  0x81   :  { %3339 = vmatpush2.bf16.msra.mxu1 %v8198_v7  ;;  %v354_v1 = vld [vmem:[#allocation5 + $0x848] sm:$0xff] }
  0x82   :  { %3394 = vmatprep.subr.bf16.mxu1 %v8185_v9  ;;  %3298 = vmatmul.mubr.bf16.vlgmr.msra.gmra.mxu0 %v9828_v12  ;;  %v330_v5 = vld [vmem:[#allocation5 + $0x788] sm:$0xff]  ;;  %v8073_v8 = vcombine.high %v346_v63, %v354_v1  ;;  %v8072_v11 = vcombine.low %v346_v63, %v354_v1 }
  0x83   :  { %3352 = vmatpush1.bf16.msra.mxu0 %v7928_v16  ;;  %3383 = vmatprep.mubr.bf16.mxu0 %v9822_v56  ;;  %v338_v6 = vld [vmem:[#allocation5 + $0x7c8] sm:$0xff] }
  0x84   :  { %3341 = vmatmul.mubr.bf16.vlgmr.msra.gmra.mxu1 %v9830_v15  ;;  %3353 = vmatprep.subr.bf16.mxu0 %v7913_v18  ;;  %v586_v7 = vld [vmem:[#allocation5 + $0xf88] sm:$0xff]  ;;  %v8057_v13 = vcombine.high %v330_v5, %v338_v6  ;;  %v8056_v20 = vcombine.low %v330_v5, %v338_v6 }
  0x85   :  { %3395 = vmatpush1.bf16.msra.mxu1 %v8184_v17  ;;  %3426 = vmatprep.mubr.bf16.mxu1 %v9824_v59  ;;  %v594_v9 = vld [vmem:[#allocation5 + $0xfc8] sm:$0xff] }
  0x86   :  { %3396 = vmatprep.subr.bf16.mxu1 %v8169_v19  ;;  %v314_v14 = vld [vmem:[#allocation5 + $0x708] sm:$0xff]  ;;  %v8313_v18 = vcombine.high %v586_v7, %v594_v9  ;;  %v8312_v21 = vcombine.low %v586_v7, %v594_v9  ;;  %v203_v9 = vld [vmem:[#allocation5 + $0x390] sm:$0xff] }
  0x87   :  { %3354 = vmatpush1.bf16.msra.mxu0 %v7912_v24  ;;  %v322_v16 = vld [vmem:[#allocation5 + $0x748] sm:$0xff] }
  0x88   :  { %3355 = vmatprep.subr.bf16.mxu0 %v7897_v26  ;;  %v570_v17 = vld [vmem:[#allocation5 + $0xf08] sm:$0xff]  ;;  %v8041_v22 = vcombine.high %v314_v14, %v322_v16  ;;  %v8040_v28 = vcombine.low %v314_v14, %v322_v16  ;;  %v467_v14 = vld [vmem:[#allocation5 + $0xbd0] sm:$0xff] }
  0x89   :  { %3397 = vmatpush1.bf16.msra.mxu1 %v8168_v25  ;;  %v578_v19 = vld [vmem:[#allocation5 + $0xf48] sm:$0xff] }
  0x8a   :  { %3398 = vmatprep.subr.bf16.mxu1 %v8153_v30  ;;  %v298_v23 = vld [vmem:[#allocation5 + $0x688] sm:$0xff]  ;;  %v8297_v26 = vcombine.high %v570_v17, %v578_v19  ;;  %v8296_v29 = vcombine.low %v570_v17, %v578_v19  ;;  %v187_v19 = vld [vmem:[#allocation5 + $0x310] sm:$0xff] }
  0x8b   :  { %3356 = vmatpush1.bf16.msra.mxu0 %v7896_v32  ;;  %v306_v24 = vld [vmem:[#allocation5 + $0x6c8] sm:$0xff] }
  0x8c   :  { %3357 = vmatprep.subr.bf16.mxu0 %v7881_v34  ;;  %v554_v25 = vld [vmem:[#allocation5 + $0xe88] sm:$0xff]  ;;  %v8025_v30 = vcombine.high %v298_v23, %v306_v24  ;;  %v8024_v36 = vcombine.low %v298_v23, %v306_v24  ;;  %v451_v23 = vld [vmem:[#allocation5 + $0xb50] sm:$0xff] }
  0x8d   :  { %3399 = vmatpush1.bf16.msra.mxu1 %v8152_v33  ;;  %v562_v27 = vld [vmem:[#allocation5 + $0xec8] sm:$0xff] }
  0x8e   :  { %3400 = vmatprep.subr.bf16.mxu1 %v8137_v38  ;;  %v282_v31 = vld [vmem:[#allocation5 + $0x608] sm:$0xff]  ;;  %v8281_v34 = vcombine.high %v554_v25, %v562_v27  ;;  %v8280_v37 = vcombine.low %v554_v25, %v562_v27  ;;  %v171_v27 = vld [vmem:[#allocation5 + $0x290] sm:$0xff] }
  0x8f   :  { %3358 = vmatpush1.bf16.msra.mxu0 %v7880_v40  ;;  %v290_v32 = vld [vmem:[#allocation5 + $0x648] sm:$0xff] }
  0x90   :  { %3359 = vmatprep.subr.bf16.mxu0 %v7865_v42  ;;  %v538_v33 = vld [vmem:[#allocation5 + $0xe08] sm:$0xff]  ;;  %v8009_v38 = vcombine.high %v282_v31, %v290_v32  ;;  %v8008_v44 = vcombine.low %v282_v31, %v290_v32  ;;  %v435_v31 = vld [vmem:[#allocation5 + $0xad0] sm:$0xff] }
  0x91   :  { %3401 = vmatpush1.bf16.msra.mxu1 %v8136_v41  ;;  %v546_v35 = vld [vmem:[#allocation5 + $0xe48] sm:$0xff] }
  0x92   :  { %3402 = vmatprep.subr.bf16.mxu1 %v8121_v46  ;;  %v266_v39 = vld [vmem:[#allocation5 + $0x588] sm:$0xff]  ;;  %v8265_v42 = vcombine.high %v538_v33, %v546_v35  ;;  %v8264_v45 = vcombine.low %v538_v33, %v546_v35  ;;  %v155_v35 = vld [vmem:[#allocation5 + $0x210] sm:$0xff] }
  0x93   :  { %3360 = vmatpush1.bf16.msra.mxu0 %v7864_v48  ;;  %v274_v40 = vld [vmem:[#allocation5 + $0x5c8] sm:$0xff] }
  0x94   :  { %3361 = vmatprep.subr.bf16.mxu0 %v7849_v50  ;;  %v522_v41 = vld [vmem:[#allocation5 + $0xd88] sm:$0xff]  ;;  %v7993_v46 = vcombine.high %v266_v39, %v274_v40  ;;  %v7992_v52 = vcombine.low %v266_v39, %v274_v40  ;;  %v419_v39 = vld [vmem:[#allocation5 + $0xa50] sm:$0xff] }
  0x95   :  { %3403 = vmatpush1.bf16.msra.mxu1 %v8120_v49  ;;  %v530_v43 = vld [vmem:[#allocation5 + $0xdc8] sm:$0xff] }
  0x96   :  { %3404 = vmatprep.subr.bf16.mxu1 %v8105_v54  ;;  %v250_v47 = vld [vmem:[#allocation5 + $0x508] sm:$0xff]  ;;  %v8249_v50 = vcombine.high %v522_v41, %v530_v43  ;;  %v8248_v53 = vcombine.low %v522_v41, %v530_v43  ;;  %v139_v41 = vld [vmem:[#allocation5 + $0x190] sm:$0xff] }
  0x97   :  { %3362 = vmatpush1.bf16.msra.mxu0 %v7848_v57  ;;  %v258_v48 = vld [vmem:[#allocation5 + $0x548] sm:$0xff]  ;;  %v395_v43 = vld [vmem:[#allocation5 + $0x990] sm:$0xff] }
  0x98   :  { %3363 = vmatprep.subr.bf16.mxu0 %v7833_v60  ;;  %v506_v49 = vld [vmem:[#allocation5 + $0xd08] sm:$0xff]  ;;  %v7977_v54 = vcombine.high %v250_v47, %v258_v48  ;;  %v7976_v62 = vcombine.low %v250_v47, %v258_v48  ;;  %v123_v48 = vld [vmem:[#allocation5 + $0x110] sm:$0xff] }
  0x99   :  { %3405 = vmatpush1.bf16.msra.mxu1 %v8104_v58  ;;  %v514_v51 = vld [vmem:[#allocation5 + $0xd48] sm:$0xff] }
  0x9a   :  { %3406 = vmatprep.subr.bf16.mxu1 %v8089_v0  ;;  %v234_v55 = vld [vmem:[#allocation5 + $0x488] sm:$0xff]  ;;  %v8233_v60 = vcombine.high %v506_v49, %v514_v51  ;;  %v8232_v63 = vcombine.low %v506_v49, %v514_v51  ;;  %v379_v49 = vld [vmem:[#allocation5 + $0x910] sm:$0xff] }
  0x9b   :  { %3364 = vmatpush1.bf16.msra.mxu0 %v7832_v2  ;;  %v242_v57 = vld [vmem:[#allocation5 + $0x4c8] sm:$0xff]  ;;  %v387_v51 = vld [vmem:[#allocation5 + $0x950] sm:$0xff] }
  0x9c   :  { %3365 = vmatprep.subr.bf16.mxu0 %v7817_v4  ;;  %v490_v58 = vld [vmem:[#allocation5 + $0xc88] sm:$0xff]  ;;  %v7961_v0 = vcombine.high %v234_v55, %v242_v57  ;;  %v7960_v6 = vcombine.low %v234_v55, %v242_v57  ;;  %v107_v55 = vld [vmem:[#allocation5 + $0x90] sm:$0xff] }
  0x9d   :  { %3407 = vmatpush1.bf16.msra.mxu1 %v8088_v3  ;;  %v498_v61 = vld [vmem:[#allocation5 + $0xcc8] sm:$0xff]  ;;  %v115_v57 = vld [vmem:[#allocation5 + $0xd0] sm:$0xff] }
  0x9e   :  { %3408 = vmatprep.subr.bf16.mxu1 %v8073_v8  ;;  %v218_v1 = vld [vmem:[#allocation5 + $0x408] sm:$0xff]  ;;  %v8217_v4 = vcombine.high %v490_v58, %v498_v61  ;;  %v8216_v7 = vcombine.low %v490_v58, %v498_v61  ;;  %v363_v58 = vld [vmem:[#allocation5 + $0x890] sm:$0xff] }
  0x9f   :  { %3366 = vmatpush1.bf16.msra.mxu0 %v7816_v10  ;;  %v226_v2 = vld [vmem:[#allocation5 + $0x448] sm:$0xff]  ;;  %v211_v10 = vld [vmem:[#allocation5 + $0x3d0] sm:$0xff] }
  0xa0   :  { %3367 = vmatprep.subr.bf16.mxu0 %v8057_v13  ;;  %v474_v3 = vld [vmem:[#allocation5 + $0xc08] sm:$0xff]  ;;  %v7945_v8 = vcombine.high %v218_v1, %v226_v2  ;;  %v7944_v16 = vcombine.low %v218_v1, %v226_v2  ;;  %v7930_v24 = vcombine.low %v203_v9, %v211_v10  ;;  %v371_v61 = vld [vmem:[#allocation5 + $0x8d0] sm:$0xff] }
  0xa1   :  { %3409 = vmatpush1.bf16.msra.mxu1 %v8072_v11  ;;  %v482_v5 = vld [vmem:[#allocation5 + $0xc48] sm:$0xff]  ;;  %v459_v11 = vld [vmem:[#allocation5 + $0xb90] sm:$0xff] }
  0xa2   :  { %3410 = vmatprep.subr.bf16.mxu1 %v8313_v18  ;;  %v8201_v13 = vcombine.high %v474_v3, %v482_v5  ;;  %v8200_v17 = vcombine.low %v474_v3, %v482_v5  ;;  %v7931_v18 = vcombine.high %v203_v9, %v211_v10  ;;  %v8186_v25 = vcombine.low %v459_v11, %v467_v14  ;;  %v91_v1 = vld [vmem:[#allocation5 + $0x10] sm:$0xff] }
  0xa3   :  { %3368 = vmatpush2.bf16.msra.mxu0 %v8056_v20  ;;  %v195_v20 = vld [vmem:[#allocation5 + $0x350] sm:$0xff] }
  0xa4   :  { %3369 = vmatprep.subr.bf16.mxu0 %v8041_v22  ;;  %v8187_v22 = vcombine.high %v459_v11, %v467_v14  ;;  %v7914_v32 = vcombine.low %v187_v19, %v195_v20  ;;  %v99_v2 = vld [vmem:[#allocation5 + $0x50] sm:$0xff] }
  0xa5   :  { %3411 = vmatpush2.bf16.msra.mxu1 %v8312_v21  ;;  %v443_v21 = vld [vmem:[#allocation5 + $0xb10] sm:$0xff] }
  0xa6   :  { %3412 = vmatprep.subr.bf16.mxu1 %v8297_v26  ;;  %v7915_v26 = vcombine.high %v187_v19, %v195_v20  ;;  %v8170_v33 = vcombine.low %v443_v21, %v451_v23  ;;  %v347_v3 = vld [vmem:[#allocation5 + $0x810] sm:$0xff] }
  0xa7   :  { %3370 = vmatpush2.bf16.msra.mxu0 %v8040_v28  ;;  %v179_v28 = vld [vmem:[#allocation5 + $0x2d0] sm:$0xff] }
  0xa8   :  { %3371 = vmatprep.subr.bf16.mxu0 %v8025_v30  ;;  %v427_v30 = vld [vmem:[#allocation5 + $0xa90] sm:$0xff] }
  0xa9   :  { %3413 = vmatpush2.bf16.msra.mxu1 %v8296_v29  ;;  %v8171_v29 = vcombine.high %v443_v21, %v451_v23  ;;  %v355_v5 = vld [vmem:[#allocation5 + $0x850] sm:$0xff] }
  0xaa   :  { %3414 = vmatprep.subr.bf16.mxu1 %v8281_v34  ;;  %v7899_v34 = vcombine.high %v171_v27, %v179_v28  ;;  %v331_v9 = vld [vmem:[#allocation5 + $0x790] sm:$0xff] }
  0xab   :  { %3372 = vmatpush2.bf16.msra.mxu0 %v8024_v36  ;;  %v163_v36 = vld [vmem:[#allocation5 + $0x250] sm:$0xff] }
  0xac   :  { %3373 = vmatprep.subr.bf16.mxu0 %v8009_v38  ;;  %v8155_v38 = vcombine.high %v427_v30, %v435_v31  ;;  %v7883_v40 = vcombine.high %v155_v35, %v163_v36  ;;  %v339_v10 = vld [vmem:[#allocation5 + $0x7d0] sm:$0xff] }
  0xad   :  { %3415 = vmatpush2.bf16.msra.mxu1 %v8280_v37  ;;  %v411_v37 = vld [vmem:[#allocation5 + $0xa10] sm:$0xff] }
  0xae   :  { %3416 = vmatprep.subr.bf16.mxu1 %v8265_v42  ;;  %v147_v42 = vld [vmem:[#allocation5 + $0x1d0] sm:$0xff]  ;;  %v8138_v47 = vcombine.low %v411_v37, %v419_v39 }
  0xaf   :  { %3374 = vmatpush2.bf16.msra.mxu0 %v8008_v44  ;;  %v8139_v44 = vcombine.high %v411_v37, %v419_v39  ;;  %v587_v11 = vld [vmem:[#allocation5 + $0xf90] sm:$0xff] }
  0xb0   :  { %3375 = vmatprep.subr.bf16.mxu0 %v7993_v46  ;;  %v7882_v46 = vcombine.low %v155_v35, %v163_v36  ;;  %v595_v14 = vld [vmem:[#allocation5 + $0xfd0] sm:$0xff] }
  0xb1   :  { %3417 = vmatpush2.bf16.msra.mxu1 %v8264_v45  ;;  %v403_v45 = vld [vmem:[#allocation5 + $0x9d0] sm:$0xff] }
  0xb2   :  { %3418 = vmatprep.subr.bf16.mxu1 %v8249_v50  ;;  %v8123_v50 = vcombine.high %v395_v43, %v403_v45  ;;  %v315_v19 = vld [vmem:[#allocation5 + $0x710] sm:$0xff] }
  0xb3   :  { %3376 = vmatpush2.bf16.msra.mxu0 %v7992_v52  ;;  %v7866_v52 = vcombine.low %v139_v41, %v147_v42  ;;  %v323_v20 = vld [vmem:[#allocation5 + $0x750] sm:$0xff] }
  0xb4   :  { %3377 = vmatprep.subr.bf16.mxu0 %v7977_v54  ;;  %v571_v21 = vld [vmem:[#allocation5 + $0xf10] sm:$0xff] }
  0xb5   :  { %3419 = vmatpush2.bf16.msra.mxu1 %v8248_v53  ;;  %v8122_v53 = vcombine.low %v395_v43, %v403_v45  ;;  %v579_v23 = vld [vmem:[#allocation5 + $0xf50] sm:$0xff] }
  0xb6   :  { %3420 = vmatprep.subr.bf16.mxu1 %v8233_v60  ;;  %v8107_v60 = vcombine.high %v379_v49, %v387_v51  ;;  %v283_v35 = vld [vmem:[#allocation5 + $0x610] sm:$0xff] }
  0xb7   :  { %3378 = vmatpush2.bf16.msra.mxu0 %v7976_v62  ;;  %v291_v36 = vld [vmem:[#allocation5 + $0x650] sm:$0xff] }
  0xb8   :  { %3379 = vmatprep.subr.bf16.mxu0 %v7961_v0  ;;  %v7835_v0 = vcombine.high %v107_v55, %v115_v57  ;;  %v539_v37 = vld [vmem:[#allocation5 + $0xe10] sm:$0xff] }
  0xb9   :  { %3421 = vmatpush2.bf16.msra.mxu1 %v8232_v63  ;;  %v8106_v63 = vcombine.low %v379_v49, %v387_v51  ;;  %v547_v39 = vld [vmem:[#allocation5 + $0xe50] sm:$0xff] }
  0xba   :  { %3422 = vmatprep.subr.bf16.mxu1 %v8217_v4  ;;  %v8091_v4 = vcombine.high %v363_v58, %v371_v61  ;;  %v523_v43 = vld [vmem:[#allocation5 + $0xd90] sm:$0xff] }
  0xbb   :  { %3380 = vmatpush2.bf16.msra.mxu0 %v7960_v6  ;;  %v7834_v6 = vcombine.low %v107_v55, %v115_v57  ;;  %v531_v45 = vld [vmem:[#allocation5 + $0xdd0] sm:$0xff] }
  0xbc   :  { %3381 = vmatprep.subr.bf16.mxu0 %v7945_v8  ;;  %v7819_v8 = vcombine.high %v91_v1, %v99_v2  ;;  %v507_v49 = vld [vmem:[#allocation5 + $0xd10] sm:$0xff] }
  0xbd   :  { %3423 = vmatpush2.bf16.msra.mxu1 %v8216_v7  ;;  %v8090_v7 = vcombine.low %v363_v58, %v371_v61  ;;  %v515_v51 = vld [vmem:[#allocation5 + $0xd50] sm:$0xff] }
  0xbe   :  { %3424 = vmatprep.subr.bf16.mxu1 %v8201_v13  ;;  %v8075_v13 = vcombine.high %v347_v3, %v355_v5  ;;  %v235_v55 = vld [vmem:[#allocation5 + $0x490] sm:$0xff] }
  0xbf   :  { %3382 = vmatpush2.bf16.msra.mxu0 %v7944_v16  ;;  %v7818_v16 = vcombine.low %v91_v1, %v99_v2  ;;  %v243_v57 = vld [vmem:[#allocation5 + $0x4d0] sm:$0xff] }
  0xc0   :  { %3437 = vmatprep.subr.bf16.mxu0 %v7931_v18  ;;  %v8059_v18 = vcombine.high %v331_v9, %v339_v10  ;;  %v491_v58 = vld [vmem:[#allocation5 + $0xc90] sm:$0xff] }
  0xc1   :  { %3425 = vmatpush2.bf16.msra.mxu1 %v8200_v17  ;;  %v8074_v17 = vcombine.low %v347_v3, %v355_v5  ;;  %v499_v61 = vld [vmem:[#allocation5 + $0xcd0] sm:$0xff] }
  0xc2   :  { %3480 = vmatprep.subr.bf16.mxu1 %v8187_v22  ;;  %3384 = vmatmul.mubr.bf16.vlgmr.msra.gmra.mxu0 %v9828_v12  ;;  %v7898_v12 = vcombine.low %v171_v27, %v179_v28  ;;  %v8315_v22 = vcombine.high %v587_v11, %v595_v14  ;;  %v299_v27 = vld [vmem:[#allocation5 + $0x690] sm:$0xff] }
  0xc3   :  { %3438 = vmatpush1.bf16.msra.mxu0 %v7930_v24  ;;  %3469 = vmatprep.mubr.bf16.mxu0 %v9822_v56  ;;  %v7867_v56 = vcombine.high %v139_v41, %v147_v42  ;;  %v8058_v24 = vcombine.low %v331_v9, %v339_v10  ;;  %v307_v28 = vld [vmem:[#allocation5 + $0x6d0] sm:$0xff]  ;;  %v204_v9 = vld [vmem:[#allocation5 + $0x398] sm:$0xff] }
  0xc4   :  { %3427 = vmatmul.mubr.bf16.vlgmr.msra.gmra.mxu1 %v9830_v15  ;;  %3439 = vmatprep.subr.bf16.mxu0 %v7915_v26  ;;  %v8154_v15 = vcombine.low %v427_v30, %v435_v31  ;;  %v8043_v26 = vcombine.high %v315_v19, %v323_v20  ;;  %v8299_v30 = vcombine.high %v571_v21, %v579_v23  ;;  %v563_v31 = vld [vmem:[#allocation5 + $0xed0] sm:$0xff]  ;;  %v212_v10 = vld [vmem:[#allocation5 + $0x3d8] sm:$0xff] }
  0xc5   :  { %3481 = vmatpush1.bf16.msra.mxu1 %v8186_v25  ;;  %3512 = vmatprep.mubr.bf16.mxu1 %v9824_v59  ;;  %v131_v59 = vld [vmem:[#allocation5 + $0x150] sm:$0xff]  ;;  %v8314_v25 = vcombine.low %v587_v11, %v595_v14  ;;  %v460_v11 = vld [vmem:[#allocation5 + $0xb98] sm:$0xff] }
  0xc6   :  { %3482 = vmatprep.subr.bf16.mxu1 %v8171_v29  ;;  %v7851_v54 = vcombine.high %v123_v48, %v131_v59  ;;  %v7850_v62 = vcombine.low %v123_v48, %v131_v59  ;;  %v555_v29 = vld [vmem:[#allocation5 + $0xe90] sm:$0xff]  ;;  %v468_v14 = vld [vmem:[#allocation5 + $0xbd8] sm:$0xff] }
  0xc7   :  { %3440 = vmatpush1.bf16.msra.mxu0 %v7914_v32  ;;  %v8042_v32 = vcombine.low %v315_v19, %v323_v20  ;;  %v267_v41 = vld [vmem:[#allocation5 + $0x590] sm:$0xff]  ;;  %v188_v19 = vld [vmem:[#allocation5 + $0x318] sm:$0xff] }
  0xc8   :  { %3441 = vmatprep.subr.bf16.mxu0 %v7899_v34  ;;  %v8027_v34 = vcombine.high %v299_v27, %v307_v28  ;;  %v275_v42 = vld [vmem:[#allocation5 + $0x5d0] sm:$0xff]  ;;  %v196_v20 = vld [vmem:[#allocation5 + $0x358] sm:$0xff] }
  0xc9   :  { %3483 = vmatpush1.bf16.msra.mxu1 %v8170_v33  ;;  %v8298_v33 = vcombine.low %v571_v21, %v579_v23  ;;  %v251_v48 = vld [vmem:[#allocation5 + $0x510] sm:$0xff]  ;;  %v444_v21 = vld [vmem:[#allocation5 + $0xb18] sm:$0xff] }
  0xca   :  { %3484 = vmatprep.subr.bf16.mxu1 %v8155_v38  ;;  %v8283_v38 = vcombine.high %v555_v29, %v563_v31  ;;  %v259_v59 = vld [vmem:[#allocation5 + $0x550] sm:$0xff]  ;;  %v452_v23 = vld [vmem:[#allocation5 + $0xb58] sm:$0xff] }
  0xcb   :  { %3442 = vmatpush1.bf16.msra.mxu0 %v7898_v12  ;;  %v8026_v12 = vcombine.low %v299_v27, %v307_v28  ;;  %v219_v1 = vld [vmem:[#allocation5 + $0x410] sm:$0xff]  ;;  %v172_v27 = vld [vmem:[#allocation5 + $0x298] sm:$0xff] }
  0xcc   :  { %3443 = vmatprep.subr.bf16.mxu0 %v7883_v40  ;;  %v8011_v40 = vcombine.high %v283_v35, %v291_v36  ;;  %v227_v2 = vld [vmem:[#allocation5 + $0x450] sm:$0xff]  ;;  %v180_v28 = vld [vmem:[#allocation5 + $0x2d8] sm:$0xff] }
  0xcd   :  { %3485 = vmatpush1.bf16.msra.mxu1 %v8154_v15  ;;  %v8282_v15 = vcombine.low %v555_v29, %v563_v31  ;;  %v475_v3 = vld [vmem:[#allocation5 + $0xc10] sm:$0xff]  ;;  %v428_v29 = vld [vmem:[#allocation5 + $0xa98] sm:$0xff] }
  0xce   :  { %3486 = vmatprep.subr.bf16.mxu1 %v8139_v44  ;;  %v8267_v44 = vcombine.high %v539_v37, %v547_v39  ;;  %v483_v5 = vld [vmem:[#allocation5 + $0xc50] sm:$0xff]  ;;  %v436_v31 = vld [vmem:[#allocation5 + $0xad8] sm:$0xff] }
  0xcf   :  { %3444 = vmatpush1.bf16.msra.mxu0 %v7882_v46  ;;  %v8010_v46 = vcombine.low %v283_v35, %v291_v36  ;;  %v8172_v35 = vcombine.low %v444_v21, %v452_v23  ;;  %v7901_v36 = vcombine.high %v172_v27, %v180_v28 }
  0xd0   :  { %3445 = vmatprep.subr.bf16.mxu0 %v7867_v56  ;;  %v7995_v56 = vcombine.high %v267_v41, %v275_v42 }
  0xd1   :  { %3487 = vmatpush1.bf16.msra.mxu1 %v8138_v47  ;;  %v8266_v47 = vcombine.low %v539_v37, %v547_v39  ;;  %v156_v37 = vld [vmem:[#allocation5 + $0x218] sm:$0xff] }
  0xd2   :  { %3488 = vmatprep.subr.bf16.mxu1 %v8123_v50  ;;  %v8251_v50 = vcombine.high %v523_v43, %v531_v45  ;;  %v412_v39 = vld [vmem:[#allocation5 + $0xa18] sm:$0xff] }
  0xd3   :  { %3446 = vmatpush1.bf16.msra.mxu0 %v7866_v52  ;;  %v7994_v52 = vcombine.low %v267_v41, %v275_v42  ;;  %v9849_v41 = vld [vmem:[#allocation2 + $0xc] ss:$16 sps:$4 sm:$0xff]   ;;  %v7900_v42 = vcombine.low %v172_v27, %v180_v28 }
  0xd4   :  { %3447 = vmatprep.subr.bf16.mxu0 %v7851_v54  ;;  %v7979_v54 = vcombine.high %v251_v48, %v259_v59  ;;  %v580_v27 = vld [vmem:[#allocation5 + $0xf58] sm:$0xff] }
  0xd5   :  { %3489 = vmatpush1.bf16.msra.mxu1 %v8122_v53  ;;  %v8250_v53 = vcombine.low %v523_v43, %v531_v45  ;;  %v8156_v43 = vcombine.low %v428_v29, %v436_v31  ;;  %v140_v45 = vld [vmem:[#allocation5 + $0x198] sm:$0xff] }
  0xd6   :  { %3490 = vmatprep.subr.bf16.mxu1 %v8107_v60  ;;  %v8235_v60 = vcombine.high %v507_v49, %v515_v51 }
  0xd7   :  { %3448 = vmatpush1.bf16.msra.mxu0 %v7850_v62  ;;  %v7978_v62 = vcombine.low %v251_v48, %v259_v59  ;;  %v404_v48 = vld [vmem:[#allocation5 + $0x9d8] sm:$0xff] }
  0xd8   :  { %3449 = vmatprep.subr.bf16.mxu0 %v7835_v0  ;;  %v7963_v0 = vcombine.high %v235_v55, %v243_v57 }
  0xd9   :  { %3491 = vmatpush1.bf16.msra.mxu1 %v8106_v63  ;;  %v8234_v63 = vcombine.low %v507_v49, %v515_v51  ;;  %v124_v51 = vld [vmem:[#allocation5 + $0x118] sm:$0xff] }
  0xda   :  { %3492 = vmatprep.subr.bf16.mxu1 %v8091_v4  ;;  %v8219_v4 = vcombine.high %v491_v58, %v499_v61 }
  0xdb   :  { %3450 = vmatpush1.bf16.msra.mxu0 %v7834_v6  ;;  %v7962_v6 = vcombine.low %v235_v55, %v243_v57  ;;  %v388_v55 = vld [vmem:[#allocation5 + $0x958] sm:$0xff] }
  0xdc   :  { %3451 = vmatprep.subr.bf16.mxu0 %v7819_v8  ;;  %v7947_v8 = vcombine.high %v219_v1, %v227_v2 }
  0xdd   :  { %3493 = vmatpush1.bf16.msra.mxu1 %v8090_v7  ;;  %v8218_v7 = vcombine.low %v491_v58, %v499_v61  ;;  %v108_v61 = vld [vmem:[#allocation5 + $0x98] sm:$0xff] }
  0xde   :  { %3494 = vmatprep.subr.bf16.mxu1 %v8075_v13  ;;  %v8203_v13 = vcombine.high %v475_v3, %v483_v5 }
  0xdf   :  { %3452 = vmatpush1.bf16.msra.mxu0 %v7818_v16  ;;  %v7946_v16 = vcombine.low %v219_v1, %v227_v2  ;;  %v372_v1 = vld [vmem:[#allocation5 + $0x8d8] sm:$0xff] }
  0xe0   :  { %3453 = vmatprep.subr.bf16.mxu0 %v8059_v18  ;;  %v7933_v18 = vcombine.high %v204_v9, %v212_v10 }
  0xe1   :  { %3495 = vmatpush1.bf16.msra.mxu1 %v8074_v17  ;;  %v8202_v17 = vcombine.low %v475_v3, %v483_v5  ;;  %v92_v5 = vld [vmem:[#allocation5 + $0x18] sm:$0xff] }
  0xe2   :  { %3496 = vmatprep.subr.bf16.mxu1 %v8315_v22  ;;  %v8189_v22 = vcombine.high %v460_v11, %v468_v14 }
  0xe3   :  { %3454 = vmatpush2.bf16.msra.mxu0 %v8058_v24  ;;  %v7932_v24 = vcombine.low %v204_v9, %v212_v10  ;;  %v356_v9 = vld [vmem:[#allocation5 + $0x858] sm:$0xff] }
  0xe4   :  { %3455 = vmatprep.subr.bf16.mxu0 %v8043_v26  ;;  %v7917_v26 = vcombine.high %v188_v19, %v196_v20 }
  0xe5   :  { %3497 = vmatpush2.bf16.msra.mxu1 %v8314_v25  ;;  %v8188_v25 = vcombine.low %v460_v11, %v468_v14  ;;  %v332_v14 = vld [vmem:[#allocation5 + $0x798] sm:$0xff] }
  0xe6   :  { %3498 = vmatprep.subr.bf16.mxu1 %v8299_v30  ;;  %v8173_v30 = vcombine.high %v444_v21, %v452_v23  ;;  %v316_v23 = vld [vmem:[#allocation5 + $0x718] sm:$0xff] }
  0xe7   :  { %3456 = vmatpush2.bf16.msra.mxu0 %v8042_v32  ;;  %v9840_v32 = vld [vmem:[#allocation2] ss:$16 sps:$4 sm:$0xff]  }
  0xe8   :  { %3457 = vmatprep.subr.bf16.mxu0 %v8027_v34  ;;  %v7916_v34 = vcombine.low %v188_v19, %v196_v20  ;;  %v596_v19 = vld [vmem:[#allocation5 + $0xfd8] sm:$0xff] }
  0xe9   :  { %3499 = vmatpush2.bf16.msra.mxu1 %v8298_v33  ;;  %v9843_v33 = vld [vmem:[#allocation2 + $0x8] ss:$16 sps:$4 sm:$0xff]  }
  0xea   :  { %3500 = vmatprep.subr.bf16.mxu1 %v8283_v38  ;;  %v164_v38 = vld [vmem:[#allocation5 + $0x258] sm:$0xff] }
  0xeb   :  { %3458 = vmatpush2.bf16.msra.mxu0 %v8026_v12  ;;  %v8157_v12 = vcombine.high %v428_v29, %v436_v31  ;;  %v7884_v59 = vcombine.low %v156_v37, %v164_v38  ;;  %v300_v31 = vld [vmem:[#allocation5 + $0x698] sm:$0xff] }
  0xec   :  { %3459 = vmatprep.subr.bf16.mxu0 %v8011_v40  ;;  %v9846_v40 = vld [vmem:[#allocation2 + $0x4] ss:$16 sps:$4 sm:$0xff]  }
  0xed   :  { %3501 = vmatpush2.bf16.msra.mxu1 %v8282_v15  ;;  %v420_v15 = vld [vmem:[#allocation5 + $0xa58] sm:$0xff] }
  0xee   :  { %3502 = vmatprep.subr.bf16.mxu1 %v8267_v44  ;;  %v7885_v44 = vcombine.high %v156_v37, %v164_v38  ;;  %v8140_v49 = vcombine.low %v412_v39, %v420_v15  ;;  %v564_v37 = vld [vmem:[#allocation5 + $0xed8] sm:$0xff] }
  0xef   :  { %3460 = vmatpush2.bf16.msra.mxu0 %v8010_v46  ;;  %v148_v46 = vld [vmem:[#allocation5 + $0x1d8] sm:$0xff] }
  0xf0   :  { %3461 = vmatprep.subr.bf16.mxu0 %v7995_v56  ;;  %v8141_v56 = vcombine.high %v412_v39, %v420_v15  ;;  %v7868_v57 = vcombine.low %v140_v45, %v148_v46  ;;  %v284_v15 = vld [vmem:[#allocation5 + $0x618] sm:$0xff] }
  0xf1   :  { %3503 = vmatpush2.bf16.msra.mxu1 %v8266_v47  ;;  %v396_v47 = vld [vmem:[#allocation5 + $0x998] sm:$0xff] }
  0xf2   :  { %3504 = vmatprep.subr.bf16.mxu1 %v8251_v50  ;;  %v7869_v50 = vcombine.high %v140_v45, %v148_v46  ;;  %v8124_v58 = vcombine.low %v396_v47, %v404_v48  ;;  %v548_v45 = vld [vmem:[#allocation5 + $0xe58] sm:$0xff] }
  0xf3   :  { %3462 = vmatpush2.bf16.msra.mxu0 %v7994_v52  ;;  %v132_v52 = vld [vmem:[#allocation5 + $0x158] sm:$0xff] }
  0xf4   :  { %3463 = vmatprep.subr.bf16.mxu0 %v7979_v54  ;;  %v8125_v54 = vcombine.high %v396_v47, %v404_v48  ;;  %v7852_v2 = vcombine.low %v124_v51, %v132_v52  ;;  %v268_v48 = vld [vmem:[#allocation5 + $0x598] sm:$0xff] }
  0xf5   :  { %3505 = vmatpush2.bf16.msra.mxu1 %v8250_v53  ;;  %v380_v53 = vld [vmem:[#allocation5 + $0x918] sm:$0xff] }
  0xf6   :  { %3506 = vmatprep.subr.bf16.mxu1 %v8235_v60  ;;  %v7853_v60 = vcombine.high %v124_v51, %v132_v52  ;;  %v8108_v3 = vcombine.low %v380_v53, %v388_v55  ;;  %v532_v51 = vld [vmem:[#allocation5 + $0xdd8] sm:$0xff] }
  0xf7   :  { %3464 = vmatpush2.bf16.msra.mxu0 %v7978_v62  ;;  %v116_v62 = vld [vmem:[#allocation5 + $0xd8] sm:$0xff] }
  0xf8   :  { %3465 = vmatprep.subr.bf16.mxu0 %v7963_v0  ;;  %v8109_v0 = vcombine.high %v380_v53, %v388_v55  ;;  %v7836_v10 = vcombine.low %v108_v61, %v116_v62  ;;  %v252_v55 = vld [vmem:[#allocation5 + $0x518] sm:$0xff] }
  0xf9   :  { %3507 = vmatpush2.bf16.msra.mxu1 %v8234_v63  ;;  %v364_v63 = vld [vmem:[#allocation5 + $0x898] sm:$0xff] }
  0xfa   :  { %3508 = vmatprep.subr.bf16.mxu1 %v8219_v4  ;;  %v7837_v4 = vcombine.high %v108_v61, %v116_v62  ;;  %v8092_v11 = vcombine.low %v364_v63, %v372_v1  ;;  %v516_v61 = vld [vmem:[#allocation5 + $0xd58] sm:$0xff] }
  0xfb   :  { %3466 = vmatpush2.bf16.msra.mxu0 %v7962_v6  ;;  %v100_v6 = vld [vmem:[#allocation5 + $0x58] sm:$0xff] }
  0xfc   :  { %3467 = vmatprep.subr.bf16.mxu0 %v7947_v8  ;;  %v8093_v8 = vcombine.high %v364_v63, %v372_v1  ;;  %v7820_v20 = vcombine.low %v92_v5, %v100_v6  ;;  %v236_v1 = vld [vmem:[#allocation5 + $0x498] sm:$0xff] }
  0xfd   :  { %3509 = vmatpush2.bf16.msra.mxu1 %v8218_v7  ;;  %v348_v7 = vld [vmem:[#allocation5 + $0x818] sm:$0xff] }
  0xfe   :  { %3510 = vmatprep.subr.bf16.mxu1 %v8203_v13  ;;  %v7821_v13 = vcombine.high %v92_v5, %v100_v6  ;;  %v8076_v21 = vcombine.low %v348_v7, %v356_v9  ;;  %v500_v5 = vld [vmem:[#allocation5 + $0xcd8] sm:$0xff] }
  0xff   :  { %3468 = vmatpush2.bf16.msra.mxu0 %v7946_v16  ;;  %v340_v16 = vld [vmem:[#allocation5 + $0x7d8] sm:$0xff] }
 0x100   :  { %3523 = vmatprep.subr.bf16.mxu0 %v7933_v18  ;;  %v8077_v18 = vcombine.high %v348_v7, %v356_v9  ;;  %v8060_v28 = vcombine.low %v332_v14, %v340_v16  ;;  %v605_v7 = vlaneseq }
 0x101   :  { %3511 = vmatpush2.bf16.msra.mxu1 %v8202_v17  ;;  %v588_v17 = vld [vmem:[#allocation5 + $0xf98] sm:$0xff] }
 0x102   :  { %3566 = vmatprep.subr.bf16.mxu1 %v8189_v22  ;;  %3470 = vmatmul.mubr.bf16.vlgmr.msra.gmra.mxu0 %v9840_v32  ;;  %v8061_v22 = vcombine.high %v332_v14, %v340_v16  ;;  %v8316_v29 = vcombine.low %v588_v17, %v596_v19  ;;  %v484_v16 = vld [vmem:[#allocation5 + $0xc58] sm:$0xff] }
 0x103   :  { %3524 = vmatpush1.bf16.msra.mxu0 %v7932_v24  ;;  %3555 = vmatprep.mubr.bf16.mxu0 %v9846_v40  ;;  %v324_v24 = vld [vmem:[#allocation5 + $0x758] sm:$0xff] }
 0x104   :  { %3513 = vmatmul.mubr.bf16.vlgmr.msra.gmra.mxu1 %v9843_v33  ;;  %3525 = vmatprep.subr.bf16.mxu0 %v7917_v26  ;;  %v8317_v26 = vcombine.high %v588_v17, %v596_v19  ;;  %v8044_v38 = vcombine.low %v316_v23, %v324_v24 }
 0x105   :  { %3567 = vmatpush1.bf16.msra.mxu1 %v8188_v25  ;;  %3598 = vmatprep.mubr.bf16.mxu1 %v9849_v41  ;;  %v572_v25 = vld [vmem:[#allocation5 + $0xf18] sm:$0xff] }
 0x106   :  { %3568 = vmatprep.subr.bf16.mxu1 %v8173_v30  ;;  %v8045_v30 = vcombine.high %v316_v23, %v324_v24  ;;  %v8300_v39 = vcombine.low %v572_v25, %v580_v27  ;;  %v461_v23 = vld [vmem:[#allocation5 + $0xba0] sm:$0xff] }
 0x107   :  { %3526 = vmatpush1.bf16.msra.mxu0 %v7916_v34  ;;  %v308_v34 = vld [vmem:[#allocation5 + $0x6d8] sm:$0xff] }
 0x108   :  { %3527 = vmatprep.subr.bf16.mxu0 %v7901_v36  ;;  %v8301_v36 = vcombine.high %v572_v25, %v580_v27  ;;  %v8028_v46 = vcombine.low %v300_v31, %v308_v34  ;;  %v469_v25 = vld [vmem:[#allocation5 + $0xbe0] sm:$0xff] }
 0x109   :  { %3569 = vmatpush1.bf16.msra.mxu1 %v8172_v35  ;;  %v556_v35 = vld [vmem:[#allocation5 + $0xe98] sm:$0xff] }
 0x10a   :  { %3570 = vmatprep.subr.bf16.mxu1 %v8157_v12  ;;  %v8029_v12 = vcombine.high %v300_v31, %v308_v34  ;;  %v8284_v47 = vcombine.low %v556_v35, %v564_v37  ;;  %v189_v31 = vld [vmem:[#allocation5 + $0x320] sm:$0xff] }
 0x10b   :  { %3528 = vmatpush1.bf16.msra.mxu0 %v7900_v42  ;;  %v292_v42 = vld [vmem:[#allocation5 + $0x658] sm:$0xff]  ;;  %v197_v34 = vld [vmem:[#allocation5 + $0x360] sm:$0xff] }
 0x10c   :  { %3529 = vmatprep.subr.bf16.mxu0 %v7885_v44  ;;  %v8285_v44 = vcombine.high %v556_v35, %v564_v37  ;;  %v8012_v52 = vcombine.low %v284_v15, %v292_v42  ;;  %v445_v35 = vld [vmem:[#allocation5 + $0xb20] sm:$0xff] }
 0x10d   :  { %3571 = vmatpush1.bf16.msra.mxu1 %v8156_v43  ;;  %v540_v43 = vld [vmem:[#allocation5 + $0xe18] sm:$0xff]  ;;  %v453_v37 = vld [vmem:[#allocation5 + $0xb60] sm:$0xff] }
 0x10e   :  { %3572 = vmatprep.subr.bf16.mxu1 %v8141_v56  ;;  %v8013_v56 = vcombine.high %v284_v15, %v292_v42  ;;  %v8268_v53 = vcombine.low %v540_v43, %v548_v45  ;;  %v7919_v15 = vcombine.high %v189_v31, %v197_v34  ;;  %v173_v42 = vld [vmem:[#allocation5 + $0x2a0] sm:$0xff] }
 0x10f   :  { %3530 = vmatpush1.bf16.msra.mxu0 %v7884_v59  ;;  %v276_v59 = vld [vmem:[#allocation5 + $0x5d8] sm:$0xff] }
 0x110   :  { %3531 = vmatprep.subr.bf16.mxu0 %v7869_v50  ;;  %v8269_v50 = vcombine.high %v540_v43, %v548_v45  ;;  %v7996_v62 = vcombine.low %v268_v48, %v276_v59  ;;  %v181_v43 = vld [vmem:[#allocation5 + $0x2e0] sm:$0xff]  ;;  %v8175_v45 = vcombine.high %v445_v35, %v453_v37 }
 0x111   :  { %3573 = vmatpush1.bf16.msra.mxu1 %v8140_v49  ;;  %v524_v49 = vld [vmem:[#allocation5 + $0xd98] sm:$0xff] }
 0x112   :  { %3574 = vmatprep.subr.bf16.mxu1 %v8125_v54  ;;  %v7997_v54 = vcombine.high %v268_v48, %v276_v59  ;;  %v8252_v63 = vcombine.low %v524_v49, %v532_v51  ;;  %v7918_v59 = vcombine.low %v189_v31, %v197_v34  ;;  %v93_v34 = vld [vmem:[#allocation5 + $0x20] sm:$0xff] }
 0x113   :  { %3532 = vmatpush1.bf16.msra.mxu0 %v7868_v57  ;;  %v260_v57 = vld [vmem:[#allocation5 + $0x558] sm:$0xff] }
 0x114   :  { %3533 = vmatprep.subr.bf16.mxu0 %v7853_v60  ;;  %v8253_v60 = vcombine.high %v524_v49, %v532_v51  ;;  %v7980_v6 = vcombine.low %v252_v55, %v260_v57  ;;  %v7903_v51 = vcombine.high %v173_v42, %v181_v43 }
 0x115   :  { %3575 = vmatpush1.bf16.msra.mxu1 %v8124_v58  ;;  %v508_v58 = vld [vmem:[#allocation5 + $0xd18] sm:$0xff] }
 0x116   :  { %3576 = vmatprep.subr.bf16.mxu1 %v8109_v0  ;;  %v7981_v0 = vcombine.high %v252_v55, %v260_v57 }
 0x117   :  { %3534 = vmatpush1.bf16.msra.mxu0 %v7852_v2  ;;  %v244_v2 = vld [vmem:[#allocation5 + $0x4d8] sm:$0xff] }
 0x118   :  { %3535 = vmatprep.subr.bf16.mxu0 %v7837_v4  ;;  %v8237_v4 = vcombine.high %v508_v58, %v516_v61  ;;  %v7965_v9 = vcombine.high %v236_v1, %v244_v2  ;;  %v7964_v17 = vcombine.low %v236_v1, %v244_v2  ;;  %v141_v1 = vld [vmem:[#allocation5 + $0x1a0] sm:$0xff] }
 0x119   :  { %3577 = vmatpush1.bf16.msra.mxu1 %v8108_v3  ;;  %v492_v3 = vld [vmem:[#allocation5 + $0xc98] sm:$0xff]  ;;  %v149_v2 = vld [vmem:[#allocation5 + $0x1e0] sm:$0xff] }
 0x11a   :  { %3578 = vmatprep.subr.bf16.mxu1 %v8093_v8  ;;  %v8236_v8 = vcombine.low %v508_v58, %v516_v61  ;;  %v8221_v14 = vcombine.high %v492_v3, %v500_v5  ;;  %v8220_v19 = vcombine.low %v492_v3, %v500_v5  ;;  %v421_v58 = vld [vmem:[#allocation5 + $0xa60] sm:$0xff]  ;;  %v7902_v61 = vcombine.low %v173_v42, %v181_v43 }
 0x11b   :  { %3536 = vmatpush1.bf16.msra.mxu0 %v7836_v10  ;;  %v220_v10 = vld [vmem:[#allocation5 + $0x418] sm:$0xff]  ;;  %v397_v3 = vld [vmem:[#allocation5 + $0x9a0] sm:$0xff] }
 0x11c   :  { %3537 = vmatprep.subr.bf16.mxu0 %v7821_v13  ;;  %v476_v13 = vld [vmem:[#allocation5 + $0xc18] sm:$0xff]  ;;  %v333_v42 = vld [vmem:[#allocation5 + $0x7a0] sm:$0xff] }
 0x11d   :  { %3579 = vmatpush1.bf16.msra.mxu1 %v8092_v11  ;;  %v228_v11 = vld [vmem:[#allocation5 + $0x458] sm:$0xff]  ;;  %v8205_v24 = vcombine.high %v476_v13, %v484_v16  ;;  %v341_v43 = vld [vmem:[#allocation5 + $0x7e0] sm:$0xff] }
 0x11e   :  { %3580 = vmatprep.subr.bf16.mxu1 %v8077_v18  ;;  %v9852_v18 = vshrl.u32 %v605_v7, 7  ;;  %v7948_v27 = vcombine.low %v220_v10, %v228_v11 }
 0x11f   :  { %3538 = vmatpush1.bf16.msra.mxu0 %v7820_v20  ;;  %v7949_v20 = vcombine.high %v220_v10, %v228_v11  ;;  %v125_v10 = vld [vmem:[#allocation5 + $0x120] sm:$0xff] }
 0x120   :  { %3539 = vmatprep.subr.bf16.mxu0 %v8061_v22  ;;  %v213_v22 = vld [vmem:[#allocation5 + $0x3e0] sm:$0xff] }
 0x121   :  { %3581 = vmatpush1.bf16.msra.mxu1 %v8076_v21  ;;  %v205_v21 = vld [vmem:[#allocation5 + $0x3a0] sm:$0xff] }
 0x122   :  { %3582 = vmatprep.subr.bf16.mxu1 %v8317_v26  ;;  %v9854_v26 = vld [vmem:[#allocation7] sm:$0xff] }
 0x123   :  { %3540 = vmatpush2.bf16.msra.mxu0 %v8060_v28  ;;  %v9857_v28 = vsub.s32 0, %v9852_v18  ;;  %v133_v11 = vld [vmem:[#allocation5 + $0x160] sm:$0xff] }
 0x124   :  { %3541 = vmatprep.subr.bf16.mxu0 %v8045_v30  ;;  %v7935_v30 = vcombine.high %v205_v21, %v213_v22 }
 0x125   :  { %3583 = vmatpush2.bf16.msra.mxu1 %v8316_v29  ;;  %v8204_v29 = vcombine.low %v476_v13, %v484_v16  ;;  %v381_v13 = vld [vmem:[#allocation5 + $0x920] sm:$0xff] }
 0x126   :  { %3584 = vmatprep.subr.bf16.mxu1 %v8301_v36  ;;  %v8191_v36 = vcombine.high %v461_v23, %v469_v25 }
 0x127   :  { %3542 = vmatpush2.bf16.msra.mxu0 %v8044_v38  ;;  %v608_v38 = vrot.slane %v9854_v26, %v9857_v28 }
 0x128   :  { %3543 = vmatprep.subr.bf16.mxu0 %v8029_v12  ;;  %v8190_v12 = vcombine.low %v461_v23, %v469_v25  ;;  %v117_v23 = vld [vmem:[#allocation5 + $0xe0] sm:$0xff] }
 0x129   :  { %3585 = vmatpush2.bf16.msra.mxu1 %v8300_v39  ;;  %v7934_v39 = vcombine.low %v205_v21, %v213_v22  ;;  %v7855_v21 = vcombine.high %v125_v10, %v133_v11  ;;  %v109_v22 = vld [vmem:[#allocation5 + $0xa0] sm:$0xff] }
 0x12a   :  { %3586 = vmatprep.subr.bf16.mxu1 %v8285_v44  ;;  %v429_v44 = vld [vmem:[#allocation5 + $0xaa0] sm:$0xff]  ;;  %v7839_v31 = vcombine.high %v109_v22, %v117_v23 }
 0x12b   :  { %3544 = vmatpush2.bf16.msra.mxu0 %v8028_v46  ;;  %v437_v46 = vld [vmem:[#allocation5 + $0xae0] sm:$0xff] }
 0x12c   :  { %3545 = vmatprep.subr.bf16.mxu0 %v8013_v56 }
 0x12d   :  { %3587 = vmatpush2.bf16.msra.mxu1 %v8284_v47 }
 0x12e   :  { %3588 = vmatprep.subr.bf16.mxu1 %v8269_v50  ;;  %v8174_v50 = vcombine.low %v445_v35, %v453_v37  ;;  %v101_v35 = vld [vmem:[#allocation5 + $0x60] sm:$0xff] }
 0x12f   :  { %3546 = vmatpush2.bf16.msra.mxu0 %v8012_v52  ;;  %v157_v52 = vld [vmem:[#allocation5 + $0x220] sm:$0xff] }
 0x130   :  { %3547 = vmatprep.subr.bf16.mxu0 %v7997_v54  ;;  %v413_v54 = vld [vmem:[#allocation5 + $0xa20] sm:$0xff] }
 0x131   :  { %3589 = vmatpush2.bf16.msra.mxu1 %v8268_v53  ;;  %v165_v53 = vld [vmem:[#allocation5 + $0x260] sm:$0xff]  ;;  %v8143_v5 = vcombine.high %v413_v54, %v421_v58 }
 0x132   :  { %3590 = vmatprep.subr.bf16.mxu1 %v8253_v60 }
 0x133   :  { %3548 = vmatpush2.bf16.msra.mxu0 %v7996_v62 }
 0x134   :  { %3549 = vmatprep.subr.bf16.mxu0 %v7981_v0  ;;  %v7887_v0 = vcombine.high %v157_v52, %v165_v53 }
 0x135   :  { %3591 = vmatpush2.bf16.msra.mxu1 %v8252_v63  ;;  %v8158_v63 = vcombine.low %v429_v44, %v437_v46 }
 0x136   :  { %3592 = vmatprep.subr.bf16.mxu1 %v8237_v4 }
 0x137   :  { %3550 = vmatpush2.bf16.msra.mxu0 %v7980_v6  ;;  %v405_v6 = vld [vmem:[#allocation5 + $0x9e0] sm:$0xff] }
 0x138   :  { %3551 = vmatprep.subr.bf16.mxu0 %v7965_v9  ;;  %v7871_v9 = vcombine.high %v141_v1, %v149_v2  ;;  %v8127_v16 = vcombine.high %v397_v3, %v405_v6 }
 0x139   :  { %3593 = vmatpush2.bf16.msra.mxu1 %v8236_v8  ;;  %v7886_v8 = vcombine.low %v157_v52, %v165_v53  ;;  %v581_v53 = vld [vmem:[#allocation5 + $0xf60] sm:$0xff] }
 0x13a   :  { %3594 = vmatprep.subr.bf16.mxu1 %v8221_v14 }
 0x13b   :  { %3552 = vmatpush2.bf16.msra.mxu0 %v7964_v17  ;;  %v389_v17 = vld [vmem:[#allocation5 + $0x960] sm:$0xff] }
 0x13c   :  { %3553 = vmatprep.subr.bf16.mxu0 %v7949_v20  ;;  %v8126_v20 = vcombine.low %v397_v3, %v405_v6  ;;  %v8111_v25 = vcombine.high %v381_v13, %v389_v17  ;;  %v293_v3 = vld [vmem:[#allocation5 + $0x660] sm:$0xff] }
 0x13d   :  { %3595 = vmatpush2.bf16.msra.mxu1 %v8220_v19  ;;  %v7870_v19 = vcombine.low %v141_v1, %v149_v2  ;;  %v285_v2 = vld [vmem:[#allocation5 + $0x620] sm:$0xff] }
 0x13e   :  { %3596 = vmatprep.subr.bf16.mxu1 %v8205_v24  ;;  %v365_v24 = vld [vmem:[#allocation5 + $0x8a0] sm:$0xff] }
 0x13f   :  { %3554 = vmatpush2.bf16.msra.mxu0 %v7948_v27  ;;  %v373_v27 = vld [vmem:[#allocation5 + $0x8e0] sm:$0xff] }
 0x140   :  { %3609 = vmatprep.subr.bf16.mxu0 %v7935_v30  ;;  %v8110_v30 = vcombine.low %v381_v13, %v389_v17  ;;  %v8095_v37 = vcombine.high %v365_v24, %v373_v27  ;;  %v549_v6 = vld [vmem:[#allocation5 + $0xe60] sm:$0xff] }
 0x141   :  { %3597 = vmatpush2.bf16.msra.mxu1 %v8204_v29  ;;  %v7854_v29 = vcombine.low %v125_v10, %v133_v11  ;;  %v525_v10 = vld [vmem:[#allocation5 + $0xda0] sm:$0xff] }
 0x142   :  { %3652 = vmatprep.subr.bf16.mxu1 %v8191_v36  ;;  %v3299_v47 = vpop.f32.mrf.mxu0  ;;  %3556 = vmatmul.mubr.bf16.vlgmr.msra.gmra.mxu0 %v9840_v32  ;;  %v8159_v32 = vcombine.high %v429_v44, %v437_v46  ;;  %v349_v36 = vld [vmem:[#allocation5 + $0x820] sm:$0xff] }
 0x143   :  { %v3300_v56 = vadd.f32 %v3299_v47, %v608_v38  ;;  %3610 = vmatpush1.bf16.msra.mxu0 %v7934_v39  ;;  %3641 = vmatprep.mubr.bf16.mxu0 %v9846_v40  ;;  %v7838_v39 = vcombine.low %v109_v22, %v117_v23  ;;  %v589_v44 = vld [vmem:[#allocation5 + $0xfa0] sm:$0xff]  ;;  %v7822_v47 = vcombine.low %v93_v34, %v101_v35 }
 0x144   :  { %v3342_v48 = vpop.f32.mrf.mxu1  ;;  %3599 = vmatmul.mubr.bf16.vlgmr.msra.gmra.mxu1 %v9843_v33  ;;  %v9863_v49 = vpop.f32.mrf.mxu0  ;;  %3611 = vmatprep.subr.bf16.mxu0 %v7919_v15  ;;  %v7823_v15 = vcombine.high %v93_v34, %v101_v35  ;;  %v597_v46 = vld [vmem:[#allocation5 + $0xfe0] sm:$0xff] }
 0x145   :  { %3653 = vmatpush1.bf16.msra.mxu1 %v8190_v12  ;;  %v3343_v55 = vadd.f32 %v3342_v48, %v3300_v56  ;;  %3684 = vmatprep.mubr.bf16.mxu1 %v9849_v41  ;;  %v8142_v41 = vcombine.low %v413_v54, %v421_v58  ;;  %v8094_v12 = vcombine.low %v365_v24, %v373_v27  ;;  %v301_v58 = vld [vmem:[#allocation5 + $0x6a0] sm:$0xff] }
 0x146   :  { %v9865_v57 = vpop.f32.mrf.mxu1  ;;  %3654 = vmatprep.subr.bf16.mxu1 %v8175_v45  ;;  %v3303_v33 = vpop.f32.mrf.mxu0  ;;  %v8063_v48 = vcombine.high %v333_v42, %v341_v43  ;;  %v8319_v52 = vcombine.high %v589_v44, %v597_v46  ;;  %v8062_v54 = vcombine.low %v333_v42, %v341_v43  ;;  %v533_v13 = vld [vmem:[#allocation5 + $0xde0] sm:$0xff] }
 0x147   :  { %v3304_v60 = vadd.f32 %v3303_v33, %v608_v38  ;;  %3612 = vmatpush1.bf16.msra.mxu0 %v7918_v59  ;;  %v3953_v7 = vmax.f32 %v3343_v55, 0.0  ;;  %v357_v38 = vld [vmem:[#allocation5 + $0x860] sm:$0xff]  ;;  %v8318_v55 = vcombine.low %v589_v44, %v597_v46  ;;  %v8255_v23 = vcombine.high %v525_v10, %v533_v13 }
 0x148   :  { %v3346_v62 = vpop.f32.mrf.mxu1  ;;  %3613 = vmatprep.subr.bf16.mxu0 %v7903_v51  ;;  %v8079_v45 = vcombine.high %v349_v36, %v357_v38  ;;  %v8078_v56 = vcombine.low %v349_v36, %v357_v38  ;;  %v317_v59 = vld [vmem:[#allocation5 + $0x720] sm:$0xff]  ;;  %v8254_v27 = vcombine.low %v525_v10, %v533_v13  ;;  %v9883_v10 = vld [vmem:[#allocation2 + $0x8] ss:$16 sps:$4 sm:$0xff]  }
 0x149   :  { %3655 = vmatpush1.bf16.msra.mxu1 %v8174_v50  ;;  %v3347_v4 = vadd.f32 %v3346_v62, %v3304_v60  ;;  %v325_v50 = vld [vmem:[#allocation5 + $0x760] sm:$0xff] }
 0x14a   :  { %3656 = vmatprep.subr.bf16.mxu1 %v8159_v32  ;;  %v573_v51 = vld [vmem:[#allocation5 + $0xf20] sm:$0xff]  ;;  %v8047_v32 = vcombine.high %v317_v59, %v325_v50 }
 0x14b   :  { %v3969_v40 = vmax.f32 %v3347_v4, 0.0  ;;  %3614 = vmatpush1.bf16.msra.mxu0 %v7902_v61  ;;  %v309_v33 = vld [vmem:[#allocation5 + $0x6e0] sm:$0xff]  ;;  %v8303_v61 = vcombine.high %v573_v51, %v581_v53 }
 0x14c   :  { %3615 = vmatprep.subr.bf16.mxu0 %v7887_v0  ;;  %v557_v60 = vld [vmem:[#allocation5 + $0xea0] sm:$0xff]  ;;  %v8302_v0 = vcombine.low %v573_v51, %v581_v53  ;;  %v8031_v1 = vcombine.high %v301_v58, %v309_v33  ;;  %v470_v51 = vld [vmem:[#allocation5 + $0xbe8] sm:$0xff]  ;;  %v9872_v53 = vsub.s32 2, %v9852_v18 }
 0x14d   :  { %3657 = vmatpush1.bf16.msra.mxu1 %v8158_v63  ;;  %v9869_v14 = vpack.c.bf16 %v3969_v40, %v3953_v7  ;;  %v565_v62 = vld [vmem:[#allocation5 + $0xee0] sm:$0xff]  ;;  %v8046_v63 = vcombine.low %v317_v59, %v325_v50  ;;  %v8030_v7 = vcombine.low %v301_v58, %v309_v33  ;;  %v462_v59 = vld [vmem:[#allocation5 + $0xba8] sm:$0xff] }
 0x14e   :  { %3658 = vmatprep.subr.bf16.mxu1 %v8143_v5  ;;  %v541_v4 = vld [vmem:[#allocation5 + $0xe20] sm:$0xff]  ;;  %v8287_v5 = vcombine.high %v557_v60, %v565_v62  ;;  %v8286_v40 = vcombine.low %v557_v60, %v565_v62  ;;  %v198_v58 = vld [vmem:[#allocation5 + $0x368] sm:$0xff]  ;;  %v8193_v60 = vcombine.high %v462_v59, %v470_v51  ;;  %v616_v62 = vrot.slane %v9854_v26, %v9872_v53 }
 0x14f   :  { %3616 = vmatpush1.bf16.msra.mxu0 %v7886_v8  ;;  %v8015_v8 = vcombine.high %v285_v2, %v293_v3  ;;  %v8271_v11 = vcombine.high %v541_v4, %v549_v6  ;;  %v8270_v17 = vcombine.low %v541_v4, %v549_v6  ;;  %v509_v22 = vld [vmem:[#allocation5 + $0xd20] sm:$0xff]  ;;  %v446_v33 = vld [vmem:[#allocation5 + $0xb28] sm:$0xff]  ;;  %v9878_v6 = vpop.f32.mrf.mxu1 }
 0x150   :  { %3617 = vmatprep.subr.bf16.mxu0 %v7871_v9  ;;  %v277_v9 = vld [vmem:[#allocation5 + $0x5e0] sm:$0xff]  ;;  %v182_v4 = vld [vmem:[#allocation5 + $0x2e8] sm:$0xff] }
 0x151   :  { %3659 = vmatpush1.bf16.msra.mxu1 %v8142_v41  ;;  %v269_v41 = vld [vmem:[#allocation5 + $0x5a0] sm:$0xff] }
 0x152   :  { %3660 = vmatprep.subr.bf16.mxu1 %v8127_v16  ;;  %v8014_v16 = vcombine.low %v285_v2, %v293_v3  ;;  %v517_v24 = vld [vmem:[#allocation5 + $0xd60] sm:$0xff]  ;;  %v174_v3 = vld [vmem:[#allocation5 + $0x2a8] sm:$0xff] }
 0x153   :  { %3618 = vmatpush1.bf16.msra.mxu0 %v7870_v19  ;;  %v7999_v19 = vcombine.high %v269_v41, %v277_v9  ;;  %v493_v34 = vld [vmem:[#allocation5 + $0xca0] sm:$0xff]  ;;  %v8239_v35 = vcombine.high %v509_v22, %v517_v24  ;;  %v8238_v38 = vcombine.low %v509_v22, %v517_v24  ;;  %v158_v22 = vld [vmem:[#allocation5 + $0x228] sm:$0xff] }
 0x154   :  { %3619 = vmatprep.subr.bf16.mxu0 %v7855_v21  ;;  %v261_v21 = vld [vmem:[#allocation5 + $0x560] sm:$0xff] }
 0x155   :  { %3661 = vmatpush1.bf16.msra.mxu1 %v8126_v20  ;;  %v253_v20 = vld [vmem:[#allocation5 + $0x520] sm:$0xff] }
 0x156   :  { %3662 = vmatprep.subr.bf16.mxu1 %v8111_v25  ;;  %v7998_v25 = vcombine.low %v269_v41, %v277_v9  ;;  %v501_v36 = vld [vmem:[#allocation5 + $0xce0] sm:$0xff] }
 0x157   :  { %3620 = vmatpush1.bf16.msra.mxu0 %v7854_v29  ;;  %v7983_v29 = vcombine.high %v253_v20, %v261_v21  ;;  %v477_v42 = vld [vmem:[#allocation5 + $0xc20] sm:$0xff]  ;;  %v8223_v43 = vcombine.high %v493_v34, %v501_v36  ;;  %v8222_v46 = vcombine.low %v493_v34, %v501_v36  ;;  %v7904_v34 = vcombine.low %v174_v3, %v182_v4 }
 0x158   :  { %3621 = vmatprep.subr.bf16.mxu0 %v7839_v31  ;;  %v245_v31 = vld [vmem:[#allocation5 + $0x4e0] sm:$0xff] }
 0x159   :  { %3663 = vmatpush1.bf16.msra.mxu1 %v8110_v30  ;;  %v237_v30 = vld [vmem:[#allocation5 + $0x4a0] sm:$0xff] }
 0x15a   :  { %3664 = vmatprep.subr.bf16.mxu1 %v8095_v37  ;;  %v7982_v37 = vcombine.low %v253_v20, %v261_v21  ;;  %v485_v44 = vld [vmem:[#allocation5 + $0xc60] sm:$0xff] }
 0x15b   :  { %3622 = vmatpush1.bf16.msra.mxu0 %v7838_v39  ;;  %v7967_v39 = vcombine.high %v237_v30, %v245_v31  ;;  %v8207_v50 = vcombine.high %v477_v42, %v485_v44  ;;  %v9880_v41 = vld [vmem:[#allocation2] ss:$16 sps:$4 sm:$0xff]   ;;  %v9890_v24 = vld [vmem:[#allocation2 + $0x4] ss:$16 sps:$4 sm:$0xff]  }
 0x15c   :  { %3623 = vmatprep.subr.bf16.mxu0 %v7823_v15  ;;  %v229_v15 = vld [vmem:[#allocation5 + $0x460] sm:$0xff] }
 0x15d   :  { %3665 = vmatpush1.bf16.msra.mxu1 %v8094_v12  ;;  %v221_v12 = vld [vmem:[#allocation5 + $0x420] sm:$0xff] }
 0x15e   :  { %3666 = vmatprep.subr.bf16.mxu1 %v8079_v45  ;;  %v7966_v45 = vcombine.low %v237_v30, %v245_v31  ;;  %v9893_v30 = vld [vmem:[#allocation2 + $0xc] ss:$16 sps:$4 sm:$0xff]  }
 0x15f   :  { %3624 = vmatpush1.bf16.msra.mxu0 %v7822_v47  ;;  %v7951_v47 = vcombine.high %v221_v12, %v229_v15 }
 0x160   :  { %3625 = vmatprep.subr.bf16.mxu0 %v8063_v48  ;;  %v214_v48 = vld [vmem:[#allocation5 + $0x3e8] sm:$0xff] }
 0x161   :  { %3667 = vmatpush1.bf16.msra.mxu1 %v8078_v56  ;;  %v206_v56 = vld [vmem:[#allocation5 + $0x3a8] sm:$0xff] }
 0x162   :  { %3668 = vmatprep.subr.bf16.mxu1 %v8319_v52  ;;  %v7950_v52 = vcombine.low %v221_v12, %v229_v15  ;;  %v142_v12 = vld [vmem:[#allocation5 + $0x1a8] sm:$0xff] }
 0x163   :  { %3626 = vmatpush2.bf16.msra.mxu0 %v8062_v54  ;;  %v8206_v54 = vcombine.low %v477_v42, %v485_v44  ;;  %v150_v15 = vld [vmem:[#allocation5 + $0x1e8] sm:$0xff] }
 0x164   :  { %3627 = vmatprep.subr.bf16.mxu0 %v8047_v32  ;;  %v190_v32 = vld [vmem:[#allocation5 + $0x328] sm:$0xff] }
 0x165   :  { %3669 = vmatpush2.bf16.msra.mxu1 %v8318_v55  ;;  %v7937_v55 = vcombine.high %v206_v56, %v214_v48  ;;  %v7921_v2 = vcombine.high %v190_v32, %v198_v58  ;;  %v398_v42 = vld [vmem:[#allocation5 + $0x9a8] sm:$0xff] }
 0x166   :  { %3670 = vmatprep.subr.bf16.mxu1 %v8303_v61  ;;  %v454_v61 = vld [vmem:[#allocation5 + $0xb68] sm:$0xff] }
 0x167   :  { %3628 = vmatpush2.bf16.msra.mxu0 %v8046_v63  ;;  %v7936_v63 = vcombine.low %v206_v56, %v214_v48  ;;  %v7873_v56 = vcombine.high %v142_v12, %v150_v15 }
 0x168   :  { %3629 = vmatprep.subr.bf16.mxu0 %v8031_v1  ;;  %v8192_v1 = vcombine.low %v462_v59, %v470_v51  ;;  %v134_v51 = vld [vmem:[#allocation5 + $0x168] sm:$0xff] }
 0x169   :  { %3671 = vmatpush2.bf16.msra.mxu1 %v8302_v0  ;;  %v9876_v0 = vpop.f32.mrf.mxu0 }
 0x16a   :  { %3672 = vmatprep.subr.bf16.mxu1 %v8287_v5  ;;  %v430_v5 = vld [vmem:[#allocation5 + $0xaa8] sm:$0xff] }
 0x16b   :  { %3630 = vmatpush2.bf16.msra.mxu0 %v8030_v7  ;;  %v8177_v7 = vcombine.high %v446_v33, %v454_v61 }
 0x16c   :  { %3631 = vmatprep.subr.bf16.mxu0 %v8015_v8 }
 0x16d   :  { %3673 = vmatpush2.bf16.msra.mxu1 %v8286_v40  ;;  %v438_v40 = vld [vmem:[#allocation5 + $0xae8] sm:$0xff] }
 0x16e   :  { %3674 = vmatprep.subr.bf16.mxu1 %v8271_v11  ;;  %v7920_v11 = vcombine.low %v190_v32, %v198_v58  ;;  %v8161_v21 = vcombine.high %v430_v5, %v438_v40  ;;  %v8160_v36 = vcombine.low %v430_v5, %v438_v40  ;;  %v94_v5 = vld [vmem:[#allocation5 + $0x28] sm:$0xff] }
 0x16f   :  { %3632 = vmatpush2.bf16.msra.mxu0 %v8014_v16  ;;  %v8176_v16 = vcombine.low %v446_v33, %v454_v61  ;;  %v118_v61 = vld [vmem:[#allocation5 + $0xe8] sm:$0xff] }
 0x170   :  { %3633 = vmatprep.subr.bf16.mxu0 %v7999_v19  ;;  %v350_v40 = vld [vmem:[#allocation5 + $0x828] sm:$0xff] }
 0x171   :  { %3675 = vmatpush2.bf16.msra.mxu1 %v8270_v17  ;;  %v7905_v17 = vcombine.high %v174_v3, %v182_v4 }
 0x172   :  { %3676 = vmatprep.subr.bf16.mxu1 %v8255_v23  ;;  %v166_v23 = vld [vmem:[#allocation5 + $0x268] sm:$0xff] }
 0x173   :  { %3634 = vmatpush2.bf16.msra.mxu0 %v7998_v25 }
 0x174   :  { %3635 = vmatprep.subr.bf16.mxu0 %v7983_v29  ;;  %v422_v29 = vld [vmem:[#allocation5 + $0xa68] sm:$0xff] }
 0x175   :  { %3677 = vmatpush2.bf16.msra.mxu1 %v8254_v27  ;;  %v414_v27 = vld [vmem:[#allocation5 + $0xa28] sm:$0xff] }
 0x176   :  { %3678 = vmatprep.subr.bf16.mxu1 %v8239_v35 }
 0x177   :  { %3636 = vmatpush2.bf16.msra.mxu0 %v7982_v37  ;;  %v7889_v37 = vcombine.high %v158_v22, %v166_v23 }
 0x178   :  { %3637 = vmatprep.subr.bf16.mxu0 %v7967_v39  ;;  %v8145_v39 = vcombine.high %v414_v27, %v422_v29 }
 0x179   :  { %3679 = vmatpush2.bf16.msra.mxu1 %v8238_v38 }
 0x17a   :  { %3680 = vmatprep.subr.bf16.mxu1 %v8223_v43  ;;  %v406_v43 = vld [vmem:[#allocation5 + $0x9e8] sm:$0xff] }
 0x17b   :  { %3638 = vmatpush2.bf16.msra.mxu0 %v7966_v45  ;;  %v8129_v59 = vcombine.high %v398_v42, %v406_v43  ;;  %v8128_v32 = vcombine.low %v398_v42, %v406_v43  ;;  %v310_v42 = vld [vmem:[#allocation5 + $0x6e8] sm:$0xff] }
 0x17c   :  { %3639 = vmatprep.subr.bf16.mxu0 %v7951_v47  ;;  %v8144_v47 = vcombine.low %v414_v27, %v422_v29  ;;  %v558_v43 = vld [vmem:[#allocation5 + $0xea8] sm:$0xff] }
 0x17d   :  { %3681 = vmatpush2.bf16.msra.mxu1 %v8222_v46  ;;  %v7888_v46 = vcombine.low %v158_v22, %v166_v23  ;;  %v598_v22 = vld [vmem:[#allocation5 + $0xfe8] sm:$0xff] }
 0x17e   :  { %3682 = vmatprep.subr.bf16.mxu1 %v8207_v50  ;;  %v126_v50 = vld [vmem:[#allocation5 + $0x128] sm:$0xff] }
 0x17f   :  { %3640 = vmatpush2.bf16.msra.mxu0 %v7950_v52  ;;  %v382_v52 = vld [vmem:[#allocation5 + $0x928] sm:$0xff]  ;;  %v7857_v58 = vcombine.high %v126_v50, %v134_v51 }
 0x180   :  { %3695 = vmatprep.subr.bf16.mxu0 %v7937_v55  ;;  %v7872_v55 = vcombine.low %v142_v12, %v150_v15  ;;  %v302_v15 = vld [vmem:[#allocation5 + $0x6a8] sm:$0xff] }
 0x181   :  { %3683 = vmatpush2.bf16.msra.mxu1 %v8206_v54  ;;  %v390_v54 = vld [vmem:[#allocation5 + $0x968] sm:$0xff] }
 0x182   :  { %3738 = vmatprep.subr.bf16.mxu1 %v8193_v60  ;;  %v3385_v8 = vpop.f32.mrf.mxu0  ;;  %3642 = vmatmul.mubr.bf16.vlgmr.msra.gmra.mxu0 %v9880_v41  ;;  %v8113_v33 = vcombine.high %v382_v52, %v390_v54  ;;  %v110_v60 = vld [vmem:[#allocation5 + $0xa8] sm:$0xff] }
 0x183   :  { %v3386_v26 = vadd.f32 %v3385_v8, %v616_v62  ;;  %3696 = vmatpush1.bf16.msra.mxu0 %v7936_v63  ;;  %3727 = vmatprep.mubr.bf16.mxu0 %v9890_v24  ;;  %v374_v63 = vld [vmem:[#allocation5 + $0x8e8] sm:$0xff]  ;;  %v7841_v3 = vcombine.high %v110_v60, %v118_v61 }
 0x184   :  { %v3428_v9 = vpop.f32.mrf.mxu1  ;;  %3685 = vmatmul.mubr.bf16.vlgmr.msra.gmra.mxu1 %v9883_v10  ;;  %v9886_v13 = vpop.f32.mrf.mxu0  ;;  %3697 = vmatprep.subr.bf16.mxu0 %v7921_v2  ;;  %v8112_v2 = vcombine.low %v382_v52, %v390_v54  ;;  %v358_v8 = vld [vmem:[#allocation5 + $0x868] sm:$0xff]  ;;  %v8032_v54 = vcombine.low %v302_v15, %v310_v42 }
 0x185   :  { %3739 = vmatpush1.bf16.msra.mxu1 %v8192_v1  ;;  %v3429_v19 = vadd.f32 %v3428_v9, %v3386_v26  ;;  %3770 = vmatprep.mubr.bf16.mxu1 %v9893_v30  ;;  %v7856_v1 = vcombine.low %v126_v50, %v134_v51  ;;  %v7840_v26 = vcombine.low %v110_v60, %v118_v61  ;;  %v294_v50 = vld [vmem:[#allocation5 + $0x668] sm:$0xff] }
 0x186   :  { %v9888_v20 = vpop.f32.mrf.mxu1  ;;  %3740 = vmatprep.subr.bf16.mxu1 %v8177_v7  ;;  %v3389_v25 = vpop.f32.mrf.mxu0  ;;  %v102_v7 = vld [vmem:[#allocation5 + $0x68] sm:$0xff] }
 0x187   :  { %v3390_v31 = vadd.f32 %v3389_v25, %v616_v62  ;;  %3698 = vmatpush1.bf16.msra.mxu0 %v7920_v11  ;;  %v3955_v44 = vmax.f32 %v3429_v19, 0.0  ;;  %v366_v62 = vld [vmem:[#allocation5 + $0x8a8] sm:$0xff]  ;;  %v7825_v11 = vcombine.high %v94_v5, %v102_v7  ;;  %v7824_v23 = vcombine.low %v94_v5, %v102_v7 }
 0x188   :  { %v3432_v35 = vpop.f32.mrf.mxu1  ;;  %3699 = vmatprep.subr.bf16.mxu0 %v7905_v17  ;;  %v8097_v4 = vcombine.high %v366_v62, %v374_v63  ;;  %v8096_v9 = vcombine.low %v366_v62, %v374_v63  ;;  %v334_v17 = vld [vmem:[#allocation5 + $0x7a8] sm:$0xff]  ;;  %v8080_v25 = vcombine.low %v350_v40, %v358_v8 }
 0x189   :  { %3741 = vmatpush1.bf16.msra.mxu1 %v8176_v16  ;;  %v3433_v38 = vadd.f32 %v3432_v35, %v3390_v31  ;;  %v8081_v16 = vcombine.high %v350_v40, %v358_v8  ;;  %v342_v19 = vld [vmem:[#allocation5 + $0x7e8] sm:$0xff] }
 0x18a   :  { %3742 = vmatprep.subr.bf16.mxu1 %v8161_v21  ;;  %v590_v21 = vld [vmem:[#allocation5 + $0xfa8] sm:$0xff]  ;;  %v8065_v27 = vcombine.high %v334_v17, %v342_v19 }
 0x18b   :  { %v3971_v45 = vmax.f32 %v3433_v38, 0.0  ;;  %3700 = vmatpush1.bf16.msra.mxu0 %v7904_v34  ;;  %v8321_v29 = vcombine.high %v590_v21, %v598_v22  ;;  %v318_v31 = vld [vmem:[#allocation5 + $0x728] sm:$0xff]  ;;  %v8320_v38 = vcombine.low %v590_v21, %v598_v22 }
 0x18c   :  { %3701 = vmatprep.subr.bf16.mxu0 %v7889_v37  ;;  %v326_v34 = vld [vmem:[#allocation5 + $0x768] sm:$0xff]  ;;  %v8064_v37 = vcombine.low %v334_v17, %v342_v19 }
 0x18d   :  { %3743 = vmatpush1.bf16.msra.mxu1 %v8160_v36  ;;  %v9896_v48 = vpack.c.bf16 %v3971_v45, %v3955_v44  ;;  %v574_v35 = vld [vmem:[#allocation5 + $0xf28] sm:$0xff]  ;;  %v8048_v45 = vcombine.low %v318_v31, %v326_v34 }
 0x18e   :  { %3744 = vmatprep.subr.bf16.mxu1 %v8145_v39  ;;  %v582_v36 = vld [vmem:[#allocation5 + $0xf68] sm:$0xff]  ;;  %v8049_v39 = vcombine.high %v318_v31, %v326_v34 }
 0x18f   :  { %3702 = vmatpush1.bf16.msra.mxu0 %v7888_v46  ;;  %v8305_v12 = vcombine.high %v574_v35, %v582_v36  ;;  %v566_v44 = vld [vmem:[#allocation5 + $0xee8] sm:$0xff]  ;;  %v8304_v46 = vcombine.low %v574_v35, %v582_v36 }
 0x190   :  { %3703 = vmatprep.subr.bf16.mxu0 %v7873_v56  ;;  %v8289_v56 = vcombine.high %v558_v43, %v566_v44  ;;  %v542_v51 = vld [vmem:[#allocation5 + $0xe28] sm:$0xff] }
 0x191   :  { %3745 = vmatpush1.bf16.msra.mxu1 %v8144_v47  ;;  %v8033_v47 = vcombine.high %v302_v15, %v310_v42  ;;  %v550_v52 = vld [vmem:[#allocation5 + $0xe68] sm:$0xff]  ;;  %v215_v15 = vld [vmem:[#allocation5 + $0x3f0] sm:$0xff] }
 0x192   :  { %3746 = vmatprep.subr.bf16.mxu1 %v8129_v59  ;;  %v286_v59 = vld [vmem:[#allocation5 + $0x628] sm:$0xff]  ;;  %v463_v42 = vld [vmem:[#allocation5 + $0xbb0] sm:$0xff] }
 0x193   :  { %3704 = vmatpush1.bf16.msra.mxu0 %v7872_v55  ;;  %v8288_v55 = vcombine.low %v558_v43, %v566_v44  ;;  %v278_v60 = vld [vmem:[#allocation5 + $0x5e8] sm:$0xff]  ;;  %v8016_v63 = vcombine.low %v286_v59, %v294_v50  ;;  %v471_v43 = vld [vmem:[#allocation5 + $0xbf0] sm:$0xff] }
 0x194   :  { %3705 = vmatprep.subr.bf16.mxu0 %v7857_v58  ;;  %v8273_v58 = vcombine.high %v542_v51, %v550_v52  ;;  %v526_v61 = vld [vmem:[#allocation5 + $0xda8] sm:$0xff] }
 0x195   :  { %3747 = vmatpush1.bf16.msra.mxu1 %v8128_v32  ;;  %v8017_v32 = vcombine.high %v286_v59, %v294_v50  ;;  %v534_v62 = vld [vmem:[#allocation5 + $0xde8] sm:$0xff]  ;;  %v191_v59 = vld [vmem:[#allocation5 + $0x330] sm:$0xff] }
 0x196   :  { %3748 = vmatprep.subr.bf16.mxu1 %v8113_v33  ;;  %v270_v33 = vld [vmem:[#allocation5 + $0x5a8] sm:$0xff]  ;;  %v199_v50 = vld [vmem:[#allocation5 + $0x370] sm:$0xff] }
 0x197   :  { %3706 = vmatpush1.bf16.msra.mxu0 %v7856_v1  ;;  %v8272_v1 = vcombine.low %v542_v51, %v550_v52  ;;  %v262_v5 = vld [vmem:[#allocation5 + $0x568] sm:$0xff]  ;;  %v8000_v8 = vcombine.low %v270_v33, %v278_v60  ;;  %v447_v51 = vld [vmem:[#allocation5 + $0xb30] sm:$0xff] }
 0x198   :  { %3707 = vmatprep.subr.bf16.mxu0 %v7841_v3  ;;  %v8257_v3 = vcombine.high %v526_v61, %v534_v62  ;;  %v510_v7 = vld [vmem:[#allocation5 + $0xd28] sm:$0xff]  ;;  %v455_v52 = vld [vmem:[#allocation5 + $0xb70] sm:$0xff] }
 0x199   :  { %3749 = vmatpush1.bf16.msra.mxu1 %v8112_v2  ;;  %v8001_v2 = vcombine.high %v270_v33, %v278_v60  ;;  %v518_v40 = vld [vmem:[#allocation5 + $0xd68] sm:$0xff]  ;;  %v8194_v33 = vcombine.low %v463_v42, %v471_v43  ;;  %v7923_v60 = vcombine.high %v191_v59, %v199_v50 }
 0x19a   :  { %3750 = vmatprep.subr.bf16.mxu1 %v8097_v4  ;;  %v254_v4 = vld [vmem:[#allocation5 + $0x528] sm:$0xff] }
 0x19b   :  { %3708 = vmatpush1.bf16.msra.mxu0 %v7840_v26  ;;  %v8256_v26 = vcombine.low %v526_v61, %v534_v62  ;;  %v246_v17 = vld [vmem:[#allocation5 + $0x4e8] sm:$0xff]  ;;  %v7984_v22 = vcombine.low %v254_v4, %v262_v5  ;;  %v9906_v61 = vpop.f32.mrf.mxu1  ;;  %v8179_v62 = vcombine.high %v447_v51, %v455_v52 }
 0x19c   :  { %3709 = vmatprep.subr.bf16.mxu0 %v7825_v11  ;;  %v8241_v11 = vcombine.high %v510_v7, %v518_v40  ;;  %v494_v19 = vld [vmem:[#allocation5 + $0xca8] sm:$0xff] }
 0x19d   :  { %3751 = vmatpush1.bf16.msra.mxu1 %v8096_v9  ;;  %v7985_v9 = vcombine.high %v254_v4, %v262_v5  ;;  %v502_v21 = vld [vmem:[#allocation5 + $0xce8] sm:$0xff]  ;;  %v439_v4 = vld [vmem:[#allocation5 + $0xaf0] sm:$0xff] }
 0x19e   :  { %3752 = vmatprep.subr.bf16.mxu1 %v8081_v16  ;;  %v238_v16 = vld [vmem:[#allocation5 + $0x4a8] sm:$0xff] }
 0x19f   :  { %3710 = vmatpush1.bf16.msra.mxu0 %v7824_v23  ;;  %v8240_v23 = vcombine.low %v510_v7, %v518_v40  ;;  %v230_v31 = vld [vmem:[#allocation5 + $0x468] sm:$0xff]  ;;  %v7968_v36 = vcombine.low %v238_v16, %v246_v17  ;;  %v7922_v40 = vcombine.low %v191_v59, %v199_v50  ;;  %v127_v50 = vld [vmem:[#allocation5 + $0x130] sm:$0xff] }
 0x1a0   :  { %3711 = vmatprep.subr.bf16.mxu0 %v8065_v27  ;;  %v8225_v27 = vcombine.high %v494_v19, %v502_v21  ;;  %v478_v34 = vld [vmem:[#allocation5 + $0xc28] sm:$0xff] }
 0x1a1   :  { %3753 = vmatpush1.bf16.msra.mxu1 %v8080_v25  ;;  %v7969_v25 = vcombine.high %v238_v16, %v246_v17  ;;  %v486_v35 = vld [vmem:[#allocation5 + $0xc68] sm:$0xff] }
 0x1a2   :  { %3754 = vmatprep.subr.bf16.mxu1 %v8321_v29  ;;  %v222_v29 = vld [vmem:[#allocation5 + $0x428] sm:$0xff] }
 0x1a3   :  { %3712 = vmatpush2.bf16.msra.mxu0 %v8064_v37  ;;  %v8224_v37 = vcombine.low %v494_v19, %v502_v21  ;;  %v7952_v44 = vcombine.low %v222_v29, %v230_v31  ;;  %v159_v19 = vld [vmem:[#allocation5 + $0x230] sm:$0xff] }
 0x1a4   :  { %3713 = vmatprep.subr.bf16.mxu0 %v8049_v39  ;;  %v8209_v39 = vcombine.high %v478_v34, %v486_v35  ;;  %v167_v21 = vld [vmem:[#allocation5 + $0x270] sm:$0xff] }
 0x1a5   :  { %3755 = vmatpush2.bf16.msra.mxu1 %v8320_v38  ;;  %v7953_v38 = vcombine.high %v222_v29, %v230_v31 }
 0x1a6   :  { %3756 = vmatprep.subr.bf16.mxu1 %v8305_v12  ;;  %v207_v12 = vld [vmem:[#allocation5 + $0x3b0] sm:$0xff] }
 0x1a7   :  { %3714 = vmatpush2.bf16.msra.mxu0 %v8048_v45  ;;  %v623_v45 = vsub.s32 4, %v9852_v18 }
 0x1a8   :  { %3715 = vmatprep.subr.bf16.mxu0 %v8033_v47  ;;  %v7939_v47 = vcombine.high %v207_v12, %v215_v15 }
 0x1a9   :  { %3757 = vmatpush2.bf16.msra.mxu1 %v8304_v46  ;;  %v8208_v46 = vcombine.low %v478_v34, %v486_v35  ;;  %v7891_v35 = vcombine.high %v159_v19, %v167_v21 }
 0x1aa   :  { %3758 = vmatprep.subr.bf16.mxu1 %v8289_v56  ;;  %v8195_v56 = vcombine.high %v463_v42, %v471_v43 }
 0x1ab   :  { %3716 = vmatpush2.bf16.msra.mxu0 %v8032_v54  ;;  %v9899_v54 = vld [vmem:[#allocation7] sm:$0xff] }
 0x1ac   :  { %3717 = vmatprep.subr.bf16.mxu0 %v8017_v32  ;;  %v7938_v32 = vcombine.low %v207_v12, %v215_v15  ;;  %v399_v12 = vld [vmem:[#allocation5 + $0x9b0] sm:$0xff] }
 0x1ad   :  { %3759 = vmatpush2.bf16.msra.mxu1 %v8288_v55  ;;  %v624_v55 = vrot.slane %v9899_v54, %v623_v45  ;;  %v407_v15 = vld [vmem:[#allocation5 + $0x9f0] sm:$0xff] }
 0x1ae   :  { %3760 = vmatprep.subr.bf16.mxu1 %v8273_v58  ;;  %v9904_v58 = vpop.f32.mrf.mxu0  ;;  %v8131_v59 = vcombine.high %v399_v12, %v407_v15 }
 0x1af   :  { %3718 = vmatpush2.bf16.msra.mxu0 %v8016_v63  ;;  %v175_v63 = vld [vmem:[#allocation5 + $0x2b0] sm:$0xff] }
 0x1b0   :  { %3719 = vmatprep.subr.bf16.mxu0 %v8001_v2 }
 0x1b1   :  { %3761 = vmatpush2.bf16.msra.mxu1 %v8272_v1  ;;  %v183_v1 = vld [vmem:[#allocation5 + $0x2f0] sm:$0xff] }
 0x1b2   :  { %3762 = vmatprep.subr.bf16.mxu1 %v8257_v3  ;;  %v431_v3 = vld [vmem:[#allocation5 + $0xab0] sm:$0xff]  ;;  %v7906_v29 = vcombine.low %v175_v63, %v183_v1 }
 0x1b3   :  { %3720 = vmatpush2.bf16.msra.mxu0 %v8000_v8  ;;  %v8163_v17 = vcombine.high %v431_v3, %v439_v4  ;;  %v8162_v34 = vcombine.low %v431_v3, %v439_v4  ;;  %v375_v3 = vld [vmem:[#allocation5 + $0x8f0] sm:$0xff] }
 0x1b4   :  { %3721 = vmatprep.subr.bf16.mxu0 %v7985_v9  ;;  %v7907_v9 = vcombine.high %v175_v63, %v183_v1  ;;  %v111_v63 = vld [vmem:[#allocation5 + $0xb0] sm:$0xff] }
 0x1b5   :  { %3763 = vmatpush2.bf16.msra.mxu1 %v8256_v26  ;;  %v8178_v26 = vcombine.low %v447_v51, %v455_v52  ;;  %v135_v51 = vld [vmem:[#allocation5 + $0x170] sm:$0xff] }
 0x1b6   :  { %3764 = vmatprep.subr.bf16.mxu1 %v8241_v11  ;;  %v383_v52 = vld [vmem:[#allocation5 + $0x930] sm:$0xff]  ;;  %v7858_v4 = vcombine.low %v127_v50, %v135_v51 }
 0x1b7   :  { %3722 = vmatpush2.bf16.msra.mxu0 %v7984_v22  ;;  %v119_v1 = vld [vmem:[#allocation5 + $0xf0] sm:$0xff] }
 0x1b8   :  { %3723 = vmatprep.subr.bf16.mxu0 %v7969_v25  ;;  %v423_v25 = vld [vmem:[#allocation5 + $0xa70] sm:$0xff] }
 0x1b9   :  { %3765 = vmatpush2.bf16.msra.mxu1 %v8240_v23  ;;  %v415_v23 = vld [vmem:[#allocation5 + $0xa30] sm:$0xff] }
 0x1ba   :  { %3766 = vmatprep.subr.bf16.mxu1 %v8225_v27 }
 0x1bb   :  { %3724 = vmatpush2.bf16.msra.mxu0 %v7968_v36 }
 0x1bc   :  { %3725 = vmatprep.subr.bf16.mxu0 %v7953_v38  ;;  %v143_v38 = vld [vmem:[#allocation5 + $0x1b0] sm:$0xff] }
 0x1bd   :  { %3767 = vmatpush2.bf16.msra.mxu1 %v8224_v37  ;;  %v8147_v37 = vcombine.high %v415_v23, %v423_v25 }
 0x1be   :  { %3768 = vmatprep.subr.bf16.mxu1 %v8209_v39  ;;  %v151_v39 = vld [vmem:[#allocation5 + $0x1f0] sm:$0xff] }
 0x1bf   :  { %3726 = vmatpush2.bf16.msra.mxu0 %v7952_v44  ;;  %v7890_v44 = vcombine.low %v159_v19, %v167_v21  ;;  %v7842_v19 = vcombine.low %v111_v63, %v119_v1 }
 0x1c0   :  { %3781 = vmatprep.subr.bf16.mxu0 %v7939_v47  ;;  %v7875_v47 = vcombine.high %v143_v38, %v151_v39 }
 0x1c1   :  { %3769 = vmatpush2.bf16.msra.mxu1 %v8208_v46  ;;  %v8146_v46 = vcombine.low %v415_v23, %v423_v25  ;;  %v335_v25 = vld [vmem:[#allocation5 + $0x7b0] sm:$0xff] }
 0x1c2   :  { %3824 = vmatprep.subr.bf16.mxu1 %v8195_v56  ;;  %v3471_v2 = vpop.f32.mrf.mxu0  ;;  %3728 = vmatmul.mubr.bf16.vlgmr.msra.gmra.mxu0 %v9880_v41 }
 0x1c3   :  { %v3472_v5 = vadd.f32 %v3471_v2, %v624_v55  ;;  %3782 = vmatpush1.bf16.msra.mxu0 %v7938_v32  ;;  %3813 = vmatprep.mubr.bf16.mxu0 %v9890_v24  ;;  %v7874_v32 = vcombine.low %v143_v38, %v151_v39  ;;  %v367_v2 = vld [vmem:[#allocation5 + $0x8b0] sm:$0xff] }
 0x1c4   :  { %v3514_v7 = vpop.f32.mrf.mxu1  ;;  %3771 = vmatmul.mubr.bf16.vlgmr.msra.gmra.mxu1 %v9883_v10  ;;  %v9910_v8 = vpop.f32.mrf.mxu0  ;;  %3783 = vmatprep.subr.bf16.mxu0 %v7923_v60  ;;  %v7859_v60 = vcombine.high %v127_v50, %v135_v51  ;;  %v8098_v21 = vcombine.low %v367_v2, %v375_v3  ;;  %v319_v38 = vld [vmem:[#allocation5 + $0x730] sm:$0xff] }
 0x1c5   :  { %3825 = vmatpush1.bf16.msra.mxu1 %v8194_v33  ;;  %v3515_v11 = vadd.f32 %v3514_v7, %v3472_v5  ;;  %3856 = vmatprep.mubr.bf16.mxu1 %v9893_v30  ;;  %v8130_v33 = vcombine.low %v399_v12, %v407_v15  ;;  %v7843_v7 = vcombine.high %v111_v63, %v119_v1  ;;  %v327_v39 = vld [vmem:[#allocation5 + $0x770] sm:$0xff] }
 0x1c6   :  { %v9912_v16 = vpop.f32.mrf.mxu1  ;;  %3826 = vmatprep.subr.bf16.mxu1 %v8179_v62  ;;  %v3475_v22 = vpop.f32.mrf.mxu0  ;;  %v575_v12 = vld [vmem:[#allocation5 + $0xf30] sm:$0xff] }
 0x1c7   :  { %v3476_v27 = vadd.f32 %v3475_v22, %v624_v55  ;;  %3784 = vmatpush1.bf16.msra.mxu0 %v7922_v40  ;;  %v3957_v42 = vmax.f32 %v3515_v11, 0.0  ;;  %v391_v55 = vld [vmem:[#allocation5 + $0x970] sm:$0xff]  ;;  %v8099_v40 = vcombine.high %v367_v2, %v375_v3 }
 0x1c8   :  { %v3518_v31 = vpop.f32.mrf.mxu1  ;;  %3785 = vmatprep.subr.bf16.mxu0 %v7907_v9  ;;  %v8115_v62 = vcombine.high %v383_v52, %v391_v55  ;;  %v8114_v5 = vcombine.low %v383_v52, %v391_v55  ;;  %v103_v9 = vld [vmem:[#allocation5 + $0x70] sm:$0xff]  ;;  %v8050_v52 = vcombine.low %v319_v38, %v327_v39 }
 0x1c9   :  { %3827 = vmatpush1.bf16.msra.mxu1 %v8178_v26  ;;  %v3519_v36 = vadd.f32 %v3518_v31, %v3476_v27  ;;  %v95_v26 = vld [vmem:[#allocation5 + $0x30] sm:$0xff] }
 0x1ca   :  { %3828 = vmatprep.subr.bf16.mxu1 %v8163_v17  ;;  %v351_v11 = vld [vmem:[#allocation5 + $0x830] sm:$0xff]  ;;  %v7827_v22 = vcombine.high %v95_v26, %v103_v9 }
 0x1cb   :  { %v3973_v43 = vmax.f32 %v3519_v36, 0.0  ;;  %3786 = vmatpush1.bf16.msra.mxu0 %v7906_v29  ;;  %v359_v17 = vld [vmem:[#allocation5 + $0x870] sm:$0xff] }
 0x1cc   :  { %3787 = vmatprep.subr.bf16.mxu0 %v7891_v35  ;;  %v8083_v23 = vcombine.high %v351_v11, %v359_v17  ;;  %v343_v27 = vld [vmem:[#allocation5 + $0x7f0] sm:$0xff]  ;;  %v8082_v35 = vcombine.low %v351_v11, %v359_v17 }
 0x1cd   :  { %3829 = vmatpush1.bf16.msra.mxu1 %v8162_v34  ;;  %v9916_v56 = vpack.c.bf16 %v3973_v43, %v3957_v42  ;;  %v591_v29 = vld [vmem:[#allocation5 + $0xfb0] sm:$0xff]  ;;  %v7826_v34 = vcombine.low %v95_v26, %v103_v9  ;;  %v8067_v36 = vcombine.high %v335_v25, %v343_v27  ;;  %v8066_v42 = vcombine.low %v335_v25, %v343_v27 }
 0x1ce   :  { %3830 = vmatprep.subr.bf16.mxu1 %v8147_v37  ;;  %v599_v31 = vld [vmem:[#allocation5 + $0xff0] sm:$0xff] }
 0x1cf   :  { %3788 = vmatpush1.bf16.msra.mxu0 %v7890_v44  ;;  %v8323_v37 = vcombine.high %v591_v29, %v599_v31  ;;  %v583_v15 = vld [vmem:[#allocation5 + $0xf70] sm:$0xff]  ;;  %v8322_v43 = vcombine.low %v591_v29, %v599_v31  ;;  %v8051_v44 = vcombine.high %v319_v38, %v327_v39 }
 0x1d0   :  { %3789 = vmatprep.subr.bf16.mxu0 %v7875_v47  ;;  %v303_v47 = vld [vmem:[#allocation5 + $0x6b0] sm:$0xff]  ;;  %v8306_v55 = vcombine.low %v575_v12, %v583_v15 }
 0x1d1   :  { %3831 = vmatpush1.bf16.msra.mxu1 %v8146_v46  ;;  %v8307_v46 = vcombine.high %v575_v12, %v583_v15  ;;  %v559_v50 = vld [vmem:[#allocation5 + $0xeb0] sm:$0xff] }
 0x1d2   :  { %3832 = vmatprep.subr.bf16.mxu1 %v8131_v59  ;;  %v311_v59 = vld [vmem:[#allocation5 + $0x6f0] sm:$0xff] }
 0x1d3   :  { %3790 = vmatpush1.bf16.msra.mxu0 %v7874_v32  ;;  %v567_v51 = vld [vmem:[#allocation5 + $0xef0] sm:$0xff]  ;;  %v8035_v32 = vcombine.high %v303_v47, %v311_v59  ;;  %v8034_v2 = vcombine.low %v303_v47, %v311_v59 }
 0x1d4   :  { %3791 = vmatprep.subr.bf16.mxu0 %v7859_v60  ;;  %v287_v60 = vld [vmem:[#allocation5 + $0x630] sm:$0xff]  ;;  %v8290_v3 = vcombine.low %v559_v50, %v567_v51 }
 0x1d5   :  { %3833 = vmatpush1.bf16.msra.mxu1 %v8130_v33  ;;  %v8291_v33 = vcombine.high %v559_v50, %v567_v51  ;;  %v543_v63 = vld [vmem:[#allocation5 + $0xe30] sm:$0xff] }
 0x1d6   :  { %3834 = vmatprep.subr.bf16.mxu1 %v8115_v62  ;;  %v295_v62 = vld [vmem:[#allocation5 + $0x670] sm:$0xff] }
 0x1d7   :  { %3792 = vmatpush1.bf16.msra.mxu0 %v7858_v4  ;;  %v551_v1 = vld [vmem:[#allocation5 + $0xe70] sm:$0xff]  ;;  %v8019_v4 = vcombine.high %v287_v60, %v295_v62  ;;  %v8018_v11 = vcombine.low %v287_v60, %v295_v62  ;;  %v464_v60 = vld [vmem:[#allocation5 + $0xbb8] sm:$0xff] }
 0x1d8   :  { %3793 = vmatprep.subr.bf16.mxu0 %v7843_v7  ;;  %v271_v7 = vld [vmem:[#allocation5 + $0x5b0] sm:$0xff]  ;;  %v8274_v17 = vcombine.low %v543_v63, %v551_v1  ;;  %v472_v62 = vld [vmem:[#allocation5 + $0xbf8] sm:$0xff] }
 0x1d9   :  { %3835 = vmatpush1.bf16.msra.mxu1 %v8114_v5  ;;  %v8275_v5 = vcombine.high %v543_v63, %v551_v1  ;;  %v527_v26 = vld [vmem:[#allocation5 + $0xdb0] sm:$0xff]  ;;  %v631_v1 = vsub.s32 6, %v9852_v18 }
 0x1da   :  { %3836 = vmatprep.subr.bf16.mxu1 %v8099_v40  ;;  %v279_v40 = vld [vmem:[#allocation5 + $0x5f0] sm:$0xff] }
 0x1db   :  { %3794 = vmatpush1.bf16.msra.mxu0 %v7842_v19  ;;  %v535_v9 = vld [vmem:[#allocation5 + $0xdf0] sm:$0xff]  ;;  %v8003_v19 = vcombine.high %v271_v7, %v279_v40  ;;  %v8002_v29 = vcombine.low %v271_v7, %v279_v40  ;;  %v200_v7 = vld [vmem:[#allocation5 + $0x378] sm:$0xff] }
 0x1dc   :  { %3795 = vmatprep.subr.bf16.mxu0 %v7827_v22  ;;  %v255_v22 = vld [vmem:[#allocation5 + $0x530] sm:$0xff]  ;;  %v8258_v31 = vcombine.low %v527_v26, %v535_v9  ;;  %v448_v40 = vld [vmem:[#allocation5 + $0xb38] sm:$0xff] }
 0x1dd   :  { %3837 = vmatpush1.bf16.msra.mxu1 %v8098_v21  ;;  %v8259_v21 = vcombine.high %v527_v26, %v535_v9  ;;  %v511_v25 = vld [vmem:[#allocation5 + $0xd30] sm:$0xff]  ;;  %v456_v26 = vld [vmem:[#allocation5 + $0xb78] sm:$0xff]  ;;  %v632_v9 = vrot.slane %v9899_v54, %v631_v1 }
 0x1de   :  { %3838 = vmatprep.subr.bf16.mxu1 %v8083_v23  ;;  %v263_v23 = vld [vmem:[#allocation5 + $0x570] sm:$0xff] }
 0x1df   :  { %3796 = vmatpush1.bf16.msra.mxu0 %v7826_v34  ;;  %v519_v27 = vld [vmem:[#allocation5 + $0xd70] sm:$0xff]  ;;  %v7987_v34 = vcombine.high %v255_v22, %v263_v23  ;;  %v7986_v12 = vcombine.low %v255_v22, %v263_v23  ;;  %v9924_v22 = vpop.f32.mrf.mxu1  ;;  %v8181_v23 = vcombine.high %v448_v40, %v456_v26 }
 0x1e0   :  { %3797 = vmatprep.subr.bf16.mxu0 %v8067_v36  ;;  %v239_v36 = vld [vmem:[#allocation5 + $0x4b0] sm:$0xff]  ;;  %v8242_v15 = vcombine.low %v511_v25, %v519_v27 }
 0x1e1   :  { %3839 = vmatpush1.bf16.msra.mxu1 %v8082_v35  ;;  %v8243_v35 = vcombine.high %v511_v25, %v519_v27  ;;  %v495_v38 = vld [vmem:[#allocation5 + $0xcb0] sm:$0xff]  ;;  %v176_v25 = vld [vmem:[#allocation5 + $0x2b8] sm:$0xff] }
 0x1e2   :  { %3840 = vmatprep.subr.bf16.mxu1 %v8323_v37  ;;  %v247_v37 = vld [vmem:[#allocation5 + $0x4f0] sm:$0xff]  ;;  %v184_v27 = vld [vmem:[#allocation5 + $0x2f8] sm:$0xff] }
 0x1e3   :  { %3798 = vmatpush2.bf16.msra.mxu0 %v8066_v42  ;;  %v503_v39 = vld [vmem:[#allocation5 + $0xcf0] sm:$0xff]  ;;  %v7971_v42 = vcombine.high %v239_v36, %v247_v37  ;;  %v7970_v50 = vcombine.low %v239_v36, %v247_v37 }
 0x1e4   :  { %3799 = vmatprep.subr.bf16.mxu0 %v8051_v44  ;;  %v223_v44 = vld [vmem:[#allocation5 + $0x430] sm:$0xff]  ;;  %v8226_v51 = vcombine.low %v495_v38, %v503_v39 }
 0x1e5   :  { %3841 = vmatpush2.bf16.msra.mxu1 %v8322_v43  ;;  %v8227_v43 = vcombine.high %v495_v38, %v503_v39  ;;  %v479_v47 = vld [vmem:[#allocation5 + $0xc30] sm:$0xff]  ;;  %v8180_v39 = vcombine.low %v448_v40, %v456_v26  ;;  %v128_v26 = vld [vmem:[#allocation5 + $0x138] sm:$0xff] }
 0x1e6   :  { %3842 = vmatprep.subr.bf16.mxu1 %v8307_v46  ;;  %v231_v46 = vld [vmem:[#allocation5 + $0x470] sm:$0xff] }
 0x1e7   :  { %3800 = vmatpush2.bf16.msra.mxu0 %v8050_v52  ;;  %v487_v59 = vld [vmem:[#allocation5 + $0xc70] sm:$0xff]  ;;  %v7955_v52 = vcombine.high %v223_v44, %v231_v46  ;;  %v7954_v63 = vcombine.low %v223_v44, %v231_v46  ;;  %v168_v44 = vld [vmem:[#allocation5 + $0x278] sm:$0xff] }
 0x1e8   :  { %3801 = vmatprep.subr.bf16.mxu0 %v8035_v32  ;;  %v208_v32 = vld [vmem:[#allocation5 + $0x3b8] sm:$0xff] }
 0x1e9   :  { %3843 = vmatpush2.bf16.msra.mxu1 %v8306_v55  ;;  %v8211_v55 = vcombine.high %v479_v47, %v487_v59 }
 0x1ea   :  { %3844 = vmatprep.subr.bf16.mxu1 %v8291_v33  ;;  %v216_v33 = vld [vmem:[#allocation5 + $0x3f8] sm:$0xff] }
 0x1eb   :  { %3802 = vmatpush2.bf16.msra.mxu0 %v8034_v2  ;;  %v8210_v2 = vcombine.low %v479_v47, %v487_v59  ;;  %v416_v47 = vld [vmem:[#allocation5 + $0xa38] sm:$0xff] }
 0x1ec   :  { %3803 = vmatprep.subr.bf16.mxu0 %v8019_v4  ;;  %v8197_v4 = vcombine.high %v464_v60, %v472_v62 }
 0x1ed   :  { %3845 = vmatpush2.bf16.msra.mxu1 %v8290_v3  ;;  %v7941_v3 = vcombine.high %v208_v32, %v216_v33 }
 0x1ee   :  { %3846 = vmatprep.subr.bf16.mxu1 %v8275_v5  ;;  %v192_v5 = vld [vmem:[#allocation5 + $0x338] sm:$0xff] }
 0x1ef   :  { %3804 = vmatpush2.bf16.msra.mxu0 %v8018_v11  ;;  %v7940_v11 = vcombine.low %v208_v32, %v216_v33  ;;  %v7924_v37 = vcombine.low %v192_v5, %v200_v7 }
 0x1f0   :  { %3805 = vmatprep.subr.bf16.mxu0 %v8003_v19  ;;  %v8196_v19 = vcombine.low %v464_v60, %v472_v62  ;;  %v144_v60 = vld [vmem:[#allocation5 + $0x1b8] sm:$0xff] }
 0x1f1   :  { %3847 = vmatpush2.bf16.msra.mxu1 %v8274_v17  ;;  %v9922_v17 = vpop.f32.mrf.mxu0  ;;  %v152_v62 = vld [vmem:[#allocation5 + $0x1f8] sm:$0xff] }
 0x1f2   :  { %3848 = vmatprep.subr.bf16.mxu1 %v8259_v21  ;;  %v7925_v21 = vcombine.high %v192_v5, %v200_v7  ;;  %v7877_v5 = vcombine.high %v144_v60, %v152_v62 }
 0x1f3   :  { %3806 = vmatpush2.bf16.msra.mxu0 %v8002_v29 }
 0x1f4   :  { %3807 = vmatprep.subr.bf16.mxu0 %v7987_v34  ;;  %v440_v34 = vld [vmem:[#allocation5 + $0xaf8] sm:$0xff] }
 0x1f5   :  { %3849 = vmatpush2.bf16.msra.mxu1 %v8258_v31  ;;  %v432_v31 = vld [vmem:[#allocation5 + $0xab8] sm:$0xff] }
 0x1f6   :  { %3850 = vmatprep.subr.bf16.mxu1 %v8243_v35 }
 0x1f7   :  { %3808 = vmatpush2.bf16.msra.mxu0 %v7986_v12  ;;  %v7909_v12 = vcombine.high %v176_v25, %v184_v27 }
 0x1f8   :  { %3809 = vmatprep.subr.bf16.mxu0 %v7971_v42 }
 0x1f9   :  { %3851 = vmatpush2.bf16.msra.mxu1 %v8242_v15 }
 0x1fa   :  { %3852 = vmatprep.subr.bf16.mxu1 %v8227_v43  ;;  %v8165_v43 = vcombine.high %v432_v31, %v440_v34 }
 0x1fb   :  { %3810 = vmatpush2.bf16.msra.mxu0 %v7970_v50  ;;  %v7908_v50 = vcombine.low %v176_v25, %v184_v27 }
 0x1fc   :  { %3811 = vmatprep.subr.bf16.mxu0 %v7955_v52  ;;  %v8164_v52 = vcombine.low %v432_v31, %v440_v34  ;;  %v120_v31 = vld [vmem:[#allocation5 + $0xf8] sm:$0xff] }
 0x1fd   :  { %3853 = vmatpush2.bf16.msra.mxu1 %v8226_v51  ;;  %v368_v34 = vld [vmem:[#allocation5 + $0x8b8] sm:$0xff] }
 0x1fe   :  { %3854 = vmatprep.subr.bf16.mxu1 %v8211_v55 }
 0x1ff   :  { %3812 = vmatpush2.bf16.msra.mxu0 %v7954_v63  ;;  %v400_v63 = vld [vmem:[#allocation5 + $0x9b8] sm:$0xff] }
 0x200   :  { %3867 = vmatprep.subr.bf16.mxu0 %v7941_v3 }
 0x201   :  { %3855 = vmatpush2.bf16.msra.mxu1 %v8210_v2 }
 0x202   :  { %3910 = vmatprep.subr.bf16.mxu1 %v8197_v4  ;;  %v3557_v29 = vpop.f32.mrf.mxu0  ;;  %3814 = vmatmul.mubr.bf16.vlgmr.msra.gmra.mxu0 %v9880_v41  ;;  %v160_v41 = vld [vmem:[#allocation5 + $0x238] sm:$0xff] }
 0x203   :  { %v3558_v35 = vadd.f32 %v3557_v29, %v632_v9  ;;  %3868 = vmatpush1.bf16.msra.mxu0 %v7940_v11  ;;  %3899 = vmatprep.mubr.bf16.mxu0 %v9890_v24  ;;  %v7893_v55 = vcombine.high %v160_v41, %v168_v44  ;;  %v408_v24 = vld [vmem:[#allocation5 + $0x9f8] sm:$0xff]  ;;  %v7892_v4 = vcombine.low %v160_v41, %v168_v44 }
 0x204   :  { %v3600_v36 = vpop.f32.mrf.mxu1  ;;  %3857 = vmatmul.mubr.bf16.vlgmr.msra.gmra.mxu1 %v9883_v10  ;;  %v9928_v38 = vpop.f32.mrf.mxu0  ;;  %3869 = vmatprep.subr.bf16.mxu0 %v7925_v21  ;;  %v424_v10 = vld [vmem:[#allocation5 + $0xa78] sm:$0xff]  ;;  %v8133_v40 = vcombine.high %v400_v63, %v408_v24  ;;  %v7876_v21 = vcombine.low %v144_v60, %v152_v62 }
 0x205   :  { %3911 = vmatpush1.bf16.msra.mxu1 %v8196_v19  ;;  %v3601_v15 = vadd.f32 %v3600_v36, %v3558_v35  ;;  %3942 = vmatprep.mubr.bf16.mxu1 %v9893_v30  ;;  %v8149_v33 = vcombine.high %v416_v47, %v424_v10  ;;  %v8148_v30 = vcombine.low %v416_v47, %v424_v10  ;;  %v384_v11 = vld [vmem:[#allocation5 + $0x938] sm:$0xff] }
 0x206   :  { %v9930_v42 = vpop.f32.mrf.mxu1  ;;  %3912 = vmatprep.subr.bf16.mxu1 %v8181_v23  ;;  %v3561_v46 = vpop.f32.mrf.mxu0  ;;  %v392_v19 = vld [vmem:[#allocation5 + $0x978] sm:$0xff]  ;;  %v8132_v23 = vcombine.low %v400_v63, %v408_v24 }
 0x207   :  { %v3562_v59 = vadd.f32 %v3561_v46, %v632_v9  ;;  %3870 = vmatpush1.bf16.msra.mxu0 %v7924_v37  ;;  %v3959_v2 = vmax.f32 %v3601_v15, 0.0  ;;  %v136_v9 = vld [vmem:[#allocation5 + $0x178] sm:$0xff]  ;;  %v8117_v27 = vcombine.high %v384_v11, %v392_v19  ;;  %v8116_v37 = vcombine.low %v384_v11, %v392_v19 }
 0x208   :  { %v3604_v51 = vpop.f32.mrf.mxu1  ;;  %3871 = vmatprep.subr.bf16.mxu0 %v7909_v12  ;;  %v7861_v25 = vcombine.high %v128_v26, %v136_v9  ;;  %v112_v29 = vld [vmem:[#allocation5 + $0xb8] sm:$0xff]  ;;  %v7860_v36 = vcombine.low %v128_v26, %v136_v9 }
 0x209   :  { %3913 = vmatpush1.bf16.msra.mxu1 %v8180_v39  ;;  %v3605_v32 = vadd.f32 %v3604_v51, %v3562_v59  ;;  %v376_v35 = vld [vmem:[#allocation5 + $0x8f8] sm:$0xff]  ;;  %v7845_v39 = vcombine.high %v112_v29, %v120_v31  ;;  %v7844_v46 = vcombine.low %v112_v29, %v120_v31 }
 0x20a   :  { %3914 = vmatprep.subr.bf16.mxu1 %v8165_v43  ;;  %v8101_v12 = vcombine.high %v368_v34, %v376_v35  ;;  %v96_v15 = vld [vmem:[#allocation5 + $0x38] sm:$0xff]  ;;  %v8100_v47 = vcombine.low %v368_v34, %v376_v35 }
 0x20b   :  { %v3975_v3 = vmax.f32 %v3605_v32, 0.0  ;;  %3872 = vmatpush1.bf16.msra.mxu0 %v7908_v50  ;;  %v104_v43 = vld [vmem:[#allocation5 + $0x78] sm:$0xff] }
 0x20c   :  { %3873 = vmatprep.subr.bf16.mxu0 %v7893_v55  ;;  %v352_v41 = vld [vmem:[#allocation5 + $0x838] sm:$0xff]  ;;  %v7829_v10 = vcombine.high %v96_v15, %v104_v43  ;;  %v7828_v32 = vcombine.low %v96_v15, %v104_v43 }
 0x20d   :  { %3915 = vmatpush1.bf16.msra.mxu1 %v8164_v52  ;;  %v9934_v7 = vpack.c.bf16 %v3975_v3, %v3959_v2  ;;  %v360_v44 = vld [vmem:[#allocation5 + $0x878] sm:$0xff] }
 0x20e   :  { %3916 = vmatprep.subr.bf16.mxu1 %v8149_v33  ;;  %v8085_v59 = vcombine.high %v352_v41, %v360_v44  ;;  %v336_v50 = vld [vmem:[#allocation5 + $0x7b8] sm:$0xff]  ;;  %v8084_v33 = vcombine.low %v352_v41, %v360_v44 }
 0x20f   :  { %3874 = vmatpush1.bf16.msra.mxu0 %v7892_v4  ;;  %v344_v51 = vld [vmem:[#allocation5 + $0x7f8] sm:$0xff] }
 0x210   :  { %3875 = vmatprep.subr.bf16.mxu0 %v7877_v5  ;;  %v592_v52 = vld [vmem:[#allocation5 + $0xfb8] sm:$0xff]  ;;  %v8069_v60 = vcombine.high %v336_v50, %v344_v51  ;;  %v8068_v4 = vcombine.low %v336_v50, %v344_v51 }
 0x211   :  { %3917 = vmatpush1.bf16.msra.mxu1 %v8148_v30  ;;  %v600_v55 = vld [vmem:[#allocation5 + $0xff8] sm:$0xff] }
 0x212   :  { %3918 = vmatprep.subr.bf16.mxu1 %v8133_v40  ;;  %v8325_v62 = vcombine.high %v592_v52, %v600_v55  ;;  %v320_v63 = vld [vmem:[#allocation5 + $0x738] sm:$0xff]  ;;  %v8324_v30 = vcombine.low %v592_v52, %v600_v55 }
 0x213   :  { %3876 = vmatpush1.bf16.msra.mxu0 %v7876_v21  ;;  %v328_v24 = vld [vmem:[#allocation5 + $0x778] sm:$0xff] }
 0x214   :  { %3877 = vmatprep.subr.bf16.mxu0 %v7861_v25  ;;  %v576_v2 = vld [vmem:[#allocation5 + $0xf38] sm:$0xff]  ;;  %v8053_v5 = vcombine.high %v320_v63, %v328_v24  ;;  %v8052_v21 = vcombine.low %v320_v63, %v328_v24  ;;  %v9940_v63 = vsub.s32 3, %v9852_v18 }
 0x215   :  { %3919 = vmatpush1.bf16.msra.mxu1 %v8132_v23  ;;  %v584_v3 = vld [vmem:[#allocation5 + $0xf78] sm:$0xff] }
 0x216   :  { %3920 = vmatprep.subr.bf16.mxu1 %v8117_v27  ;;  %v8309_v40 = vcombine.high %v576_v2, %v584_v3  ;;  %v304_v26 = vld [vmem:[#allocation5 + $0x6b8] sm:$0xff]  ;;  %v8308_v23 = vcombine.low %v576_v2, %v584_v3 }
 0x217   :  { %3878 = vmatpush1.bf16.msra.mxu0 %v7860_v36  ;;  %v312_v9 = vld [vmem:[#allocation5 + $0x6f8] sm:$0xff] }
 0x218   :  { %3879 = vmatprep.subr.bf16.mxu0 %v7845_v39  ;;  %v560_v11 = vld [vmem:[#allocation5 + $0xeb8] sm:$0xff]  ;;  %v8037_v25 = vcombine.high %v304_v26, %v312_v9  ;;  %v8036_v36 = vcombine.low %v304_v26, %v312_v9 }
 0x219   :  { %3921 = vmatpush1.bf16.msra.mxu1 %v8116_v37  ;;  %v568_v19 = vld [vmem:[#allocation5 + $0xef8] sm:$0xff] }
 0x21a   :  { %3922 = vmatprep.subr.bf16.mxu1 %v8101_v12  ;;  %v8293_v27 = vcombine.high %v560_v11, %v568_v19  ;;  %v288_v29 = vld [vmem:[#allocation5 + $0x638] sm:$0xff]  ;;  %v8292_v37 = vcombine.low %v560_v11, %v568_v19  ;;  %v620_v11 = vrot.slane %v9899_v54, %v9940_v63 }
 0x21b   :  { %3880 = vmatpush1.bf16.msra.mxu0 %v7844_v46  ;;  %v296_v31 = vld [vmem:[#allocation5 + $0x678] sm:$0xff] }
 0x21c   :  { %3881 = vmatprep.subr.bf16.mxu0 %v7829_v10  ;;  %v544_v34 = vld [vmem:[#allocation5 + $0xe38] sm:$0xff]  ;;  %v8021_v39 = vcombine.high %v288_v29, %v296_v31  ;;  %v8020_v46 = vcombine.low %v288_v29, %v296_v31  ;;  %v3392_v31 = vadd.f32 %v9904_v58, %v620_v11 }
 0x21d   :  { %3923 = vmatpush1.bf16.msra.mxu1 %v8100_v47  ;;  %v552_v35 = vld [vmem:[#allocation5 + $0xe78] sm:$0xff] }
 0x21e   :  { %3924 = vmatprep.subr.bf16.mxu1 %v8085_v59  ;;  %v8277_v12 = vcombine.high %v544_v34, %v552_v35  ;;  %v272_v15 = vld [vmem:[#allocation5 + $0x5b8] sm:$0xff]  ;;  %v8276_v47 = vcombine.low %v544_v34, %v552_v35 }
 0x21f   :  { %3882 = vmatpush1.bf16.msra.mxu0 %v7828_v32  ;;  %v280_v43 = vld [vmem:[#allocation5 + $0x5f8] sm:$0xff] }
 0x220   :  { %3883 = vmatprep.subr.bf16.mxu0 %v8069_v60  ;;  %v528_v41 = vld [vmem:[#allocation5 + $0xdb8] sm:$0xff]  ;;  %v8005_v10 = vcombine.high %v272_v15, %v280_v43  ;;  %v8004_v32 = vcombine.low %v272_v15, %v280_v43 }
 0x221   :  { %3925 = vmatpush1.bf16.msra.mxu1 %v8084_v33  ;;  %v536_v44 = vld [vmem:[#allocation5 + $0xdf8] sm:$0xff]  ;;  %v9937_v33 = vsub.s32 1, %v9852_v18 }
 0x222   :  { %3926 = vmatprep.subr.bf16.mxu1 %v8325_v62  ;;  %v8261_v59 = vcombine.high %v528_v41, %v536_v44  ;;  %v256_v50 = vld [vmem:[#allocation5 + $0x538] sm:$0xff]  ;;  %v8260_v60 = vcombine.low %v528_v41, %v536_v44  ;;  %v8858_v41 = vld [vmem:[#allocation8 + $0xe4] ss:$16 sps:$4 sm:$0xff]  }
 0x223   :  { %3884 = vmatpush2.bf16.msra.mxu0 %v8068_v4  ;;  %v264_v51 = vld [vmem:[#allocation5 + $0x578] sm:$0xff] }
 0x224   :  { %3885 = vmatprep.subr.bf16.mxu0 %v8053_v5  ;;  %v512_v52 = vld [vmem:[#allocation5 + $0xd38] sm:$0xff]  ;;  %v7989_v62 = vcombine.high %v256_v50, %v264_v51  ;;  %v7988_v5 = vcombine.low %v256_v50, %v264_v51  ;;  %v9960_v51 = vpop.f32.mrf.mxu1 }
 0x225   :  { %3927 = vmatpush2.bf16.msra.mxu1 %v8324_v30  ;;  %v520_v55 = vld [vmem:[#allocation5 + $0xd78] sm:$0xff] }
 0x226   :  { %3928 = vmatprep.subr.bf16.mxu1 %v8309_v40  ;;  %v8245_v24 = vcombine.high %v512_v52, %v520_v55  ;;  %v240_v2 = vld [vmem:[#allocation5 + $0x4b8] sm:$0xff]  ;;  %v612_v40 = vrot.slane %v9899_v54, %v9937_v33  ;;  %v8244_v26 = vcombine.low %v512_v52, %v520_v55  ;;  %v3388_v54 = vadd.f32 %v9886_v13, %v620_v11  ;;  %v8861_v13 = vld [vmem:[#allocation8 + $0x2e4] ss:$16 sps:$4 sm:$0xff]  }
 0x227   :  { %3886 = vmatpush2.bf16.msra.mxu0 %v8052_v21  ;;  %v248_v3 = vld [vmem:[#allocation5 + $0x4f8] sm:$0xff]  ;;  %v8873_v11 = vld [vmem:[#allocation8 + $0x2a4] ss:$16 sps:$4 sm:$0xff]  }
 0x228   :  { %3887 = vmatprep.subr.bf16.mxu0 %v8037_v25  ;;  %v496_v4 = vld [vmem:[#allocation5 + $0xcb8] sm:$0xff]  ;;  %v7973_v9 = vcombine.high %v240_v2, %v248_v3  ;;  %v3306_v25 = vadd.f32 %v9876_v0, %v612_v40  ;;  %v7972_v34 = vcombine.low %v240_v2, %v248_v3  ;;  %v3302_v35 = vadd.f32 %v9863_v49, %v612_v40  ;;  %v9953_v49 = vld [vmem:[#allocation7 + $0x8] sm:$0xff]  ;;  %v8870_v40 = vld [vmem:[#allocation8 + $0xa4] ss:$16 sps:$4 sm:$0xff]  }
 0x229   :  { %3929 = vmatpush2.bf16.msra.mxu1 %v8308_v23  ;;  %v504_v30 = vld [vmem:[#allocation5 + $0xcf8] sm:$0xff]  ;;  %v3435_v0 = vadd.f32 %v9906_v61, %v3392_v31  ;;  %v3431_v44 = vadd.f32 %v9888_v20, %v3388_v54  ;;  %v8856_v61 = vld [vmem:[#allocation8 + $0xe0] ss:$16 sps:$4 sm:$0xff]   ;;  %v8864_v20 = vld [vmem:[#allocation8 + $0xc4] ss:$16 sps:$4 sm:$0xff]  }
 0x22a   :  { %3930 = vmatprep.subr.bf16.mxu1 %v8293_v27  ;;  %v8229_v19 = vcombine.high %v496_v4, %v504_v30  ;;  %v224_v21 = vld [vmem:[#allocation5 + $0x438] sm:$0xff]  ;;  %v3345_v58 = vadd.f32 %v9865_v57, %v3302_v35  ;;  %v8859_v57 = vld [vmem:[#allocation8 + $0x2e0] ss:$16 sps:$4 sm:$0xff]  }
 0x22b   :  { %3888 = vmatpush2.bf16.msra.mxu0 %v8036_v36  ;;  %v232_v23 = vld [vmem:[#allocation5 + $0x478] sm:$0xff]  ;;  %v8228_v36 = vcombine.low %v496_v4, %v504_v30  ;;  %v3956_v50 = vmax.f32 %v3431_v44, 0.0  ;;  %v8862_v4 = vld [vmem:[#allocation8 + $0xc0] ss:$16 sps:$4 sm:$0xff]  }
 0x22c   :  { %3889 = vmatprep.subr.bf16.mxu0 %v8021_v39  ;;  %v480_v27 = vld [vmem:[#allocation5 + $0xc38] sm:$0xff]  ;;  %v7956_v15 = vcombine.low %v224_v21, %v232_v23  ;;  %v8877_v54 = vld [vmem:[#allocation8 + $0x280] ss:$16 sps:$4 sm:$0xff]  }
 0x22d   :  { %3931 = vmatpush2.bf16.msra.mxu1 %v8292_v37  ;;  %v488_v29 = vld [vmem:[#allocation5 + $0xc78] sm:$0xff]  ;;  %v7957_v37 = vcombine.high %v224_v21, %v232_v23  ;;  %v8868_v23 = vld [vmem:[#allocation8 + $0xa0] ss:$16 sps:$4 sm:$0xff]  }
 0x22e   :  { %3932 = vmatprep.subr.bf16.mxu1 %v8277_v12  ;;  %v8213_v39 = vcombine.high %v480_v27, %v488_v29  ;;  %v3349_v12 = vadd.f32 %v9878_v6, %v3306_v25  ;;  %v8212_v43 = vcombine.low %v480_v27, %v488_v29  ;;  %v640_v6 = vrot.slane %v9953_v49, %v9857_v28  ;;  %v9634_v3 = vld [vmem:[#allocation2 + $0x8] ss:$16 sps:$4 sm:$0xff]   ;;  %v8871_v27 = vld [vmem:[#allocation8 + $0x2a0] ss:$16 sps:$4 sm:$0xff]   ;;  %v8876_v29 = vld [vmem:[#allocation8 + $0x84] ss:$16 sps:$4 sm:$0xff]  }
 0x22f   :  { %3890 = vmatpush2.bf16.msra.mxu0 %v8020_v46  ;;  %v8886_v44 = vld [vmem:[#allocation8 + $0x40] ss:$16 sps:$4 sm:$0xff]  }
 0x230   :  { %3891 = vmatprep.subr.bf16.mxu0 %v8005_v10  ;;  %v3970_v46 = vmax.f32 %v3349_v12, 0.0  ;;  %v3954_v10 = vmax.f32 %v3345_v58, 0.0  ;;  %v8883_v58 = vld [vmem:[#allocation8 + $0x260] ss:$16 sps:$4 sm:$0xff]  }
 0x231   :  { %3933 = vmatpush2.bf16.msra.mxu1 %v8276_v47  ;;  %v3972_v47 = vmax.f32 %v3435_v0, 0.0  ;;  %v8885_v0 = vld [vmem:[#allocation8 + $0x264] ss:$16 sps:$4 sm:$0xff]  }
 0x232   :  { %3934 = vmatprep.subr.bf16.mxu1 %v8261_v59  ;;  %v9958_v59 = vpop.f32.mrf.mxu0  ;;  %v9962_v52 = vpack.c.bf16 %v3970_v46, %v3954_v10  ;;  %v8894_v46 = vld [vmem:[#allocation8 + $0x24] ss:$16 sps:$4 sm:$0xff]  }
 0x233   :  { %3892 = vmatpush2.bf16.msra.mxu0 %v8004_v32  ;;  %v9633_v32 = vld [vmem:[#allocation2] ss:$16 sps:$4 sm:$0xff]   ;;  %v8900_v10 = vld [vmem:[#allocation8 + $0x4] ss:$16 sps:$4 sm:$0xff]  }
 0x234   :  { %3893 = vmatprep.subr.bf16.mxu0 %v7989_v62  ;;  %v9964_v62 = vpack.c.bf16 %v3972_v47, %v3956_v50  ;;  %v8897_v47 = vld [vmem:[#allocation8 + $0x224] ss:$16 sps:$4 sm:$0xff]   ;;  %v8898_v50 = vld [vmem:[#allocation8] ss:$16 sps:$4 sm:$0xff]  }
 0x235   :  { %3935 = vmatpush2.bf16.msra.mxu1 %v8260_v60  ;;  %v8867_v60 = vld [vmem:[#allocation8 + $0x2c4] ss:$16 sps:$4 sm:$0xff]  }
 0x236   :  { %3936 = vmatprep.subr.bf16.mxu1 %v8245_v24 }
 0x237   :  { %3894 = vmatpush2.bf16.msra.mxu0 %v7988_v5  ;;  %v8865_v5 = vld [vmem:[#allocation8 + $0x2c0] ss:$16 sps:$4 sm:$0xff]  }
 0x238   :  { %3895 = vmatprep.subr.bf16.mxu0 %v7973_v9 }
 0x239   :  { %3937 = vmatpush2.bf16.msra.mxu1 %v8244_v26 }
 0x23a   :  { %3938 = vmatprep.subr.bf16.mxu1 %v8229_v19 }
 0x23b   :  { %3896 = vmatpush2.bf16.msra.mxu0 %v7972_v34  ;;  %v8879_v34 = vld [vmem:[#allocation8 + $0x284] ss:$16 sps:$4 sm:$0xff]  }
 0x23c   :  { %3897 = vmatprep.subr.bf16.mxu0 %v7957_v37  ;;  %v8874_v37 = vld [vmem:[#allocation8 + $0x80] ss:$16 sps:$4 sm:$0xff]  }
 0x23d   :  { %3939 = vmatpush2.bf16.msra.mxu1 %v8228_v36 }
 0x23e   :  { %3940 = vmatprep.subr.bf16.mxu1 %v8213_v39  ;;  %v8882_v39 = vld [vmem:[#allocation8 + $0x64] ss:$16 sps:$4 sm:$0xff]  }
 0x23f   :  { %3898 = vmatpush2.bf16.msra.mxu0 %v7956_v15  ;;  %v8880_v15 = vld [vmem:[#allocation8 + $0x60] ss:$16 sps:$4 sm:$0xff]  }
 0x240   :  { %7095 = vmatprep.subr.bf16.mxu0 %v8858_v41  ;;  %v8891_v41 = vld [vmem:[#allocation8 + $0x244] ss:$16 sps:$4 sm:$0xff]  }
 0x241   :  { %3941 = vmatpush2.bf16.msra.mxu1 %v8212_v43  ;;  %v8888_v43 = vld [vmem:[#allocation8 + $0x44] ss:$16 sps:$4 sm:$0xff]  }
 0x242   :  { %7138 = vmatprep.subr.bf16.mxu1 %v8861_v13  ;;  %v3643_v55 = vpop.f32.mrf.mxu0  ;;  %3900 = vmatmul.mubr.bf16.vlgmr.msra.gmra.mxu0 %v9633_v32  ;;  %v8889_v13 = vld [vmem:[#allocation8 + $0x240] ss:$16 sps:$4 sm:$0xff]   ;;  %v8909_v32 = vld [vmem:[#allocation8 + $0x3e4] ss:$16 sps:$4 sm:$0xff]  }
 0x243   :  { %v3644_v24 = vadd.f32 %v3643_v55, %v640_v6  ;;  %7096 = vmatpush1.bf16.msra.mxu0 %v8856_v61  ;;  %7127 = vmatprep.mubr.bf16.mxu0 %v9962_v52  ;;  %v8895_v61 = vld [vmem:[#allocation8 + $0x220] ss:$16 sps:$4 sm:$0xff]   ;;  %v8906_v55 = vld [vmem:[#allocation8 + $0x1e4] ss:$16 sps:$4 sm:$0xff]  }
 0x244   :  { %v3686_v2 = vpop.f32.mrf.mxu1  ;;  %3943 = vmatmul.mubr.bf16.vlgmr.msra.gmra.mxu1 %v9634_v3  ;;  %v9967_v30 = vpop.f32.mrf.mxu0  ;;  %7097 = vmatprep.subr.bf16.mxu0 %v8864_v20  ;;  %v8901_v20 = vld [vmem:[#allocation8 + $0x200] ss:$16 sps:$4 sm:$0xff]   ;;  %v8915_v3 = vld [vmem:[#allocation8 + $0x3c4] ss:$16 sps:$4 sm:$0xff]  }
 0x245   :  { %7139 = vmatpush1.bf16.msra.mxu1 %v8859_v57  ;;  %v3687_v26 = vadd.f32 %v3686_v2, %v3644_v24  ;;  %7170 = vmatprep.mubr.bf16.mxu1 %v9964_v62  ;;  %v8903_v57 = vld [vmem:[#allocation8 + $0x204] ss:$16 sps:$4 sm:$0xff]   ;;  %v8907_v24 = vld [vmem:[#allocation8 + $0x3e0] ss:$16 sps:$4 sm:$0xff]  }
 0x246   :  { %v9970_v9 = vpop.f32.mrf.mxu1  ;;  %v3647_v19 = vpop.f32.mrf.mxu0  ;;  %7140 = vmatprep.subr.bf16.mxu1 %v8867_v60  ;;  %v8904_v60 = vld [vmem:[#allocation8 + $0x1e0] ss:$16 sps:$4 sm:$0xff]   ;;  %v8912_v2 = vld [vmem:[#allocation8 + $0x1c4] ss:$16 sps:$4 sm:$0xff]  }
 0x247   :  { %v3648_v21 = vadd.f32 %v3647_v19, %v640_v6  ;;  %7098 = vmatpush1.bf16.msra.mxu0 %v8862_v4  ;;  %v3961_v35 = vmax.f32 %v3687_v26, 0.0  ;;  %v8892_v6 = vld [vmem:[#allocation8 + $0x20] ss:$16 sps:$4 sm:$0xff]   ;;  %v8921_v26 = vld [vmem:[#allocation8 + $0x3a4] ss:$16 sps:$4 sm:$0xff]  }
 0x248   :  { %v3690_v25 = vpop.f32.mrf.mxu1  ;;  %7099 = vmatprep.subr.bf16.mxu0 %v8870_v40  ;;  %v8910_v4 = vld [vmem:[#allocation8 + $0x1c0] ss:$16 sps:$4 sm:$0xff]   ;;  %v8918_v40 = vld [vmem:[#allocation8 + $0x1a4] ss:$16 sps:$4 sm:$0xff]  }
 0x249   :  { %7141 = vmatpush1.bf16.msra.mxu1 %v8865_v5  ;;  %v3691_v31 = vadd.f32 %v3690_v25, %v3648_v21  ;;  %v8913_v5 = vld [vmem:[#allocation8 + $0x3c0] ss:$16 sps:$4 sm:$0xff]   ;;  %v8924_v21 = vld [vmem:[#allocation8 + $0x184] ss:$16 sps:$4 sm:$0xff]  }
 0x24a   :  { %7142 = vmatprep.subr.bf16.mxu1 %v8873_v11  ;;  %v8916_v11 = vld [vmem:[#allocation8 + $0x1a0] ss:$16 sps:$4 sm:$0xff]  }
 0x24b   :  { %v3977_v36 = vmax.f32 %v3691_v31, 0.0  ;;  %7100 = vmatpush1.bf16.msra.mxu0 %v8868_v23  ;;  %v8919_v19 = vld [vmem:[#allocation8 + $0x3a0] ss:$16 sps:$4 sm:$0xff]   ;;  %v8927_v23 = vld [vmem:[#allocation8 + $0x384] ss:$16 sps:$4 sm:$0xff]  }
 0x24c   :  { %7101 = vmatprep.subr.bf16.mxu0 %v8876_v29  ;;  %v8922_v25 = vld [vmem:[#allocation8 + $0x180] ss:$16 sps:$4 sm:$0xff]   ;;  %v8930_v29 = vld [vmem:[#allocation8 + $0x164] ss:$16 sps:$4 sm:$0xff]  }
 0x24d   :  { %7143 = vmatpush1.bf16.msra.mxu1 %v8871_v27  ;;  %v9972_v12 = vpack.c.bf16 %v3977_v36, %v3961_v35  ;;  %v8925_v27 = vld [vmem:[#allocation8 + $0x380] ss:$16 sps:$4 sm:$0xff]   ;;  %v8933_v31 = vld [vmem:[#allocation8 + $0x364] ss:$16 sps:$4 sm:$0xff]   ;;  %v627_v35 = vsub.s32 5, %v9852_v18 }
 0x24e   :  { %7144 = vmatprep.subr.bf16.mxu1 %v8879_v34  ;;  %v8928_v34 = vld [vmem:[#allocation8 + $0x160] ss:$16 sps:$4 sm:$0xff]  }
 0x24f   :  { %7102 = vmatpush1.bf16.msra.mxu0 %v8874_v37  ;;  %v8931_v36 = vld [vmem:[#allocation8 + $0x360] ss:$16 sps:$4 sm:$0xff]   ;;  %v8936_v37 = vld [vmem:[#allocation8 + $0x144] ss:$16 sps:$4 sm:$0xff]  }
 0x250   :  { %7103 = vmatprep.subr.bf16.mxu0 %v8882_v39  ;;  %v8939_v39 = vld [vmem:[#allocation8 + $0x344] ss:$16 sps:$4 sm:$0xff]  }
 0x251   :  { %7145 = vmatpush1.bf16.msra.mxu1 %v8877_v54  ;;  %v635_v54 = vsub.s32 7, %v9852_v18 }
 0x252   :  { %7146 = vmatprep.subr.bf16.mxu1 %v8885_v0  ;;  %v8934_v0 = vld [vmem:[#allocation8 + $0x140] ss:$16 sps:$4 sm:$0xff]  }
 0x253   :  { %7104 = vmatpush1.bf16.msra.mxu0 %v8880_v15  ;;  %v9635_v15 = vld [vmem:[#allocation7] sm:$0xff] }
 0x254   :  { %7105 = vmatprep.subr.bf16.mxu0 %v8888_v43  ;;  %v8937_v43 = vld [vmem:[#allocation8 + $0x340] ss:$16 sps:$4 sm:$0xff]  }
 0x255   :  { %7147 = vmatpush1.bf16.msra.mxu1 %v8883_v58  ;;  %v628_v58 = vrot.slane %v9635_v15, %v627_v35 }
 0x256   :  { %7148 = vmatprep.subr.bf16.mxu1 %v8891_v41  ;;  %v8942_v41 = vld [vmem:[#allocation8 + $0x124] ss:$16 sps:$4 sm:$0xff]  }
 0x257   :  { %7106 = vmatpush1.bf16.msra.mxu0 %v8886_v44  ;;  %v636_v44 = vrot.slane %v9635_v15, %v635_v54 }
 0x258   :  { %7107 = vmatprep.subr.bf16.mxu0 %v8894_v46  ;;  %v3478_v46 = vadd.f32 %v9922_v17, %v628_v58  ;;  %v8946_v17 = vld [vmem:[#allocation8 + $0x100] ss:$16 sps:$4 sm:$0xff]  }
 0x259   :  { %7149 = vmatpush1.bf16.msra.mxu1 %v8889_v13  ;;  %v8945_v13 = vld [vmem:[#allocation8 + $0x324] ss:$16 sps:$4 sm:$0xff]  }
 0x25a   :  { %7150 = vmatprep.subr.bf16.mxu1 %v8897_v47  ;;  %v3564_v47 = vadd.f32 %v9958_v59, %v636_v44 }
 0x25b   :  { %7108 = vmatpush1.bf16.msra.mxu0 %v8892_v6  ;;  %v8940_v6 = vld [vmem:[#allocation8 + $0x120] ss:$16 sps:$4 sm:$0xff]  }
 0x25c   :  { %7109 = vmatprep.subr.bf16.mxu0 %v8900_v10  ;;  %v8943_v10 = vld [vmem:[#allocation8 + $0x320] ss:$16 sps:$4 sm:$0xff]  }
 0x25d   :  { %7151 = vmatpush1.bf16.msra.mxu1 %v8895_v61  ;;  %v3474_v61 = vadd.f32 %v9910_v8, %v628_v58  ;;  %v8954_v8 = vld [vmem:[#allocation8 + $0x4e4] ss:$16 sps:$4 sm:$0xff]  }
 0x25e   :  { %7152 = vmatprep.subr.bf16.mxu1 %v8903_v57  ;;  %v8948_v57 = vld [vmem:[#allocation8 + $0x104] ss:$16 sps:$4 sm:$0xff]  }
 0x25f   :  { %7110 = vmatpush1.bf16.msra.mxu0 %v8898_v50  ;;  %v3560_v50 = vadd.f32 %v9928_v38, %v636_v44  ;;  %v3517_v59 = vadd.f32 %v9912_v16, %v3474_v61  ;;  %v8955_v16 = vld [vmem:[#allocation8 + $0x6e0] ss:$16 sps:$4 sm:$0xff]  }
 0x260   :  { %7111 = vmatprep.subr.bf16.mxu0 %v8906_v55  ;;  %v3521_v55 = vadd.f32 %v9924_v22, %v3478_v46  ;;  %v648_v22 = vrot.slane %v9953_v49, %v9872_v53  ;;  %v8967_v44 = vld [vmem:[#allocation8 + $0x6a0] ss:$16 sps:$4 sm:$0xff]  }
 0x261   :  { %7153 = vmatpush1.bf16.msra.mxu1 %v8901_v20  ;;  %v8951_v20 = vld [vmem:[#allocation8 + $0x304] ss:$16 sps:$4 sm:$0xff]  }
 0x262   :  { %7154 = vmatprep.subr.bf16.mxu1 %v8909_v32  ;;  %v3607_v32 = vadd.f32 %v9960_v51, %v3564_v47  ;;  %v3958_v51 = vmax.f32 %v3517_v59, 0.0  ;;  %v8975_v47 = vld [vmem:[#allocation8 + $0x684] ss:$16 sps:$4 sm:$0xff]  }
 0x263   :  { %7112 = vmatpush2.bf16.msra.mxu0 %v8904_v60  ;;  %v8949_v60 = vld [vmem:[#allocation8 + $0x300] ss:$16 sps:$4 sm:$0xff]   ;;  %v8984_v59 = vld [vmem:[#allocation8 + $0x444] ss:$16 sps:$4 sm:$0xff]  }
 0x264   :  { %7113 = vmatprep.subr.bf16.mxu0 %v8912_v2  ;;  %v8957_v2 = vld [vmem:[#allocation8 + $0x6e4] ss:$16 sps:$4 sm:$0xff]   ;;  %v3976_v38 = vmax.f32 %v3607_v32, 0.0  ;;  %v8976_v32 = vld [vmem:[#allocation8 + $0x460] ss:$16 sps:$4 sm:$0xff]  }
 0x265   :  { %7155 = vmatpush2.bf16.msra.mxu1 %v8907_v24  ;;  %v3603_v24 = vadd.f32 %v9930_v42, %v3560_v50  ;;  %v8960_v42 = vld [vmem:[#allocation8 + $0x4c4] ss:$16 sps:$4 sm:$0xff]  }
 0x266   :  { %7156 = vmatprep.subr.bf16.mxu1 %v8915_v3  ;;  %v3974_v3 = vmax.f32 %v3521_v55, 0.0  ;;  %v8978_v50 = vld [vmem:[#allocation8 + $0x464] ss:$16 sps:$4 sm:$0xff]  }
 0x267   :  { %7114 = vmatpush2.bf16.msra.mxu0 %v8910_v4  ;;  %v8952_v4 = vld [vmem:[#allocation8 + $0x4e0] ss:$16 sps:$4 sm:$0xff]   ;;  %v8981_v55 = vld [vmem:[#allocation8 + $0x664] ss:$16 sps:$4 sm:$0xff]  }
 0x268   :  { %7115 = vmatprep.subr.bf16.mxu0 %v8918_v40  ;;  %v3960_v40 = vmax.f32 %v3603_v24, 0.0  ;;  %v8985_v24 = vld [vmem:[#allocation8 + $0x640] ss:$16 sps:$4 sm:$0xff]  }
 0x269   :  { %7157 = vmatpush2.bf16.msra.mxu1 %v8913_v5  ;;  %v9990_v5 = vpop.f32.mrf.mxu0 }
 0x26a   :  { %7158 = vmatprep.subr.bf16.mxu1 %v8921_v26  ;;  %v9992_v26 = vpop.f32.mrf.mxu1 }
 0x26b   :  { %7116 = vmatpush2.bf16.msra.mxu0 %v8916_v11  ;;  %v9994_v11 = vpack.c.bf16 %v3974_v3, %v3958_v51  ;;  %v8993_v3 = vld [vmem:[#allocation8 + $0x624] ss:$16 sps:$4 sm:$0xff]  }
 0x26c   :  { %7117 = vmatprep.subr.bf16.mxu0 %v8924_v21  ;;  %v8963_v21 = vld [vmem:[#allocation8 + $0x6c4] ss:$16 sps:$4 sm:$0xff]  }
 0x26d   :  { %7159 = vmatpush2.bf16.msra.mxu1 %v8919_v19  ;;  %v8999_v51 = vld [vmem:[#allocation8 + $0x604] ss:$16 sps:$4 sm:$0xff]  }
 0x26e   :  { %7160 = vmatprep.subr.bf16.mxu1 %v8927_v23  ;;  %v9997_v23 = vpack.c.bf16 %v3976_v38, %v3960_v40  ;;  %v8988_v38 = vld [vmem:[#allocation8 + $0x420] ss:$16 sps:$4 sm:$0xff]  }
 0x26f   :  { %7118 = vmatpush2.bf16.msra.mxu0 %v8922_v25  ;;  %v8997_v40 = vld [vmem:[#allocation8 + $0x600] ss:$16 sps:$4 sm:$0xff]  }
 0x270   :  { %7119 = vmatprep.subr.bf16.mxu0 %v8930_v29  ;;  %v8958_v29 = vld [vmem:[#allocation8 + $0x4c0] ss:$16 sps:$4 sm:$0xff]  }
 0x271   :  { %7161 = vmatpush2.bf16.msra.mxu1 %v8925_v27 }
 0x272   :  { %7162 = vmatprep.subr.bf16.mxu1 %v8933_v31 }
 0x273   :  { %7120 = vmatpush2.bf16.msra.mxu0 %v8928_v34  ;;  %v8961_v34 = vld [vmem:[#allocation8 + $0x6c0] ss:$16 sps:$4 sm:$0xff]  }
 0x274   :  { %7121 = vmatprep.subr.bf16.mxu0 %v8936_v37 }
 0x275   :  { %7163 = vmatpush2.bf16.msra.mxu1 %v8931_v36  ;;  %v8966_v36 = vld [vmem:[#allocation8 + $0x4a4] ss:$16 sps:$4 sm:$0xff]  }
 0x276   :  { %7164 = vmatprep.subr.bf16.mxu1 %v8939_v39 }
 0x277   :  { %7122 = vmatpush2.bf16.msra.mxu0 %v8934_v0  ;;  %v8969_v0 = vld [vmem:[#allocation8 + $0x6a4] ss:$16 sps:$4 sm:$0xff]  }
 0x278   :  { %7123 = vmatprep.subr.bf16.mxu0 %v8942_v41 }
 0x279   :  { %7165 = vmatpush2.bf16.msra.mxu1 %v8937_v43  ;;  %v8964_v43 = vld [vmem:[#allocation8 + $0x4a0] ss:$16 sps:$4 sm:$0xff]  }
 0x27a   :  { %7166 = vmatprep.subr.bf16.mxu1 %v8945_v13  ;;  %v8972_v13 = vld [vmem:[#allocation8 + $0x484] ss:$16 sps:$4 sm:$0xff]  }
 0x27b   :  { %7124 = vmatpush2.bf16.msra.mxu0 %v8940_v6 }
 0x27c   :  { %7125 = vmatprep.subr.bf16.mxu0 %v8948_v57  ;;  %v8973_v57 = vld [vmem:[#allocation8 + $0x680] ss:$16 sps:$4 sm:$0xff]  }
 0x27d   :  { %7167 = vmatpush2.bf16.msra.mxu1 %v8943_v10  ;;  %v8970_v10 = vld [vmem:[#allocation8 + $0x480] ss:$16 sps:$4 sm:$0xff]  }
 0x27e   :  { %7168 = vmatprep.subr.bf16.mxu1 %v8951_v20 }
 0x27f   :  { %7126 = vmatpush2.bf16.msra.mxu0 %v8946_v17  ;;  %v8979_v17 = vld [vmem:[#allocation8 + $0x660] ss:$16 sps:$4 sm:$0xff]  }
 0x280   :  { %7181 = vmatprep.subr.bf16.mxu0 %v8954_v8  ;;  %v8982_v8 = vld [vmem:[#allocation8 + $0x440] ss:$16 sps:$4 sm:$0xff]  }
 0x281   :  { %7169 = vmatpush2.bf16.msra.mxu1 %v8949_v60  ;;  %v8987_v60 = vld [vmem:[#allocation8 + $0x644] ss:$16 sps:$4 sm:$0xff]  }
 0x282   :  { %7224 = vmatprep.subr.bf16.mxu1 %v8957_v2  ;;  %v3729_v19 = vpop.f32.mrf.mxu0  ;;  %7128 = vmatmul.mubr.bf16.vlgmr.msra.gmra.mxu0 %v9869_v14  ;;  %v8990_v2 = vld [vmem:[#allocation8 + $0x424] ss:$16 sps:$4 sm:$0xff]  }
 0x283   :  { %v3730_v25 = vadd.f32 %v3729_v19, %v648_v22  ;;  %7182 = vmatpush1.bf16.msra.mxu0 %v8952_v4  ;;  %7213 = vmatprep.mubr.bf16.mxu0 %v9994_v11  ;;  %v8996_v4 = vld [vmem:[#allocation8 + $0x404] ss:$16 sps:$4 sm:$0xff]  }
 0x284   :  { %v3772_v27 = vpop.f32.mrf.mxu1  ;;  %7171 = vmatmul.mubr.bf16.vlgmr.msra.gmra.mxu1 %v9896_v48  ;;  %v10001_v31 = vpop.f32.mrf.mxu0  ;;  %7183 = vmatprep.subr.bf16.mxu0 %v8960_v42  ;;  %v9002_v42 = vld [vmem:[#allocation8 + $0x5e4] ss:$16 sps:$4 sm:$0xff]  }
 0x285   :  { %7225 = vmatpush1.bf16.msra.mxu1 %v8955_v16  ;;  %v3773_v37 = vadd.f32 %v3772_v27, %v3730_v25  ;;  %7256 = vmatprep.mubr.bf16.mxu1 %v9997_v23  ;;  %v8994_v16 = vld [vmem:[#allocation8 + $0x400] ss:$16 sps:$4 sm:$0xff]   ;;  %v9005_v19 = vld [vmem:[#allocation8 + $0x7e4] ss:$16 sps:$4 sm:$0xff]  }
 0x286   :  { %v10004_v39 = vpop.f32.mrf.mxu1  ;;  %v3733_v15 = vpop.f32.mrf.mxu0  ;;  %7226 = vmatprep.subr.bf16.mxu1 %v8963_v21  ;;  %v9000_v21 = vld [vmem:[#allocation8 + $0x5e0] ss:$16 sps:$4 sm:$0xff]   ;;  %v9008_v27 = vld [vmem:[#allocation8 + $0x5c4] ss:$16 sps:$4 sm:$0xff]  }
 0x287   :  { %v3734_v58 = vadd.f32 %v3733_v15, %v648_v22  ;;  %7184 = vmatpush1.bf16.msra.mxu0 %v8958_v29  ;;  %v3963_v6 = vmax.f32 %v3773_v37, 0.0  ;;  %v8991_v22 = vld [vmem:[#allocation8 + $0x620] ss:$16 sps:$4 sm:$0xff]   ;;  %v9011_v29 = vld [vmem:[#allocation8 + $0x7c4] ss:$16 sps:$4 sm:$0xff]  }
 0x288   :  { %v3776_v41 = vpop.f32.mrf.mxu1  ;;  %7185 = vmatprep.subr.bf16.mxu0 %v8966_v36  ;;  %v9003_v25 = vld [vmem:[#allocation8 + $0x7e0] ss:$16 sps:$4 sm:$0xff]   ;;  %v9014_v37 = vld [vmem:[#allocation8 + $0x5a4] ss:$16 sps:$4 sm:$0xff]  }
 0x289   :  { %7227 = vmatpush1.bf16.msra.mxu1 %v8961_v34  ;;  %v3777_v46 = vadd.f32 %v3776_v41, %v3734_v58  ;;  %v9006_v34 = vld [vmem:[#allocation8 + $0x5c0] ss:$16 sps:$4 sm:$0xff]   ;;  %v9023_v41 = vld [vmem:[#allocation8 + $0x784] ss:$16 sps:$4 sm:$0xff]  }
 0x28a   :  { %7228 = vmatprep.subr.bf16.mxu1 %v8969_v0  ;;  %v9009_v36 = vld [vmem:[#allocation8 + $0x7c0] ss:$16 sps:$4 sm:$0xff]   ;;  %v9017_v0 = vld [vmem:[#allocation8 + $0x7a4] ss:$16 sps:$4 sm:$0xff]  }
 0x28b   :  { %v3979_v61 = vmax.f32 %v3777_v46, 0.0  ;;  %7186 = vmatpush1.bf16.msra.mxu0 %v8964_v43  ;;  %v9012_v15 = vld [vmem:[#allocation8 + $0x5a0] ss:$16 sps:$4 sm:$0xff]   ;;  %v9020_v43 = vld [vmem:[#allocation8 + $0x584] ss:$16 sps:$4 sm:$0xff]  }
 0x28c   :  { %7187 = vmatprep.subr.bf16.mxu0 %v8972_v13  ;;  %v9015_v58 = vld [vmem:[#allocation8 + $0x7a0] ss:$16 sps:$4 sm:$0xff]   ;;  %v9026_v46 = vld [vmem:[#allocation8 + $0x564] ss:$16 sps:$4 sm:$0xff]  }
 0x28d   :  { %7229 = vmatpush1.bf16.msra.mxu1 %v8967_v44  ;;  %v10006_v20 = vpack.c.bf16 %v3979_v61, %v3963_v6  ;;  %v9018_v44 = vld [vmem:[#allocation8 + $0x580] ss:$16 sps:$4 sm:$0xff]  }
 0x28e   :  { %7230 = vmatprep.subr.bf16.mxu1 %v8975_v47  ;;  %v9021_v13 = vld [vmem:[#allocation8 + $0x780] ss:$16 sps:$4 sm:$0xff]   ;;  %v9029_v47 = vld [vmem:[#allocation8 + $0x764] ss:$16 sps:$4 sm:$0xff]  }
 0x28f   :  { %7188 = vmatpush1.bf16.msra.mxu0 %v8970_v10  ;;  %v9024_v6 = vld [vmem:[#allocation8 + $0x560] ss:$16 sps:$4 sm:$0xff]   ;;  %v9032_v10 = vld [vmem:[#allocation8 + $0x544] ss:$16 sps:$4 sm:$0xff]  }
 0x290   :  { %7189 = vmatprep.subr.bf16.mxu0 %v8978_v50  ;;  %v9027_v61 = vld [vmem:[#allocation8 + $0x760] ss:$16 sps:$4 sm:$0xff]  }
 0x291   :  { %7231 = vmatpush1.bf16.msra.mxu1 %v8973_v57  ;;  %v9035_v57 = vld [vmem:[#allocation8 + $0x744] ss:$16 sps:$4 sm:$0xff]   ;;  %v9030_v50 = vld [vmem:[#allocation8 + $0x540] ss:$16 sps:$4 sm:$0xff]  }
 0x292   :  { %7232 = vmatprep.subr.bf16.mxu1 %v8981_v55  ;;  %v644_v55 = vrot.slane %v9953_v49, %v9937_v33 }
 0x293   :  { %7190 = vmatpush1.bf16.msra.mxu0 %v8976_v32  ;;  %v3735_v32 = vpop.f32.mrf.mxu0 }
 0x294   :  { %7191 = vmatprep.subr.bf16.mxu0 %v8984_v59  ;;  %v9038_v59 = vld [vmem:[#allocation8 + $0x524] ss:$16 sps:$4 sm:$0xff]  }
 0x295   :  { %7233 = vmatpush1.bf16.msra.mxu1 %v8979_v17  ;;  %v9033_v17 = vld [vmem:[#allocation8 + $0x740] ss:$16 sps:$4 sm:$0xff]  }
 0x296   :  { %7234 = vmatprep.subr.bf16.mxu1 %v8987_v60  ;;  %v652_v60 = vrot.slane %v9953_v49, %v9940_v63 }
 0x297   :  { %7192 = vmatpush1.bf16.msra.mxu0 %v8982_v8  ;;  %v9041_v8 = vld [vmem:[#allocation8 + $0x724] ss:$16 sps:$4 sm:$0xff]  }
 0x298   :  { %7193 = vmatprep.subr.bf16.mxu0 %v8990_v2  ;;  %v3736_v2 = vadd.f32 %v3735_v32, %v652_v60  ;;  %v9060_v32 = vld [vmem:[#allocation8 + $0x8a0] ss:$16 sps:$4 sm:$0xff]  }
 0x299   :  { %7235 = vmatpush1.bf16.msra.mxu1 %v8985_v24  ;;  %v3650_v24 = vadd.f32 %v9990_v5, %v644_v55 }
 0x29a   :  { %7236 = vmatprep.subr.bf16.mxu1 %v8993_v3  ;;  %v9036_v3 = vld [vmem:[#allocation8 + $0x520] ss:$16 sps:$4 sm:$0xff]  }
 0x29b   :  { %7194 = vmatpush1.bf16.msra.mxu0 %v8988_v38  ;;  %v3646_v38 = vadd.f32 %v9967_v30, %v644_v55  ;;  %v9050_v30 = vld [vmem:[#allocation8 + $0x8e4] ss:$16 sps:$4 sm:$0xff]  }
 0x29c   :  { %7195 = vmatprep.subr.bf16.mxu0 %v8996_v4  ;;  %v9044_v4 = vld [vmem:[#allocation8 + $0x504] ss:$16 sps:$4 sm:$0xff]  }
 0x29d   :  { %7237 = vmatpush1.bf16.msra.mxu1 %v8991_v22  ;;  %v9039_v22 = vld [vmem:[#allocation8 + $0x720] ss:$16 sps:$4 sm:$0xff]   ;;  %v3689_v5 = vadd.f32 %v9970_v9, %v3646_v38 }
 0x29e   :  { %7238 = vmatprep.subr.bf16.mxu1 %v8999_v51  ;;  %v3732_v51 = vadd.f32 %v10001_v31, %v652_v60  ;;  %v9051_v9 = vld [vmem:[#allocation8 + $0xae0] ss:$16 sps:$4 sm:$0xff]   ;;  %v9068_v60 = vld [vmem:[#allocation8 + $0x884] ss:$16 sps:$4 sm:$0xff]  }
 0x29f   :  { %7196 = vmatpush1.bf16.msra.mxu0 %v8994_v16  ;;  %v9047_v16 = vld [vmem:[#allocation8 + $0x704] ss:$16 sps:$4 sm:$0xff]   ;;  %v9066_v38 = vld [vmem:[#allocation8 + $0x880] ss:$16 sps:$4 sm:$0xff]  }
 0x2a0   :  { %7197 = vmatprep.subr.bf16.mxu0 %v9002_v42  ;;  %v3778_v42 = vpop.f32.mrf.mxu1 }
 0x2a1   :  { %7239 = vmatpush1.bf16.msra.mxu1 %v8997_v40  ;;  %v3693_v40 = vadd.f32 %v9992_v26, %v3650_v24  ;;  %v656_v26 = vrot.slane %v9953_v49, %v623_v45  ;;  %v9054_v45 = vld [vmem:[#allocation8 + $0x8c0] ss:$16 sps:$4 sm:$0xff]   ;;  %v9071_v24 = vld [vmem:[#allocation8 + $0xa84] ss:$16 sps:$4 sm:$0xff]  }
 0x2a2   :  { %7240 = vmatprep.subr.bf16.mxu1 %v9005_v19  ;;  %v3779_v19 = vadd.f32 %v3778_v42, %v3736_v2  ;;  %v9075_v42 = vld [vmem:[#allocation8 + $0xa60] ss:$16 sps:$4 sm:$0xff]  }
 0x2a3   :  { %7198 = vmatpush2.bf16.msra.mxu0 %v9000_v21  ;;  %v9042_v21 = vld [vmem:[#allocation8 + $0x500] ss:$16 sps:$4 sm:$0xff]  }
 0x2a4   :  { %7199 = vmatprep.subr.bf16.mxu0 %v9008_v27  ;;  %v3775_v27 = vadd.f32 %v10004_v39, %v3732_v51  ;;  %v3980_v31 = vmax.f32 %v3779_v19, 0.0  ;;  %v9080_v19 = vld [vmem:[#allocation8 + $0x844] ss:$16 sps:$4 sm:$0xff]  }
 0x2a5   :  { %7241 = vmatpush2.bf16.msra.mxu1 %v9003_v25  ;;  %v9045_v25 = vld [vmem:[#allocation8 + $0x700] ss:$16 sps:$4 sm:$0xff]  }
 0x2a6   :  { %7242 = vmatprep.subr.bf16.mxu1 %v9011_v29  ;;  %v9053_v29 = vld [vmem:[#allocation8 + $0xae4] ss:$16 sps:$4 sm:$0xff]  }
 0x2a7   :  { %7200 = vmatpush2.bf16.msra.mxu0 %v9006_v34  ;;  %v3978_v34 = vmax.f32 %v3693_v40, 0.0  ;;  %v9072_v40 = vld [vmem:[#allocation8 + $0x860] ss:$16 sps:$4 sm:$0xff]  }
 0x2a8   :  { %7201 = vmatprep.subr.bf16.mxu0 %v9014_v37  ;;  %v3962_v37 = vmax.f32 %v3689_v5, 0.0  ;;  %v9078_v5 = vld [vmem:[#allocation8 + $0x840] ss:$16 sps:$4 sm:$0xff]  }
 0x2a9   :  { %7243 = vmatpush2.bf16.msra.mxu1 %v9009_v36  ;;  %v9048_v36 = vld [vmem:[#allocation8 + $0x8e0] ss:$16 sps:$4 sm:$0xff]  }
 0x2aa   :  { %7244 = vmatprep.subr.bf16.mxu1 %v9017_v0  ;;  %v3964_v0 = vmax.f32 %v3775_v27, 0.0  ;;  %v9089_v27 = vld [vmem:[#allocation8 + $0xa24] ss:$16 sps:$4 sm:$0xff]  }
 0x2ab   :  { %7202 = vmatpush2.bf16.msra.mxu0 %v9012_v15  ;;  %v9056_v15 = vld [vmem:[#allocation8 + $0x8c4] ss:$16 sps:$4 sm:$0xff]  }
 0x2ac   :  { %7203 = vmatprep.subr.bf16.mxu0 %v9020_v43  ;;  %v9059_v43 = vld [vmem:[#allocation8 + $0xac4] ss:$16 sps:$4 sm:$0xff]  }
 0x2ad   :  { %7245 = vmatpush2.bf16.msra.mxu1 %v9015_v58  ;;  %v10021_v58 = vpack.c.bf16 %v3978_v34, %v3962_v37  ;;  %v9087_v34 = vld [vmem:[#allocation8 + $0xa20] ss:$16 sps:$4 sm:$0xff]  }
 0x2ae   :  { %7246 = vmatprep.subr.bf16.mxu1 %v9023_v41  ;;  %v10024_v41 = vpack.c.bf16 %v3980_v31, %v3964_v0  ;;  %v9092_v31 = vld [vmem:[#allocation8 + $0x804] ss:$16 sps:$4 sm:$0xff]   ;;  %v9093_v37 = vld [vmem:[#allocation8 + $0xa00] ss:$16 sps:$4 sm:$0xff]  }
 0x2af   :  { %7204 = vmatpush2.bf16.msra.mxu0 %v9018_v44  ;;  %v9101_v0 = vld [vmem:[#allocation8 + $0xbe4] ss:$16 sps:$4 sm:$0xff]  }
 0x2b0   :  { %7205 = vmatprep.subr.bf16.mxu0 %v9026_v46 }
 0x2b1   :  { %7247 = vmatpush2.bf16.msra.mxu1 %v9021_v13 }
 0x2b2   :  { %7248 = vmatprep.subr.bf16.mxu1 %v9029_v47  ;;  %v9057_v47 = vld [vmem:[#allocation8 + $0xac0] ss:$16 sps:$4 sm:$0xff]  }
 0x2b3   :  { %7206 = vmatpush2.bf16.msra.mxu0 %v9024_v6  ;;  %v9062_v6 = vld [vmem:[#allocation8 + $0x8a4] ss:$16 sps:$4 sm:$0xff]  }
 0x2b4   :  { %7207 = vmatprep.subr.bf16.mxu0 %v9032_v10 }
 0x2b5   :  { %7249 = vmatpush2.bf16.msra.mxu1 %v9027_v61 }
 0x2b6   :  { %7250 = vmatprep.subr.bf16.mxu1 %v9035_v57  ;;  %v9065_v57 = vld [vmem:[#allocation8 + $0xaa4] ss:$16 sps:$4 sm:$0xff]  }
 0x2b7   :  { %7208 = vmatpush2.bf16.msra.mxu0 %v9030_v50 }
 0x2b8   :  { %7209 = vmatprep.subr.bf16.mxu0 %v9038_v59  ;;  %v9063_v59 = vld [vmem:[#allocation8 + $0xaa0] ss:$16 sps:$4 sm:$0xff]  }
 0x2b9   :  { %7251 = vmatpush2.bf16.msra.mxu1 %v9033_v17 }
 0x2ba   :  { %7252 = vmatprep.subr.bf16.mxu1 %v9041_v8 }
 0x2bb   :  { %7210 = vmatpush2.bf16.msra.mxu0 %v9036_v3 }
 0x2bc   :  { %7211 = vmatprep.subr.bf16.mxu0 %v9044_v4  ;;  %v9074_v4 = vld [vmem:[#allocation8 + $0x864] ss:$16 sps:$4 sm:$0xff]  }
 0x2bd   :  { %7253 = vmatpush2.bf16.msra.mxu1 %v9039_v22  ;;  %v9069_v22 = vld [vmem:[#allocation8 + $0xa80] ss:$16 sps:$4 sm:$0xff]  }
 0x2be   :  { %7254 = vmatprep.subr.bf16.mxu1 %v9047_v16  ;;  %v9077_v16 = vld [vmem:[#allocation8 + $0xa64] ss:$16 sps:$4 sm:$0xff]  }
 0x2bf   :  { %7212 = vmatpush2.bf16.msra.mxu0 %v9042_v21  ;;  %v9083_v21 = vld [vmem:[#allocation8 + $0xa44] ss:$16 sps:$4 sm:$0xff]  }
 0x2c0   :  { %7267 = vmatprep.subr.bf16.mxu0 %v9050_v30  ;;  %v9086_v30 = vld [vmem:[#allocation8 + $0x824] ss:$16 sps:$4 sm:$0xff]  }
 0x2c1   :  { %7255 = vmatpush2.bf16.msra.mxu1 %v9045_v25  ;;  %v9081_v25 = vld [vmem:[#allocation8 + $0xa40] ss:$16 sps:$4 sm:$0xff]  }
 0x2c2   :  { %7310 = vmatprep.subr.bf16.mxu1 %v9053_v29  ;;  %v3815_v39 = vpop.f32.mrf.mxu0  ;;  %7214 = vmatmul.mubr.bf16.vlgmr.msra.gmra.mxu0 %v9916_v56  ;;  %v9084_v29 = vld [vmem:[#allocation8 + $0x820] ss:$16 sps:$4 sm:$0xff]  }
 0x2c3   :  { %v3816_v44 = vadd.f32 %v3815_v39, %v656_v26  ;;  %7268 = vmatpush1.bf16.msra.mxu0 %v9048_v36  ;;  %7299 = vmatprep.mubr.bf16.mxu0 %v10021_v58  ;;  %v9090_v36 = vld [vmem:[#allocation8 + $0x800] ss:$16 sps:$4 sm:$0xff]  }
 0x2c4   :  { %v3858_v13 = vpop.f32.mrf.mxu1  ;;  %7257 = vmatmul.mubr.bf16.vlgmr.msra.gmra.mxu1 %v9934_v7  ;;  %v10028_v46 = vpop.f32.mrf.mxu0  ;;  %7269 = vmatprep.subr.bf16.mxu0 %v9056_v15  ;;  %v9096_v15 = vld [vmem:[#allocation8 + $0x9e0] ss:$16 sps:$4 sm:$0xff]  }
 0x2c5   :  { %7311 = vmatpush1.bf16.msra.mxu1 %v9051_v9  ;;  %v3859_v61 = vadd.f32 %v3858_v13, %v3816_v44  ;;  %7342 = vmatprep.mubr.bf16.mxu1 %v10024_v41  ;;  %v9098_v9 = vld [vmem:[#allocation8 + $0x9e4] ss:$16 sps:$4 sm:$0xff]   ;;  %v9099_v39 = vld [vmem:[#allocation8 + $0xbe0] ss:$16 sps:$4 sm:$0xff]  }
 0x2c6   :  { %v10031_v10 = vpop.f32.mrf.mxu1  ;;  %v3819_v50 = vpop.f32.mrf.mxu0  ;;  %7312 = vmatprep.subr.bf16.mxu1 %v9059_v43  ;;  %v9104_v43 = vld [vmem:[#allocation8 + $0x9c4] ss:$16 sps:$4 sm:$0xff]   ;;  %v9102_v13 = vld [vmem:[#allocation8 + $0x9c0] ss:$16 sps:$4 sm:$0xff]  }
 0x2c7   :  { %v3820_v55 = vadd.f32 %v3819_v50, %v656_v26  ;;  %7270 = vmatpush1.bf16.msra.mxu0 %v9054_v45  ;;  %v3965_v2 = vmax.f32 %v3859_v61, 0.0  ;;  %v9095_v26 = vld [vmem:[#allocation8 + $0xa04] ss:$16 sps:$4 sm:$0xff]   ;;  %v9105_v45 = vld [vmem:[#allocation8 + $0xbc0] ss:$16 sps:$4 sm:$0xff]  }
 0x2c8   :  { %v3862_v17 = vpop.f32.mrf.mxu1  ;;  %7271 = vmatprep.subr.bf16.mxu0 %v9062_v6  ;;  %v9107_v44 = vld [vmem:[#allocation8 + $0xbc4] ss:$16 sps:$4 sm:$0xff]   ;;  %v9108_v61 = vld [vmem:[#allocation8 + $0x9a0] ss:$16 sps:$4 sm:$0xff]  }
 0x2c9   :  { %7313 = vmatpush1.bf16.msra.mxu1 %v9057_v47  ;;  %v3863_v8 = vadd.f32 %v3862_v17, %v3820_v55  ;;  %v9110_v47 = vld [vmem:[#allocation8 + $0x9a4] ss:$16 sps:$4 sm:$0xff]   ;;  %v9117_v17 = vld [vmem:[#allocation8 + $0xb80] ss:$16 sps:$4 sm:$0xff]  }
 0x2ca   :  { %7314 = vmatprep.subr.bf16.mxu1 %v9065_v57  ;;  %v9113_v6 = vld [vmem:[#allocation8 + $0xba4] ss:$16 sps:$4 sm:$0xff]   ;;  %v9111_v57 = vld [vmem:[#allocation8 + $0xba0] ss:$16 sps:$4 sm:$0xff]  }
 0x2cb   :  { %v3981_v3 = vmax.f32 %v3863_v8, 0.0  ;;  %7272 = vmatpush1.bf16.msra.mxu0 %v9060_v32  ;;  %v9116_v50 = vld [vmem:[#allocation8 + $0x984] ss:$16 sps:$4 sm:$0xff]   ;;  %v9114_v32 = vld [vmem:[#allocation8 + $0x980] ss:$16 sps:$4 sm:$0xff]  }
 0x2cc   :  { %7273 = vmatprep.subr.bf16.mxu0 %v9068_v60  ;;  %v9119_v55 = vld [vmem:[#allocation8 + $0xb84] ss:$16 sps:$4 sm:$0xff]   ;;  %v9120_v8 = vld [vmem:[#allocation8 + $0x960] ss:$16 sps:$4 sm:$0xff]  }
 0x2cd   :  { %7315 = vmatpush1.bf16.msra.mxu1 %v9063_v59  ;;  %v10033_v51 = vpack.c.bf16 %v3981_v3, %v3965_v2  ;;  %v9122_v59 = vld [vmem:[#allocation8 + $0x964] ss:$16 sps:$4 sm:$0xff]  }
 0x2ce   :  { %7316 = vmatprep.subr.bf16.mxu1 %v9071_v24  ;;  %v9125_v60 = vld [vmem:[#allocation8 + $0xb64] ss:$16 sps:$4 sm:$0xff]   ;;  %v9123_v24 = vld [vmem:[#allocation8 + $0xb60] ss:$16 sps:$4 sm:$0xff]  }
 0x2cf   :  { %7274 = vmatpush1.bf16.msra.mxu0 %v9066_v38  ;;  %v9128_v2 = vld [vmem:[#allocation8 + $0x944] ss:$16 sps:$4 sm:$0xff]   ;;  %v3821_v38 = vpop.f32.mrf.mxu0 }
 0x2d0   :  { %7275 = vmatprep.subr.bf16.mxu0 %v9074_v4  ;;  %v9131_v3 = vld [vmem:[#allocation8 + $0xb44] ss:$16 sps:$4 sm:$0xff]   ;;  %v660_v4 = vrot.slane %v9953_v49, %v627_v35  ;;  %v9138_v35 = vld [vmem:[#allocation8 + $0x900] ss:$16 sps:$4 sm:$0xff]  }
 0x2d1   :  { %7317 = vmatpush1.bf16.msra.mxu1 %v9069_v22  ;;  %v9126_v22 = vld [vmem:[#allocation8 + $0x940] ss:$16 sps:$4 sm:$0xff]  }
 0x2d2   :  { %7318 = vmatprep.subr.bf16.mxu1 %v9077_v16  ;;  %v9129_v16 = vld [vmem:[#allocation8 + $0xb40] ss:$16 sps:$4 sm:$0xff]  }
 0x2d3   :  { %7276 = vmatpush1.bf16.msra.mxu0 %v9072_v40  ;;  %v9134_v40 = vld [vmem:[#allocation8 + $0x924] ss:$16 sps:$4 sm:$0xff]  }
 0x2d4   :  { %7277 = vmatprep.subr.bf16.mxu0 %v9080_v19  ;;  %v3822_v19 = vadd.f32 %v3821_v38, %v660_v4 }
 0x2d5   :  { %7319 = vmatpush1.bf16.msra.mxu1 %v9075_v42  ;;  %v9137_v42 = vld [vmem:[#allocation8 + $0xb24] ss:$16 sps:$4 sm:$0xff]  }
 0x2d6   :  { %7320 = vmatprep.subr.bf16.mxu1 %v9083_v21  ;;  %v9132_v21 = vld [vmem:[#allocation8 + $0x920] ss:$16 sps:$4 sm:$0xff]  }
 0x2d7   :  { %7278 = vmatpush1.bf16.msra.mxu0 %v9078_v5  ;;  %v3818_v5 = vadd.f32 %v10028_v46, %v660_v4  ;;  %v9144_v46 = vld [vmem:[#allocation8 + $0xce0] ss:$16 sps:$4 sm:$0xff]  }
 0x2d8   :  { %7279 = vmatprep.subr.bf16.mxu0 %v9086_v30  ;;  %v9140_v30 = vld [vmem:[#allocation8 + $0x904] ss:$16 sps:$4 sm:$0xff]   ;;  %v9162_v4 = vld [vmem:[#allocation8 + $0xc80] ss:$16 sps:$4 sm:$0xff]  }
 0x2d9   :  { %7321 = vmatpush1.bf16.msra.mxu1 %v9081_v25  ;;  %v9135_v25 = vld [vmem:[#allocation8 + $0xb20] ss:$16 sps:$4 sm:$0xff]  }
 0x2da   :  { %7322 = vmatprep.subr.bf16.mxu1 %v9089_v27  ;;  %v3864_v27 = vpop.f32.mrf.mxu1 }
 0x2db   :  { %7280 = vmatpush1.bf16.msra.mxu0 %v9084_v29  ;;  %v9143_v29 = vld [vmem:[#allocation8 + $0xb04] ss:$16 sps:$4 sm:$0xff]  }
 0x2dc   :  { %7281 = vmatprep.subr.bf16.mxu0 %v9092_v31  ;;  %v3861_v31 = vadd.f32 %v10031_v10, %v3818_v5  ;;  %v9155_v10 = vld [vmem:[#allocation8 + $0xec4] ss:$16 sps:$4 sm:$0xff]  }
 0x2dd   :  { %7323 = vmatpush1.bf16.msra.mxu1 %v9087_v34  ;;  %v3865_v34 = vadd.f32 %v3864_v27, %v3822_v19  ;;  %v9176_v27 = vld [vmem:[#allocation8 + $0xc44] ss:$16 sps:$4 sm:$0xff]  }
 0x2de   :  { %7324 = vmatprep.subr.bf16.mxu1 %v9095_v26  ;;  %v9141_v26 = vld [vmem:[#allocation8 + $0xb00] ss:$16 sps:$4 sm:$0xff]  }
 0x2df   :  { %7282 = vmatpush1.bf16.msra.mxu0 %v9090_v36  ;;  %v9146_v36 = vld [vmem:[#allocation8 + $0xce4] ss:$16 sps:$4 sm:$0xff]  }
 0x2e0   :  { %7283 = vmatprep.subr.bf16.mxu0 %v9098_v9  ;;  %v3982_v9 = vmax.f32 %v3865_v34, 0.0  ;;  %v9174_v34 = vld [vmem:[#allocation8 + $0xc40] ss:$16 sps:$4 sm:$0xff]  }
 0x2e1   :  { %7325 = vmatpush1.bf16.msra.mxu1 %v9093_v37  ;;  %v9149_v37 = vld [vmem:[#allocation8 + $0xee4] ss:$16 sps:$4 sm:$0xff]  }
 0x2e2   :  { %7326 = vmatprep.subr.bf16.mxu1 %v9101_v0  ;;  %v3966_v0 = vmax.f32 %v3861_v31, 0.0  ;;  %v9182_v31 = vld [vmem:[#allocation8 + $0xc24] ss:$16 sps:$4 sm:$0xff]  }
 0x2e3   :  { %7284 = vmatpush2.bf16.msra.mxu0 %v9096_v15  ;;  %v9147_v15 = vld [vmem:[#allocation8 + $0xee0] ss:$16 sps:$4 sm:$0xff]  }
 0x2e4   :  { %7285 = vmatprep.subr.bf16.mxu0 %v9104_v43  ;;  %v9152_v43 = vld [vmem:[#allocation8 + $0xcc4] ss:$16 sps:$4 sm:$0xff]  }
 0x2e5   :  { %7327 = vmatpush2.bf16.msra.mxu1 %v9099_v39  ;;  %v668_v39 = vrot.slane %v9953_v49, %v635_v54  ;;  %v9158_v49 = vld [vmem:[#allocation8 + $0xca4] ss:$16 sps:$4 sm:$0xff]  }
 0x2e6   :  { %7328 = vmatprep.subr.bf16.mxu1 %v9107_v44  ;;  %v10043_v44 = vpack.c.bf16 %v3982_v9, %v3966_v0  ;;  %v9188_v9 = vld [vmem:[#allocation8 + $0xc04] ss:$16 sps:$4 sm:$0xff]   ;;  %v9186_v0 = vld [vmem:[#allocation8 + $0xc00] ss:$16 sps:$4 sm:$0xff]  }
 0x2e7   :  { %7286 = vmatpush2.bf16.msra.mxu0 %v9102_v13 }
 0x2e8   :  { %7287 = vmatprep.subr.bf16.mxu0 %v9110_v47  ;;  %v9150_v47 = vld [vmem:[#allocation8 + $0xcc0] ss:$16 sps:$4 sm:$0xff]  }
 0x2e9   :  { %7329 = vmatpush2.bf16.msra.mxu1 %v9105_v45 }
 0x2ea   :  { %7330 = vmatprep.subr.bf16.mxu1 %v9113_v6 }
 0x2eb   :  { %7288 = vmatpush2.bf16.msra.mxu0 %v9108_v61  ;;  %v9153_v61 = vld [vmem:[#allocation8 + $0xec0] ss:$16 sps:$4 sm:$0xff]  }
 0x2ec   :  { %7289 = vmatprep.subr.bf16.mxu0 %v9116_v50  ;;  %v9161_v50 = vld [vmem:[#allocation8 + $0xea4] ss:$16 sps:$4 sm:$0xff]  }
 0x2ed   :  { %7331 = vmatpush2.bf16.msra.mxu1 %v9111_v57 }
 0x2ee   :  { %7332 = vmatprep.subr.bf16.mxu1 %v9119_v55 }
 0x2ef   :  { %7290 = vmatpush2.bf16.msra.mxu0 %v9114_v32 }
 0x2f0   :  { %7291 = vmatprep.subr.bf16.mxu0 %v9122_v59 }
 0x2f1   :  { %7333 = vmatpush2.bf16.msra.mxu1 %v9117_v17  ;;  %v9156_v17 = vld [vmem:[#allocation8 + $0xca0] ss:$16 sps:$4 sm:$0xff]  }
 0x2f2   :  { %7334 = vmatprep.subr.bf16.mxu1 %v9125_v60  ;;  %v9159_v60 = vld [vmem:[#allocation8 + $0xea0] ss:$16 sps:$4 sm:$0xff]  }
 0x2f3   :  { %7292 = vmatpush2.bf16.msra.mxu0 %v9120_v8  ;;  %v9164_v8 = vld [vmem:[#allocation8 + $0xc84] ss:$16 sps:$4 sm:$0xff]  }
 0x2f4   :  { %7293 = vmatprep.subr.bf16.mxu0 %v9128_v2 }
 0x2f5   :  { %7335 = vmatpush2.bf16.msra.mxu1 %v9123_v24 }
 0x2f6   :  { %7336 = vmatprep.subr.bf16.mxu1 %v9131_v3  ;;  %v9167_v3 = vld [vmem:[#allocation8 + $0xe84] ss:$16 sps:$4 sm:$0xff]  }
 0x2f7   :  { %7294 = vmatpush2.bf16.msra.mxu0 %v9126_v22 }
 0x2f8   :  { %7295 = vmatprep.subr.bf16.mxu0 %v9134_v40  ;;  %v9170_v40 = vld [vmem:[#allocation8 + $0xc64] ss:$16 sps:$4 sm:$0xff]  }
 0x2f9   :  { %7337 = vmatpush2.bf16.msra.mxu1 %v9129_v16  ;;  %v9165_v16 = vld [vmem:[#allocation8 + $0xe80] ss:$16 sps:$4 sm:$0xff]  }
 0x2fa   :  { %7338 = vmatprep.subr.bf16.mxu1 %v9137_v42 }
 0x2fb   :  { %7296 = vmatpush2.bf16.msra.mxu0 %v9132_v21  ;;  %v9173_v21 = vld [vmem:[#allocation8 + $0xe64] ss:$16 sps:$4 sm:$0xff]  }
 0x2fc   :  { %7297 = vmatprep.subr.bf16.mxu0 %v9140_v30  ;;  %v9171_v30 = vld [vmem:[#allocation8 + $0xe60] ss:$16 sps:$4 sm:$0xff]  }
 0x2fd   :  { %7339 = vmatpush2.bf16.msra.mxu1 %v9135_v25  ;;  %v9168_v25 = vld [vmem:[#allocation8 + $0xc60] ss:$16 sps:$4 sm:$0xff]  }
 0x2fe   :  { %7340 = vmatprep.subr.bf16.mxu1 %v9143_v29  ;;  %v9179_v29 = vld [vmem:[#allocation8 + $0xe44] ss:$16 sps:$4 sm:$0xff]  }
 0x2ff   :  { %7298 = vmatpush2.bf16.msra.mxu0 %v9138_v35  ;;  %v9177_v35 = vld [vmem:[#allocation8 + $0xe40] ss:$16 sps:$4 sm:$0xff]  }
 0x300   :  { %7353 = vmatprep.subr.bf16.mxu0 %v9146_v36  ;;  %v9180_v36 = vld [vmem:[#allocation8 + $0xc20] ss:$16 sps:$4 sm:$0xff]  }
 0x301   :  { %7341 = vmatpush2.bf16.msra.mxu1 %v9141_v26  ;;  %v9185_v26 = vld [vmem:[#allocation8 + $0xe24] ss:$16 sps:$4 sm:$0xff]  }
 0x302   :  { %7396 = vmatprep.subr.bf16.mxu1 %v9149_v37  ;;  %v10045_v13 = vpop.f32.mrf.mxu0  ;;  %7300 = vmatmul.mubr.bf16.vlgmr.msra.gmra.mxu0 %v9972_v12  ;;  %v9183_v37 = vld [vmem:[#allocation8 + $0xe20] ss:$16 sps:$4 sm:$0xff]  }
 0x303   :  { %7354 = vmatpush1.bf16.msra.mxu0 %v9144_v46  ;;  %7385 = vmatprep.mubr.bf16.mxu0 %v10043_v44  ;;  %v9191_v46 = vld [vmem:[#allocation8 + $0xe04] ss:$16 sps:$4 sm:$0xff]  }
 0x304   :  { %v10048_v45 = vpop.f32.mrf.mxu1  ;;  %7343 = vmatmul.mubr.bf16.vlgmr.msra.gmra.mxu1 %v10006_v20  ;;  %v3903_v6 = vpop.f32.mrf.mxu0  ;;  %7355 = vmatprep.subr.bf16.mxu0 %v9152_v43  ;;  %v9197_v43 = vld [vmem:[#allocation8 + $0xfe4] ss:$16 sps:$4 sm:$0xff]  }
 0x305   :  { %7397 = vmatpush1.bf16.msra.mxu1 %v9147_v15  ;;  %v3904_v54 = vadd.f32 %v3903_v6, %v668_v39  ;;  %v9189_v15 = vld [vmem:[#allocation8 + $0xe00] ss:$16 sps:$4 sm:$0xff]   ;;  %v9200_v6 = vld [vmem:[#allocation8 + $0xdc4] ss:$16 sps:$4 sm:$0xff]  }
 0x306   :  { %v3946_v57 = vpop.f32.mrf.mxu1  ;;  %7398 = vmatprep.subr.bf16.mxu1 %v9155_v10  ;;  %v10052_v55 = vpop.f32.mrf.mxu0  ;;  %v9192_v10 = vld [vmem:[#allocation8 + $0xde0] ss:$16 sps:$4 sm:$0xff]  }
 0x307   :  { %7356 = vmatpush1.bf16.msra.mxu0 %v9150_v47  ;;  %v3947_v24 = vadd.f32 %v3946_v57, %v3904_v54  ;;  %v9195_v47 = vld [vmem:[#allocation8 + $0xfe0] ss:$16 sps:$4 sm:$0xff]   ;;  %v9206_v57 = vld [vmem:[#allocation8 + $0xda4] ss:$16 sps:$4 sm:$0xff]  }
 0x308   :  { %v10054_v32 = vpop.f32.mrf.mxu1  ;;  %v3907_v59 = vpop.f32.mrf.mxu0  ;;  %7357 = vmatprep.subr.bf16.mxu0 %v9158_v49  ;;  %v9198_v49 = vld [vmem:[#allocation8 + $0xdc0] ss:$16 sps:$4 sm:$0xff]  }
 0x309   :  { %7399 = vmatpush1.bf16.msra.mxu1 %v9153_v61  ;;  %v3908_v2 = vadd.f32 %v3907_v59, %v668_v39  ;;  %v3968_v42 = vmax.f32 %v3947_v24, 0.0  ;;  %v9194_v39 = vld [vmem:[#allocation8 + $0xde4] ss:$16 sps:$4 sm:$0xff]   ;;  %v9201_v54 = vld [vmem:[#allocation8 + $0xfc0] ss:$16 sps:$4 sm:$0xff]  }
 0x30a   :  { %7400 = vmatprep.subr.bf16.mxu1 %v9161_v50  ;;  %v3950_v38 = vpop.f32.mrf.mxu1  ;;  %v9203_v61 = vld [vmem:[#allocation8 + $0xfc4] ss:$16 sps:$4 sm:$0xff]   ;;  %v9207_v59 = vld [vmem:[#allocation8 + $0xfa0] ss:$16 sps:$4 sm:$0xff]  }
 0x30b   :  { %v3951_v22 = vadd.f32 %v3950_v38, %v3908_v2  ;;  %7358 = vmatpush1.bf16.msra.mxu0 %v9156_v17  ;;  %v9209_v50 = vld [vmem:[#allocation8 + $0xfa4] ss:$16 sps:$4 sm:$0xff]   ;;  %v9204_v17 = vld [vmem:[#allocation8 + $0xda0] ss:$16 sps:$4 sm:$0xff]  }
 0x30c   :  { %7359 = vmatprep.subr.bf16.mxu0 %v9164_v8  ;;  %v9215_v8 = vld [vmem:[#allocation8 + $0xf84] ss:$16 sps:$4 sm:$0xff]   ;;  %v9210_v24 = vld [vmem:[#allocation8 + $0xd80] ss:$16 sps:$4 sm:$0xff]  }
 0x30d   :  { %7401 = vmatpush1.bf16.msra.mxu1 %v9159_v60  ;;  %v3984_v19 = vmax.f32 %v3951_v22, 0.0  ;;  %v9212_v60 = vld [vmem:[#allocation8 + $0xd84] ss:$16 sps:$4 sm:$0xff]   ;;  %v9213_v2 = vld [vmem:[#allocation8 + $0xf80] ss:$16 sps:$4 sm:$0xff]  }
 0x30e   :  { %7402 = vmatprep.subr.bf16.mxu1 %v9167_v3  ;;  %v9218_v3 = vld [vmem:[#allocation8 + $0xd64] ss:$16 sps:$4 sm:$0xff]   ;;  %v9216_v22 = vld [vmem:[#allocation8 + $0xd60] ss:$16 sps:$4 sm:$0xff]  }
 0x30f   :  { %v10056_v5 = vpack.c.bf16 %v3984_v19, %v3968_v42  ;;  %7360 = vmatpush1.bf16.msra.mxu0 %v9162_v4  ;;  %v9221_v38 = vld [vmem:[#allocation8 + $0xf64] ss:$16 sps:$4 sm:$0xff]   ;;  %v9219_v4 = vld [vmem:[#allocation8 + $0xf60] ss:$16 sps:$4 sm:$0xff]   ;;  %v9636_v42 = vld [vmem:[#allocation7 + $0x8] sm:$0xff] }
 0x310   :  { %7361 = vmatprep.subr.bf16.mxu0 %v9170_v40  ;;  %v9227_v40 = vld [vmem:[#allocation8 + $0xf44] ss:$16 sps:$4 sm:$0xff]   ;;  %v664_v19 = vrot.slane %v9636_v42, %v631_v1  ;;  %v9284_v42 = vld [vmem:[#allocation8 + $0xc] ss:$16 sps:$4 sm:$0xff]  }
 0x311   :  { %7403 = vmatpush1.bf16.msra.mxu1 %v9165_v16  ;;  %7428 = vmatprep.mubr.bf16.mxu1 %v10056_v5  ;;  %v9224_v16 = vld [vmem:[#allocation8 + $0xd44] ss:$16 sps:$4 sm:$0xff]  }
 0x312   :  { %7404 = vmatprep.subr.bf16.mxu1 %v9173_v21  ;;  %v9222_v21 = vld [vmem:[#allocation8 + $0xd40] ss:$16 sps:$4 sm:$0xff]   ;;  %v9239_v1 = vld [vmem:[#allocation8 + $0xf04] ss:$16 sps:$4 sm:$0xff]  }
 0x313   :  { %7362 = vmatpush1.bf16.msra.mxu0 %v9168_v25  ;;  %v9225_v25 = vld [vmem:[#allocation8 + $0xf40] ss:$16 sps:$4 sm:$0xff]  }
 0x314   :  { %7363 = vmatprep.subr.bf16.mxu0 %v9176_v27  ;;  %v3906_v27 = vadd.f32 %v10052_v55, %v664_v19  ;;  %v9237_v55 = vld [vmem:[#allocation8 + $0xf00] ss:$16 sps:$4 sm:$0xff]  }
 0x315   :  { %7405 = vmatpush1.bf16.msra.mxu1 %v9171_v30  ;;  %v9230_v30 = vld [vmem:[#allocation8 + $0xd24] ss:$16 sps:$4 sm:$0xff]  }
 0x316   :  { %7406 = vmatprep.subr.bf16.mxu1 %v9179_v29  ;;  %v9233_v29 = vld [vmem:[#allocation8 + $0xf24] ss:$16 sps:$4 sm:$0xff]   ;;  %v3949_v18 = vadd.f32 %v10054_v32, %v3906_v27  ;;  %v9293_v27 = vld [vmem:[#allocation8 + $0x3ec] ss:$16 sps:$4 sm:$0xff]  }
 0x317   :  { %7364 = vmatpush1.bf16.msra.mxu0 %v9174_v34  ;;  %v3902_v34 = vadd.f32 %v10045_v13, %v664_v19  ;;  %v9245_v13 = vld [vmem:[#allocation8 + $0x2ec] ss:$16 sps:$4 sm:$0xff]  }
 0x318   :  { %7365 = vmatprep.subr.bf16.mxu0 %v9182_v31  ;;  %v9231_v31 = vld [vmem:[#allocation8 + $0xf20] ss:$16 sps:$4 sm:$0xff]   ;;  %v9287_v19 = vld [vmem:[#allocation8 + $0x20c] ss:$16 sps:$4 sm:$0xff]  }
 0x319   :  { %7407 = vmatpush1.bf16.msra.mxu1 %v9177_v35  ;;  %v9228_v35 = vld [vmem:[#allocation8 + $0xd20] ss:$16 sps:$4 sm:$0xff]  }
 0x31a   :  { %7408 = vmatprep.subr.bf16.mxu1 %v9185_v26  ;;  %v9236_v26 = vld [vmem:[#allocation8 + $0xd04] ss:$16 sps:$4 sm:$0xff]  }
 0x31b   :  { %7366 = vmatpush1.bf16.msra.mxu0 %v9180_v36  ;;  %v3945_v36 = vadd.f32 %v10048_v45, %v3902_v34  ;;  %v9251_v45 = vld [vmem:[#allocation8 + $0x2cc] ss:$16 sps:$4 sm:$0xff]   ;;  %v9291_v34 = vld [vmem:[#allocation8 + $0x3e8] ss:$16 sps:$4 sm:$0xff]  }
 0x31c   :  { %7367 = vmatprep.subr.bf16.mxu0 %v9188_v9  ;;  %v9242_v9 = vld [vmem:[#allocation8 + $0xec] ss:$16 sps:$4 sm:$0xff]  }
 0x31d   :  { %7409 = vmatpush1.bf16.msra.mxu1 %v9183_v37  ;;  %v9234_v37 = vld [vmem:[#allocation8 + $0xd00] ss:$16 sps:$4 sm:$0xff]  }
 0x31e   :  { %7410 = vmatprep.subr.bf16.mxu1 %v9191_v46  ;;  %v3983_v46 = vmax.f32 %v3949_v18, 0.0  ;;  %v9297_v18 = vld [vmem:[#allocation8 + $0x3c8] ss:$16 sps:$4 sm:$0xff]  }
 0x31f   :  { %7368 = vmatpush1.bf16.msra.mxu0 %v9186_v0  ;;  %v3967_v0 = vmax.f32 %v3945_v36, 0.0  ;;  %v9305_v36 = vld [vmem:[#allocation8 + $0x3ac] ss:$16 sps:$4 sm:$0xff]  }
 0x320   :  { %7369 = vmatprep.subr.bf16.mxu0 %v9194_v39  ;;  %v9243_v39 = vld [vmem:[#allocation8 + $0x2e8] ss:$16 sps:$4 sm:$0xff]  }
 0x321   :  { %7411 = vmatpush1.bf16.msra.mxu1 %v9189_v15  ;;  %v9240_v15 = vld [vmem:[#allocation8 + $0xe8] ss:$16 sps:$4 sm:$0xff]   ;;  %v10065_v32 = vpack.c.bf16 %v3983_v46, %v3967_v0  ;;  %v9311_v46 = vld [vmem:[#allocation8 + $0x38c] ss:$16 sps:$4 sm:$0xff]  }
 0x322   :  { %7412 = vmatprep.subr.bf16.mxu1 %v9197_v43  ;;  %v9248_v43 = vld [vmem:[#allocation8 + $0xcc] ss:$16 sps:$4 sm:$0xff]   ;;  %v9309_v0 = vld [vmem:[#allocation8 + $0x388] ss:$16 sps:$4 sm:$0xff]  }
 0x323   :  { %7370 = vmatpush2.bf16.msra.mxu0 %v9192_v10  ;;  %v9246_v10 = vld [vmem:[#allocation8 + $0xc8] ss:$16 sps:$4 sm:$0xff]  }
 0x324   :  { %7371 = vmatprep.subr.bf16.mxu0 %v9200_v6  ;;  %v9254_v6 = vld [vmem:[#allocation8 + $0xac] ss:$16 sps:$4 sm:$0xff]  }
 0x325   :  { %7413 = vmatpush2.bf16.msra.mxu1 %v9195_v47  ;;  %v9249_v47 = vld [vmem:[#allocation8 + $0x2c8] ss:$16 sps:$4 sm:$0xff]  }
 0x326   :  { %7414 = vmatprep.subr.bf16.mxu1 %v9203_v61  ;;  %v9257_v61 = vld [vmem:[#allocation8 + $0x2ac] ss:$16 sps:$4 sm:$0xff]  }
 0x327   :  { %7372 = vmatpush2.bf16.msra.mxu0 %v9198_v49  ;;  %v9252_v49 = vld [vmem:[#allocation8 + $0xa8] ss:$16 sps:$4 sm:$0xff]  }
 0x328   :  { %7373 = vmatprep.subr.bf16.mxu0 %v9206_v57  ;;  %v9260_v57 = vld [vmem:[#allocation8 + $0x8c] ss:$16 sps:$4 sm:$0xff]  }
 0x329   :  { %7415 = vmatpush2.bf16.msra.mxu1 %v9201_v54  ;;  %v9255_v54 = vld [vmem:[#allocation8 + $0x2a8] ss:$16 sps:$4 sm:$0xff]  }
 0x32a   :  { %7416 = vmatprep.subr.bf16.mxu1 %v9209_v50  ;;  %v9263_v50 = vld [vmem:[#allocation8 + $0x28c] ss:$16 sps:$4 sm:$0xff]  }
 0x32b   :  { %7374 = vmatpush2.bf16.msra.mxu0 %v9204_v17  ;;  %v9258_v17 = vld [vmem:[#allocation8 + $0x88] ss:$16 sps:$4 sm:$0xff]  }
 0x32c   :  { %7375 = vmatprep.subr.bf16.mxu0 %v9212_v60  ;;  %v9269_v60 = vld [vmem:[#allocation8 + $0x26c] ss:$16 sps:$4 sm:$0xff]  }
 0x32d   :  { %7417 = vmatpush2.bf16.msra.mxu1 %v9207_v59  ;;  %v9266_v59 = vld [vmem:[#allocation8 + $0x6c] ss:$16 sps:$4 sm:$0xff]  }
 0x32e   :  { %7418 = vmatprep.subr.bf16.mxu1 %v9215_v8  ;;  %v9267_v8 = vld [vmem:[#allocation8 + $0x268] ss:$16 sps:$4 sm:$0xff]  }
 0x32f   :  { %7376 = vmatpush2.bf16.msra.mxu0 %v9210_v24  ;;  %v9272_v24 = vld [vmem:[#allocation8 + $0x4c] ss:$16 sps:$4 sm:$0xff]  }
 0x330   :  { %7377 = vmatprep.subr.bf16.mxu0 %v9218_v3  ;;  %v9270_v3 = vld [vmem:[#allocation8 + $0x48] ss:$16 sps:$4 sm:$0xff]  }
 0x331   :  { %7419 = vmatpush2.bf16.msra.mxu1 %v9213_v2  ;;  %v9275_v2 = vld [vmem:[#allocation8 + $0x24c] ss:$16 sps:$4 sm:$0xff]  }
 0x332   :  { %7420 = vmatprep.subr.bf16.mxu1 %v9221_v38  ;;  %v9273_v38 = vld [vmem:[#allocation8 + $0x248] ss:$16 sps:$4 sm:$0xff]  }
 0x333   :  { %7378 = vmatpush2.bf16.msra.mxu0 %v9216_v22  ;;  %v9278_v22 = vld [vmem:[#allocation8 + $0x2c] ss:$16 sps:$4 sm:$0xff]  }
 0x334   :  { %7379 = vmatprep.subr.bf16.mxu0 %v9224_v16  ;;  %v9276_v16 = vld [vmem:[#allocation8 + $0x28] ss:$16 sps:$4 sm:$0xff]  }
 0x335   :  { %7421 = vmatpush2.bf16.msra.mxu1 %v9219_v4  ;;  %v9281_v4 = vld [vmem:[#allocation8 + $0x22c] ss:$16 sps:$4 sm:$0xff]  }
 0x336   :  { %7422 = vmatprep.subr.bf16.mxu1 %v9227_v40  ;;  %v9279_v40 = vld [vmem:[#allocation8 + $0x228] ss:$16 sps:$4 sm:$0xff]  }
 0x337   :  { %7380 = vmatpush2.bf16.msra.mxu0 %v9222_v21  ;;  %v9282_v21 = vld [vmem:[#allocation8 + $0x8] ss:$16 sps:$4 sm:$0xff]  }
 0x338   :  { %7381 = vmatprep.subr.bf16.mxu0 %v9230_v30  ;;  %v9290_v30 = vld [vmem:[#allocation8 + $0x1ec] ss:$16 sps:$4 sm:$0xff]  }
 0x339   :  { %7423 = vmatpush2.bf16.msra.mxu1 %v9225_v25  ;;  %v9285_v25 = vld [vmem:[#allocation8 + $0x208] ss:$16 sps:$4 sm:$0xff]  }
 0x33a   :  { %7424 = vmatprep.subr.bf16.mxu1 %v9233_v29  ;;  %v9288_v29 = vld [vmem:[#allocation8 + $0x1e8] ss:$16 sps:$4 sm:$0xff]  }
 0x33b   :  { %7382 = vmatpush2.bf16.msra.mxu0 %v9228_v35  ;;  %v9296_v35 = vld [vmem:[#allocation8 + $0x1cc] ss:$16 sps:$4 sm:$0xff]  }
 0x33c   :  { %7383 = vmatprep.subr.bf16.mxu0 %v9236_v26  ;;  %v9294_v26 = vld [vmem:[#allocation8 + $0x1c8] ss:$16 sps:$4 sm:$0xff]  }
 0x33d   :  { %7425 = vmatpush2.bf16.msra.mxu1 %v9231_v31  ;;  %v9299_v31 = vld [vmem:[#allocation8 + $0x3cc] ss:$16 sps:$4 sm:$0xff]  }
 0x33e   :  { %7426 = vmatprep.subr.bf16.mxu1 %v9239_v1  ;;  %v9302_v1 = vld [vmem:[#allocation8 + $0x1ac] ss:$16 sps:$4 sm:$0xff]  }
 0x33f   :  { %7384 = vmatpush2.bf16.msra.mxu0 %v9234_v37  ;;  %v9300_v37 = vld [vmem:[#allocation8 + $0x1a8] ss:$16 sps:$4 sm:$0xff]  }
 0x340   :  { %7439 = vmatprep.subr.bf16.mxu0 %v9242_v9  ;;  %v9308_v9 = vld [vmem:[#allocation8 + $0x18c] ss:$16 sps:$4 sm:$0xff]  }
 0x341   :  { %7427 = vmatpush2.bf16.msra.mxu1 %v9237_v55  ;;  %v9303_v55 = vld [vmem:[#allocation8 + $0x3a8] ss:$16 sps:$4 sm:$0xff]  }
 0x342   :  { %7482 = vmatprep.subr.bf16.mxu1 %v9245_v13  ;;  %7386 = vmatmul.mubr.bf16.vlgmr.msra.gmra.mxu0 %v10033_v51  ;;  %v9306_v13 = vld [vmem:[#allocation8 + $0x188] ss:$16 sps:$4 sm:$0xff]  }
 0x343   :  { %7440 = vmatpush1.bf16.msra.mxu0 %v9240_v15  ;;  %7471 = vmatprep.mubr.bf16.mxu0 %v9962_v52  ;;  %v9261_v52 = vld [vmem:[#allocation8 + $0x288] ss:$16 sps:$4 sm:$0xff]   ;;  %v9314_v15 = vld [vmem:[#allocation8 + $0x16c] ss:$16 sps:$4 sm:$0xff]  }
 0x344   :  { %7429 = vmatmul.mubr.bf16.vlgmr.msra.gmra.mxu1 %v10065_v32  ;;  %7441 = vmatprep.subr.bf16.mxu0 %v9248_v43  ;;  %v9312_v43 = vld [vmem:[#allocation8 + $0x168] ss:$16 sps:$4 sm:$0xff]  }
 0x345   :  { %7483 = vmatpush1.bf16.msra.mxu1 %v9243_v39  ;;  %7514 = vmatprep.mubr.bf16.mxu1 %v9964_v62  ;;  %v9264_v62 = vld [vmem:[#allocation8 + $0x68] ss:$16 sps:$4 sm:$0xff]   ;;  %v9317_v39 = vld [vmem:[#allocation8 + $0x36c] ss:$16 sps:$4 sm:$0xff]  }
 0x346   :  { %7484 = vmatprep.subr.bf16.mxu1 %v9251_v45  ;;  %v9315_v45 = vld [vmem:[#allocation8 + $0x368] ss:$16 sps:$4 sm:$0xff]  }
 0x347   :  { %7442 = vmatpush1.bf16.msra.mxu0 %v9246_v10  ;;  %v9320_v10 = vld [vmem:[#allocation8 + $0x14c] ss:$16 sps:$4 sm:$0xff]  }
 0x348   :  { %7443 = vmatprep.subr.bf16.mxu0 %v9254_v6  ;;  %v9318_v6 = vld [vmem:[#allocation8 + $0x148] ss:$16 sps:$4 sm:$0xff]  }
 0x349   :  { %7485 = vmatpush1.bf16.msra.mxu1 %v9249_v47  ;;  %v9323_v47 = vld [vmem:[#allocation8 + $0x34c] ss:$16 sps:$4 sm:$0xff]  }
 0x34a   :  { %7486 = vmatprep.subr.bf16.mxu1 %v9257_v61  ;;  %v9321_v61 = vld [vmem:[#allocation8 + $0x348] ss:$16 sps:$4 sm:$0xff]  }
 0x34b   :  { %7444 = vmatpush1.bf16.msra.mxu0 %v9252_v49  ;;  %v9326_v49 = vld [vmem:[#allocation8 + $0x12c] ss:$16 sps:$4 sm:$0xff]  }
 0x34c   :  { %7445 = vmatprep.subr.bf16.mxu0 %v9260_v57  ;;  %v9324_v57 = vld [vmem:[#allocation8 + $0x128] ss:$16 sps:$4 sm:$0xff]  }
 0x34d   :  { %7487 = vmatpush1.bf16.msra.mxu1 %v9255_v54  ;;  %v9329_v54 = vld [vmem:[#allocation8 + $0x32c] ss:$16 sps:$4 sm:$0xff]  }
 0x34e   :  { %7488 = vmatprep.subr.bf16.mxu1 %v9263_v50  ;;  %v9327_v50 = vld [vmem:[#allocation8 + $0x328] ss:$16 sps:$4 sm:$0xff]  }
 0x34f   :  { %7446 = vmatpush1.bf16.msra.mxu0 %v9258_v17  ;;  %v9332_v17 = vld [vmem:[#allocation8 + $0x10c] ss:$16 sps:$4 sm:$0xff]  }
 0x350   :  { %7447 = vmatprep.subr.bf16.mxu0 %v9266_v59  ;;  %v9330_v59 = vld [vmem:[#allocation8 + $0x108] ss:$16 sps:$4 sm:$0xff]  }
 0x351   :  { %7489 = vmatpush1.bf16.msra.mxu1 %v9261_v52  ;;  %v9335_v52 = vld [vmem:[#allocation8 + $0x30c] ss:$16 sps:$4 sm:$0xff]  }
 0x352   :  { %7490 = vmatprep.subr.bf16.mxu1 %v9269_v60  ;;  %v9333_v60 = vld [vmem:[#allocation8 + $0x308] ss:$16 sps:$4 sm:$0xff]  }
 0x353   :  { %7448 = vmatpush1.bf16.msra.mxu0 %v9264_v62  ;;  %v9338_v62 = vld [vmem:[#allocation8 + $0x4ec] ss:$16 sps:$4 sm:$0xff]  }
 0x354   :  { %7449 = vmatprep.subr.bf16.mxu0 %v9272_v24  ;;  %v9336_v24 = vld [vmem:[#allocation8 + $0x4e8] ss:$16 sps:$4 sm:$0xff]  }
 0x355   :  { %7491 = vmatpush1.bf16.msra.mxu1 %v9267_v8  ;;  %v9341_v8 = vld [vmem:[#allocation8 + $0x6ec] ss:$16 sps:$4 sm:$0xff]  }
 0x356   :  { %7492 = vmatprep.subr.bf16.mxu1 %v9275_v2  ;;  %v9339_v2 = vld [vmem:[#allocation8 + $0x6e8] ss:$16 sps:$4 sm:$0xff]  }
 0x357   :  { %7450 = vmatpush1.bf16.msra.mxu0 %v9270_v3  ;;  %v9344_v3 = vld [vmem:[#allocation8 + $0x4cc] ss:$16 sps:$4 sm:$0xff]  }
 0x358   :  { %7451 = vmatprep.subr.bf16.mxu0 %v9278_v22  ;;  %v9342_v22 = vld [vmem:[#allocation8 + $0x4c8] ss:$16 sps:$4 sm:$0xff]  }
 0x359   :  { %7493 = vmatpush1.bf16.msra.mxu1 %v9273_v38  ;;  %v9347_v38 = vld [vmem:[#allocation8 + $0x6cc] ss:$16 sps:$4 sm:$0xff]  }
 0x35a   :  { %7494 = vmatprep.subr.bf16.mxu1 %v9281_v4  ;;  %v9345_v4 = vld [vmem:[#allocation8 + $0x6c8] ss:$16 sps:$4 sm:$0xff]  }
 0x35b   :  { %7452 = vmatpush1.bf16.msra.mxu0 %v9276_v16  ;;  %v9350_v16 = vld [vmem:[#allocation8 + $0x4ac] ss:$16 sps:$4 sm:$0xff]  }
 0x35c   :  { %7453 = vmatprep.subr.bf16.mxu0 %v9284_v42  ;;  %v9348_v42 = vld [vmem:[#allocation8 + $0x4a8] ss:$16 sps:$4 sm:$0xff]  }
 0x35d   :  { %7495 = vmatpush1.bf16.msra.mxu1 %v9279_v40  ;;  %v9353_v40 = vld [vmem:[#allocation8 + $0x6ac] ss:$16 sps:$4 sm:$0xff]  }
 0x35e   :  { %7496 = vmatprep.subr.bf16.mxu1 %v9287_v19  ;;  %v9356_v19 = vld [vmem:[#allocation8 + $0x48c] ss:$16 sps:$4 sm:$0xff]  }
 0x35f   :  { %7454 = vmatpush1.bf16.msra.mxu0 %v9282_v21  ;;  %v9354_v21 = vld [vmem:[#allocation8 + $0x488] ss:$16 sps:$4 sm:$0xff]  }
 0x360   :  { %7455 = vmatprep.subr.bf16.mxu0 %v9290_v30  ;;  %v9365_v30 = vld [vmem:[#allocation8 + $0x66c] ss:$16 sps:$4 sm:$0xff]  }
 0x361   :  { %7497 = vmatpush1.bf16.msra.mxu1 %v9285_v25  ;;  %v9362_v25 = vld [vmem:[#allocation8 + $0x46c] ss:$16 sps:$4 sm:$0xff]  }
 0x362   :  { %7498 = vmatprep.subr.bf16.mxu1 %v9293_v27  ;;  %v9363_v27 = vld [vmem:[#allocation8 + $0x668] ss:$16 sps:$4 sm:$0xff]  }
 0x363   :  { %7456 = vmatpush2.bf16.msra.mxu0 %v9288_v29  ;;  %v9368_v29 = vld [vmem:[#allocation8 + $0x44c] ss:$16 sps:$4 sm:$0xff]  }
 0x364   :  { %7457 = vmatprep.subr.bf16.mxu0 %v9296_v35  ;;  %v9366_v35 = vld [vmem:[#allocation8 + $0x448] ss:$16 sps:$4 sm:$0xff]  }
 0x365   :  { %7499 = vmatpush2.bf16.msra.mxu1 %v9291_v34  ;;  %v9371_v34 = vld [vmem:[#allocation8 + $0x64c] ss:$16 sps:$4 sm:$0xff]  }
 0x366   :  { %7500 = vmatprep.subr.bf16.mxu1 %v9299_v31  ;;  %v9369_v31 = vld [vmem:[#allocation8 + $0x648] ss:$16 sps:$4 sm:$0xff]  }
 0x367   :  { %7458 = vmatpush2.bf16.msra.mxu0 %v9294_v26  ;;  %v9374_v26 = vld [vmem:[#allocation8 + $0x42c] ss:$16 sps:$4 sm:$0xff]  }
 0x368   :  { %7459 = vmatprep.subr.bf16.mxu0 %v9302_v1  ;;  %v9372_v1 = vld [vmem:[#allocation8 + $0x428] ss:$16 sps:$4 sm:$0xff]  }
 0x369   :  { %7501 = vmatpush2.bf16.msra.mxu1 %v9297_v18  ;;  %v9377_v18 = vld [vmem:[#allocation8 + $0x62c] ss:$16 sps:$4 sm:$0xff]  }
 0x36a   :  { %7502 = vmatprep.subr.bf16.mxu1 %v9305_v36  ;;  %v9375_v36 = vld [vmem:[#allocation8 + $0x628] ss:$16 sps:$4 sm:$0xff]  }
 0x36b   :  { %7460 = vmatpush2.bf16.msra.mxu0 %v9300_v37  ;;  %v9380_v37 = vld [vmem:[#allocation8 + $0x40c] ss:$16 sps:$4 sm:$0xff]  }
 0x36c   :  { %7461 = vmatprep.subr.bf16.mxu0 %v9308_v9  ;;  %v9378_v9 = vld [vmem:[#allocation8 + $0x408] ss:$16 sps:$4 sm:$0xff]  }
 0x36d   :  { %7503 = vmatpush2.bf16.msra.mxu1 %v9303_v55  ;;  %v9383_v55 = vld [vmem:[#allocation8 + $0x60c] ss:$16 sps:$4 sm:$0xff]  }
 0x36e   :  { %7504 = vmatprep.subr.bf16.mxu1 %v9311_v46  ;;  %v9381_v46 = vld [vmem:[#allocation8 + $0x608] ss:$16 sps:$4 sm:$0xff]  }
 0x36f   :  { %7462 = vmatpush2.bf16.msra.mxu0 %v9306_v13  ;;  %v9386_v13 = vld [vmem:[#allocation8 + $0x5ec] ss:$16 sps:$4 sm:$0xff]  }
 0x370   :  { %7463 = vmatprep.subr.bf16.mxu0 %v9314_v15  ;;  %v9384_v15 = vld [vmem:[#allocation8 + $0x5e8] ss:$16 sps:$4 sm:$0xff]  }
 0x371   :  { %7505 = vmatpush2.bf16.msra.mxu1 %v9309_v0  ;;  %v9389_v0 = vld [vmem:[#allocation8 + $0x7ec] ss:$16 sps:$4 sm:$0xff]  }
 0x372   :  { %7506 = vmatprep.subr.bf16.mxu1 %v9317_v39  ;;  %v9387_v39 = vld [vmem:[#allocation8 + $0x7e8] ss:$16 sps:$4 sm:$0xff]  }
 0x373   :  { %7464 = vmatpush2.bf16.msra.mxu0 %v9312_v43  ;;  %v9392_v43 = vld [vmem:[#allocation8 + $0x5cc] ss:$16 sps:$4 sm:$0xff]  }
 0x374   :  { %7465 = vmatprep.subr.bf16.mxu0 %v9320_v10  ;;  %v9390_v10 = vld [vmem:[#allocation8 + $0x5c8] ss:$16 sps:$4 sm:$0xff]  }
 0x375   :  { %7507 = vmatpush2.bf16.msra.mxu1 %v9315_v45  ;;  %v9395_v45 = vld [vmem:[#allocation8 + $0x7cc] ss:$16 sps:$4 sm:$0xff]  }
 0x376   :  { %7508 = vmatprep.subr.bf16.mxu1 %v9323_v47  ;;  %v9393_v47 = vld [vmem:[#allocation8 + $0x7c8] ss:$16 sps:$4 sm:$0xff]  }
 0x377   :  { %7466 = vmatpush2.bf16.msra.mxu0 %v9318_v6  ;;  %v9398_v6 = vld [vmem:[#allocation8 + $0x5ac] ss:$16 sps:$4 sm:$0xff]  }
 0x378   :  { %7467 = vmatprep.subr.bf16.mxu0 %v9326_v49  ;;  %v9396_v49 = vld [vmem:[#allocation8 + $0x5a8] ss:$16 sps:$4 sm:$0xff]  }
 0x379   :  { %7509 = vmatpush2.bf16.msra.mxu1 %v9321_v61  ;;  %v9401_v61 = vld [vmem:[#allocation8 + $0x7ac] ss:$16 sps:$4 sm:$0xff]  }
 0x37a   :  { %7510 = vmatprep.subr.bf16.mxu1 %v9329_v54  ;;  %v9399_v54 = vld [vmem:[#allocation8 + $0x7a8] ss:$16 sps:$4 sm:$0xff]  }
 0x37b   :  { %7468 = vmatpush2.bf16.msra.mxu0 %v9324_v57  ;;  %v9404_v57 = vld [vmem:[#allocation8 + $0x58c] ss:$16 sps:$4 sm:$0xff]  }
 0x37c   :  { %7469 = vmatprep.subr.bf16.mxu0 %v9332_v17  ;;  %v9402_v17 = vld [vmem:[#allocation8 + $0x588] ss:$16 sps:$4 sm:$0xff]  }
 0x37d   :  { %7511 = vmatpush2.bf16.msra.mxu1 %v9327_v50  ;;  %v9407_v50 = vld [vmem:[#allocation8 + $0x78c] ss:$16 sps:$4 sm:$0xff]  }
 0x37e   :  { %7512 = vmatprep.subr.bf16.mxu1 %v9335_v52  ;;  %v9405_v52 = vld [vmem:[#allocation8 + $0x788] ss:$16 sps:$4 sm:$0xff]  }
 0x37f   :  { %7470 = vmatpush2.bf16.msra.mxu0 %v9330_v59  ;;  %v9410_v59 = vld [vmem:[#allocation8 + $0x56c] ss:$16 sps:$4 sm:$0xff]  }
 0x380   :  { %7525 = vmatprep.subr.bf16.mxu0 %v9338_v62  ;;  %v9408_v62 = vld [vmem:[#allocation8 + $0x568] ss:$16 sps:$4 sm:$0xff]  }
 0x381   :  { %7513 = vmatpush2.bf16.msra.mxu1 %v9333_v60  ;;  %v9413_v60 = vld [vmem:[#allocation8 + $0x76c] ss:$16 sps:$4 sm:$0xff]  }
 0x382   :  { %7568 = vmatprep.subr.bf16.mxu1 %v9341_v8  ;;  %7472 = vmatmul.mubr.bf16.vlgmr.msra.gmra.mxu0 %v9869_v14  ;;  %v9351_v14 = vld [vmem:[#allocation8 + $0x6a8] ss:$16 sps:$4 sm:$0xff]  }
 0x383   :  { %7526 = vmatpush1.bf16.msra.mxu0 %v9336_v24  ;;  %7557 = vmatprep.mubr.bf16.mxu0 %v9994_v11  ;;  %v9357_v11 = vld [vmem:[#allocation8 + $0x688] ss:$16 sps:$4 sm:$0xff]   ;;  %v9416_v24 = vld [vmem:[#allocation8 + $0x54c] ss:$16 sps:$4 sm:$0xff]  }
 0x384   :  { %7515 = vmatmul.mubr.bf16.vlgmr.msra.gmra.mxu1 %v9896_v48  ;;  %7527 = vmatprep.subr.bf16.mxu0 %v9344_v3  ;;  %v9359_v48 = vld [vmem:[#allocation8 + $0x68c] ss:$16 sps:$4 sm:$0xff]   ;;  %v9411_v8 = vld [vmem:[#allocation8 + $0x768] ss:$16 sps:$4 sm:$0xff]  }
 0x385   :  { %7569 = vmatpush1.bf16.msra.mxu1 %v9339_v2  ;;  %7600 = vmatprep.mubr.bf16.mxu1 %v9997_v23  ;;  %v9360_v23 = vld [vmem:[#allocation8 + $0x468] ss:$16 sps:$4 sm:$0xff]   ;;  %v9419_v2 = vld [vmem:[#allocation8 + $0x74c] ss:$16 sps:$4 sm:$0xff]  }
 0x386   :  { %7570 = vmatprep.subr.bf16.mxu1 %v9347_v38  ;;  %v9414_v3 = vld [vmem:[#allocation8 + $0x548] ss:$16 sps:$4 sm:$0xff]  }
 0x387   :  { %7528 = vmatpush1.bf16.msra.mxu0 %v9342_v22  ;;  %v9417_v38 = vld [vmem:[#allocation8 + $0x748] ss:$16 sps:$4 sm:$0xff]   ;;  %v9422_v22 = vld [vmem:[#allocation8 + $0x52c] ss:$16 sps:$4 sm:$0xff]  }
 0x388   :  { %7529 = vmatprep.subr.bf16.mxu0 %v9350_v16  ;;  %v9420_v16 = vld [vmem:[#allocation8 + $0x528] ss:$16 sps:$4 sm:$0xff]  }
 0x389   :  { %7571 = vmatpush1.bf16.msra.mxu1 %v9345_v4  ;;  %v9425_v4 = vld [vmem:[#allocation8 + $0x72c] ss:$16 sps:$4 sm:$0xff]  }
 0x38a   :  { %7572 = vmatprep.subr.bf16.mxu1 %v9353_v40  ;;  %v9423_v40 = vld [vmem:[#allocation8 + $0x728] ss:$16 sps:$4 sm:$0xff]  }
 0x38b   :  { %7530 = vmatpush1.bf16.msra.mxu0 %v9348_v42  ;;  %v9428_v42 = vld [vmem:[#allocation8 + $0x50c] ss:$16 sps:$4 sm:$0xff]  }
 0x38c   :  { %7531 = vmatprep.subr.bf16.mxu0 %v9356_v19  ;;  %v9426_v19 = vld [vmem:[#allocation8 + $0x508] ss:$16 sps:$4 sm:$0xff]  }
 0x38d   :  { %7573 = vmatpush1.bf16.msra.mxu1 %v9351_v14  ;;  %v9431_v14 = vld [vmem:[#allocation8 + $0x70c] ss:$16 sps:$4 sm:$0xff]  }
 0x38e   :  { %7574 = vmatprep.subr.bf16.mxu1 %v9359_v48  ;;  %v9429_v48 = vld [vmem:[#allocation8 + $0x708] ss:$16 sps:$4 sm:$0xff]  }
 0x38f   :  { %7532 = vmatpush1.bf16.msra.mxu0 %v9354_v21  ;;  %v9434_v21 = vld [vmem:[#allocation8 + $0x8ec] ss:$16 sps:$4 sm:$0xff]  }
 0x390   :  { %7533 = vmatprep.subr.bf16.mxu0 %v9362_v25  ;;  %v9432_v25 = vld [vmem:[#allocation8 + $0x8e8] ss:$16 sps:$4 sm:$0xff]  }
 0x391   :  { %7575 = vmatpush1.bf16.msra.mxu1 %v9357_v11  ;;  %v9437_v11 = vld [vmem:[#allocation8 + $0xaec] ss:$16 sps:$4 sm:$0xff]  }
 0x392   :  { %7576 = vmatprep.subr.bf16.mxu1 %v9365_v30  ;;  %v9435_v30 = vld [vmem:[#allocation8 + $0xae8] ss:$16 sps:$4 sm:$0xff]  }
 0x393   :  { %7534 = vmatpush1.bf16.msra.mxu0 %v9360_v23  ;;  %v9440_v23 = vld [vmem:[#allocation8 + $0x8cc] ss:$16 sps:$4 sm:$0xff]  }
 0x394   :  { %7535 = vmatprep.subr.bf16.mxu0 %v9368_v29  ;;  %v9438_v29 = vld [vmem:[#allocation8 + $0x8c8] ss:$16 sps:$4 sm:$0xff]  }
 0x395   :  { %7577 = vmatpush1.bf16.msra.mxu1 %v9363_v27  ;;  %v9443_v27 = vld [vmem:[#allocation8 + $0xacc] ss:$16 sps:$4 sm:$0xff]  }
 0x396   :  { %7578 = vmatprep.subr.bf16.mxu1 %v9371_v34  ;;  %v9441_v34 = vld [vmem:[#allocation8 + $0xac8] ss:$16 sps:$4 sm:$0xff]  }
 0x397   :  { %7536 = vmatpush1.bf16.msra.mxu0 %v9366_v35  ;;  %v9446_v35 = vld [vmem:[#allocation8 + $0x8ac] ss:$16 sps:$4 sm:$0xff]  }
 0x398   :  { %7537 = vmatprep.subr.bf16.mxu0 %v9374_v26  ;;  %v9444_v26 = vld [vmem:[#allocation8 + $0x8a8] ss:$16 sps:$4 sm:$0xff]  }
 0x399   :  { %7579 = vmatpush1.bf16.msra.mxu1 %v9369_v31  ;;  %v9449_v31 = vld [vmem:[#allocation8 + $0xaac] ss:$16 sps:$4 sm:$0xff]  }
 0x39a   :  { %7580 = vmatprep.subr.bf16.mxu1 %v9377_v18  ;;  %v9452_v18 = vld [vmem:[#allocation8 + $0x88c] ss:$16 sps:$4 sm:$0xff]  }
 0x39b   :  { %7538 = vmatpush1.bf16.msra.mxu0 %v9372_v1  ;;  %v9450_v1 = vld [vmem:[#allocation8 + $0x888] ss:$16 sps:$4 sm:$0xff]  }
 0x39c   :  { %7539 = vmatprep.subr.bf16.mxu0 %v9380_v37  ;;  %v9461_v37 = vld [vmem:[#allocation8 + $0xa6c] ss:$16 sps:$4 sm:$0xff]  }
 0x39d   :  { %7581 = vmatpush1.bf16.msra.mxu1 %v9375_v36  ;;  %v9458_v36 = vld [vmem:[#allocation8 + $0x86c] ss:$16 sps:$4 sm:$0xff]  }
 0x39e   :  { %7582 = vmatprep.subr.bf16.mxu1 %v9383_v55  ;;  %v9459_v55 = vld [vmem:[#allocation8 + $0xa68] ss:$16 sps:$4 sm:$0xff]  }
 0x39f   :  { %7540 = vmatpush1.bf16.msra.mxu0 %v9378_v9  ;;  %v9464_v9 = vld [vmem:[#allocation8 + $0x84c] ss:$16 sps:$4 sm:$0xff]  }
 0x3a0   :  { %7541 = vmatprep.subr.bf16.mxu0 %v9386_v13  ;;  %v9462_v13 = vld [vmem:[#allocation8 + $0x848] ss:$16 sps:$4 sm:$0xff]  }
 0x3a1   :  { %7583 = vmatpush1.bf16.msra.mxu1 %v9381_v46  ;;  %v9467_v46 = vld [vmem:[#allocation8 + $0xa4c] ss:$16 sps:$4 sm:$0xff]  }
 0x3a2   :  { %7584 = vmatprep.subr.bf16.mxu1 %v9389_v0  ;;  %v9465_v0 = vld [vmem:[#allocation8 + $0xa48] ss:$16 sps:$4 sm:$0xff]  }
 0x3a3   :  { %7542 = vmatpush2.bf16.msra.mxu0 %v9384_v15  ;;  %v9470_v15 = vld [vmem:[#allocation8 + $0x82c] ss:$16 sps:$4 sm:$0xff]  }
 0x3a4   :  { %7543 = vmatprep.subr.bf16.mxu0 %v9392_v43  ;;  %v9468_v43 = vld [vmem:[#allocation8 + $0x828] ss:$16 sps:$4 sm:$0xff]  }
 0x3a5   :  { %7585 = vmatpush2.bf16.msra.mxu1 %v9387_v39  ;;  %v9473_v39 = vld [vmem:[#allocation8 + $0xa2c] ss:$16 sps:$4 sm:$0xff]  }
 0x3a6   :  { %7586 = vmatprep.subr.bf16.mxu1 %v9395_v45  ;;  %v10079_v45 = vpop.f32.mrf.mxu0 }
 0x3a7   :  { %7544 = vmatpush2.bf16.msra.mxu0 %v9390_v10  ;;  %v9471_v10 = vld [vmem:[#allocation8 + $0xa28] ss:$16 sps:$4 sm:$0xff]  }
 0x3a8   :  { %7545 = vmatprep.subr.bf16.mxu0 %v9398_v6  ;;  %v10081_v6 = vpop.f32.mrf.mxu1 }
 0x3a9   :  { %7587 = vmatpush2.bf16.msra.mxu1 %v9393_v47  ;;  %v9476_v47 = vld [vmem:[#allocation8 + $0x80c] ss:$16 sps:$4 sm:$0xff]  }
 0x3aa   :  { %7588 = vmatprep.subr.bf16.mxu1 %v9401_v61  ;;  %v9479_v61 = vld [vmem:[#allocation8 + $0xa0c] ss:$16 sps:$4 sm:$0xff]  }
 0x3ab   :  { %7546 = vmatpush2.bf16.msra.mxu0 %v9396_v49  ;;  %v9474_v49 = vld [vmem:[#allocation8 + $0x808] ss:$16 sps:$4 sm:$0xff]  }
 0x3ac   :  { %7547 = vmatprep.subr.bf16.mxu0 %v9404_v57  ;;  %v9477_v57 = vld [vmem:[#allocation8 + $0xa08] ss:$16 sps:$4 sm:$0xff]  }
 0x3ad   :  { %7589 = vmatpush2.bf16.msra.mxu1 %v9399_v54  ;;  %v10083_v54 = vpop.f32.mrf.mxu0 }
 0x3ae   :  { %7590 = vmatprep.subr.bf16.mxu1 %v9407_v50  ;;  %v9482_v50 = vld [vmem:[#allocation8 + $0x9ec] ss:$16 sps:$4 sm:$0xff]  }
 0x3af   :  { %7548 = vmatpush2.bf16.msra.mxu0 %v9402_v17  ;;  %v10085_v17 = vpop.f32.mrf.mxu1 }
 0x3b0   :  { %7549 = vmatprep.subr.bf16.mxu0 %v9410_v59  ;;  %v9480_v59 = vld [vmem:[#allocation8 + $0x9e8] ss:$16 sps:$4 sm:$0xff]  }
 0x3b1   :  { %7591 = vmatpush2.bf16.msra.mxu1 %v9405_v52  ;;  %v9485_v52 = vld [vmem:[#allocation8 + $0xbec] ss:$16 sps:$4 sm:$0xff]  }
 0x3b2   :  { %7592 = vmatprep.subr.bf16.mxu1 %v9413_v60  ;;  %v10087_v60 = vpop.f32.mrf.mxu0 }
 0x3b3   :  { %7550 = vmatpush2.bf16.msra.mxu0 %v9408_v62  ;;  %v9483_v62 = vld [vmem:[#allocation8 + $0xbe8] ss:$16 sps:$4 sm:$0xff]  }
 0x3b4   :  { %7551 = vmatprep.subr.bf16.mxu0 %v9416_v24  ;;  %v10089_v24 = vpop.f32.mrf.mxu1 }
 0x3b5   :  { %7593 = vmatpush2.bf16.msra.mxu1 %v9411_v8  ;;  %v9488_v8 = vld [vmem:[#allocation8 + $0x9cc] ss:$16 sps:$4 sm:$0xff]  }
 0x3b6   :  { %7594 = vmatprep.subr.bf16.mxu1 %v9419_v2  ;;  %v9491_v2 = vld [vmem:[#allocation8 + $0xbcc] ss:$16 sps:$4 sm:$0xff]  }
 0x3b7   :  { %7552 = vmatpush2.bf16.msra.mxu0 %v9414_v3  ;;  %v9486_v3 = vld [vmem:[#allocation8 + $0x9c8] ss:$16 sps:$4 sm:$0xff]  }
 0x3b8   :  { %7553 = vmatprep.subr.bf16.mxu0 %v9422_v22  ;;  %v9489_v22 = vld [vmem:[#allocation8 + $0xbc8] ss:$16 sps:$4 sm:$0xff]  }
 0x3b9   :  { %7595 = vmatpush2.bf16.msra.mxu1 %v9417_v38  ;;  %v7135_v38 = vpop.f32.mrf.mxu0 }
 0x3ba   :  { %7596 = vmatprep.subr.bf16.mxu1 %v9425_v4  ;;  %v9494_v4 = vld [vmem:[#allocation8 + $0x9ac] ss:$16 sps:$4 sm:$0xff]  }
 0x3bb   :  { %7554 = vmatpush2.bf16.msra.mxu0 %v9420_v16  ;;  %v10091_v16 = vpop.f32.mrf.mxu1 }
 0x3bc   :  { %7555 = vmatprep.subr.bf16.mxu0 %v9428_v42  ;;  %v7215_v42 = vpop.f32.mrf.mxu0 }
 0x3bd   :  { %7597 = vmatpush2.bf16.msra.mxu1 %v9423_v40  ;;  %v9497_v40 = vld [vmem:[#allocation8 + $0xbac] ss:$16 sps:$4 sm:$0xff]  }
 0x3be   :  { %7598 = vmatprep.subr.bf16.mxu1 %v9431_v14  ;;  %v10093_v14 = vpop.f32.mrf.mxu1 }
 0x3bf   :  { %7556 = vmatpush2.bf16.msra.mxu0 %v9426_v19  ;;  %v9492_v19 = vld [vmem:[#allocation8 + $0x9a8] ss:$16 sps:$4 sm:$0xff]  }
 0x3c0   :  { %7611 = vmatprep.subr.bf16.mxu0 %v9434_v21  ;;  %v9500_v21 = vld [vmem:[#allocation8 + $0x98c] ss:$16 sps:$4 sm:$0xff]  }
 0x3c1   :  { %7599 = vmatpush2.bf16.msra.mxu1 %v9429_v48  ;;  %v9495_v48 = vld [vmem:[#allocation8 + $0xba8] ss:$16 sps:$4 sm:$0xff]  }
 0x3c2   :  { %7654 = vmatprep.subr.bf16.mxu1 %v9437_v11  ;;  %7558 = vmatmul.mubr.bf16.vlgmr.msra.gmra.mxu0 %v9916_v56  ;;  %v9447_v56 = vld [vmem:[#allocation8 + $0xaa8] ss:$16 sps:$4 sm:$0xff]   ;;  %v9503_v11 = vld [vmem:[#allocation8 + $0xb8c] ss:$16 sps:$4 sm:$0xff]  }
 0x3c3   :  { %7612 = vmatpush1.bf16.msra.mxu0 %v9432_v25  ;;  %7643 = vmatprep.mubr.bf16.mxu0 %v10021_v58  ;;  %v9453_v58 = vld [vmem:[#allocation8 + $0xa88] ss:$16 sps:$4 sm:$0xff]   ;;  %v10095_v25 = vld [vmem:[#allocation10] sm:$0xf] }
 0x3c4   :  { %7601 = vmatmul.mubr.bf16.vlgmr.msra.gmra.mxu1 %v9934_v7  ;;  %7613 = vmatprep.subr.bf16.mxu0 %v9440_v23  ;;  %v9455_v7 = vld [vmem:[#allocation8 + $0xa8c] ss:$16 sps:$4 sm:$0xff]   ;;  %v7260_v23 = vpop.f32.mrf.mxu1 }
 0x3c5   :  { %7655 = vmatpush1.bf16.msra.mxu1 %v9435_v30  ;;  %7686 = vmatprep.mubr.bf16.mxu1 %v10024_v41  ;;  %v9456_v41 = vld [vmem:[#allocation8 + $0x868] ss:$16 sps:$4 sm:$0xff]   ;;  %v7217_v30 = vpop.f32.mrf.mxu0 }
 0x3c6   :  { %7656 = vmatprep.subr.bf16.mxu1 %v9443_v27  ;;  %v9498_v27 = vld [vmem:[#allocation8 + $0x988] ss:$16 sps:$4 sm:$0xff]  }
 0x3c7   :  { %7614 = vmatpush1.bf16.msra.mxu0 %v9438_v29  ;;  %v9501_v29 = vld [vmem:[#allocation8 + $0xb88] ss:$16 sps:$4 sm:$0xff]  }
 0x3c8   :  { %7615 = vmatprep.subr.bf16.mxu0 %v9446_v35  ;;  %v4518_v35 = vrot.slane %v10095_v25, %v9857_v28 }
 0x3c9   :  { %7657 = vmatpush1.bf16.msra.mxu1 %v9441_v34  ;;  %v9506_v34 = vld [vmem:[#allocation8 + $0x96c] ss:$16 sps:$4 sm:$0xff]  }
 0x3ca   :  { %7658 = vmatprep.subr.bf16.mxu1 %v9449_v31  ;;  %v9509_v31 = vld [vmem:[#allocation8 + $0xb6c] ss:$16 sps:$4 sm:$0xff]  }
 0x3cb   :  { %7616 = vmatpush1.bf16.msra.mxu0 %v9444_v26  ;;  %v7219_v26 = vpop.f32.mrf.mxu0 }
 0x3cc   :  { %7617 = vmatprep.subr.bf16.mxu0 %v9452_v18  ;;  %v7262_v18 = vpop.f32.mrf.mxu1 }
 0x3cd   :  { %7659 = vmatpush1.bf16.msra.mxu1 %v9447_v56  ;;  %v4522_v56 = vrot.slane %v10095_v25, %v9937_v33  ;;  %v9513_v33 = vld [vmem:[#allocation8 + $0xb48] ss:$16 sps:$4 sm:$0xff]  }
 0x3ce   :  { %7660 = vmatprep.subr.bf16.mxu1 %v9455_v7  ;;  %v9504_v7 = vld [vmem:[#allocation8 + $0x968] ss:$16 sps:$4 sm:$0xff]  }
 0x3cf   :  { %7618 = vmatpush1.bf16.msra.mxu0 %v9450_v1  ;;  %v9507_v1 = vld [vmem:[#allocation8 + $0xb68] ss:$16 sps:$4 sm:$0xff]   ;;  %v7132_v28 = vadd.f32 %v10083_v54, %v4522_v56 }
 0x3d0   :  { %7619 = vmatprep.subr.bf16.mxu0 %v9458_v36  ;;  %v7130_v36 = vadd.f32 %v10079_v45, %v4518_v35  ;;  %v9519_v54 = vld [vmem:[#allocation8 + $0xb28] ss:$16 sps:$4 sm:$0xff]  }
 0x3d1   :  { %7661 = vmatpush1.bf16.msra.mxu1 %v9453_v58  ;;  %v9512_v58 = vld [vmem:[#allocation8 + $0x94c] ss:$16 sps:$4 sm:$0xff]   ;;  %v7175_v45 = vadd.f32 %v10085_v17, %v7132_v28 }
 0x3d2   :  { %7662 = vmatprep.subr.bf16.mxu1 %v9461_v37  ;;  %v9515_v37 = vld [vmem:[#allocation8 + $0xb4c] ss:$16 sps:$4 sm:$0xff]  }
 0x3d3   :  { %7620 = vmatpush1.bf16.msra.mxu0 %v9456_v41  ;;  %v7221_v41 = vpop.f32.mrf.mxu0 }
 0x3d4   :  { %7621 = vmatprep.subr.bf16.mxu0 %v9464_v9  ;;  %v9510_v9 = vld [vmem:[#allocation8 + $0x948] ss:$16 sps:$4 sm:$0xff]  }
 0x3d5   :  { %7663 = vmatpush1.bf16.msra.mxu1 %v9459_v55  ;;  %v7264_v55 = vpop.f32.mrf.mxu1 }
 0x3d6   :  { %7664 = vmatprep.subr.bf16.mxu1 %v9467_v46  ;;  %v7301_v46 = vpop.f32.mrf.mxu0 }
 0x3d7   :  { %7622 = vmatpush1.bf16.msra.mxu0 %v9462_v13  ;;  %v9518_v13 = vld [vmem:[#allocation8 + $0x92c] ss:$16 sps:$4 sm:$0xff]  }
 0x3d8   :  { %7623 = vmatprep.subr.bf16.mxu0 %v9470_v15  ;;  %v7134_v15 = vadd.f32 %v10087_v60, %v4518_v35  ;;  %v9539_v35 = vld [vmem:[#allocation8 + $0xecc] ss:$16 sps:$4 sm:$0xff]  }
 0x3d9   :  { %7665 = vmatpush1.bf16.msra.mxu1 %v9465_v0  ;;  %v7173_v0 = vadd.f32 %v10081_v6, %v7130_v36  ;;  %v9542_v36 = vld [vmem:[#allocation8 + $0xcac] ss:$16 sps:$4 sm:$0xff]  }
 0x3da   :  { %7666 = vmatprep.subr.bf16.mxu1 %v9473_v39  ;;  %v7344_v39 = vpop.f32.mrf.mxu1 }
 0x3db   :  { %7624 = vmatpush1.bf16.msra.mxu0 %v9468_v43  ;;  %v9521_v43 = vld [vmem:[#allocation8 + $0xb2c] ss:$16 sps:$4 sm:$0xff]  }
 0x3dc   :  { %7625 = vmatprep.subr.bf16.mxu0 %v9476_v47  ;;  %v7216_v47 = vadd.f32 %v7215_v42, %v7173_v0  ;;  %v7346_v6 = vpop.f32.mrf.mxu1  ;;  %v9533_v42 = vld [vmem:[#allocation8 + $0xeec] ss:$16 sps:$4 sm:$0xff]  }
 0x3dd   :  { %7667 = vmatpush1.bf16.msra.mxu1 %v9471_v10  ;;  %v7136_v10 = vadd.f32 %v7135_v38, %v4522_v56  ;;  %v9530_v38 = vld [vmem:[#allocation8 + $0xcec] ss:$16 sps:$4 sm:$0xff]  }
 0x3de   :  { %7668 = vmatprep.subr.bf16.mxu1 %v9479_v61  ;;  %v9516_v61 = vld [vmem:[#allocation8 + $0x928] ss:$16 sps:$4 sm:$0xff]  }
 0x3df   :  { %7626 = vmatpush1.bf16.msra.mxu0 %v9474_v49  ;;  %v7303_v49 = vpop.f32.mrf.mxu0  ;;  %v7179_v60 = vadd.f32 %v10091_v16, %v7136_v10  ;;  %v9528_v16 = vld [vmem:[#allocation8 + $0xce8] ss:$16 sps:$4 sm:$0xff]  }
 0x3e0   :  { %7627 = vmatprep.subr.bf16.mxu0 %v9482_v50  ;;  %v7177_v50 = vadd.f32 %v10089_v24, %v7134_v15  ;;  %v7348_v24 = vpop.f32.mrf.mxu1  ;;  %v9543_v15 = vld [vmem:[#allocation8 + $0xea8] ss:$16 sps:$4 sm:$0xff]  }
 0x3e1   :  { %7669 = vmatpush1.bf16.msra.mxu1 %v9477_v57  ;;  %v9524_v57 = vld [vmem:[#allocation8 + $0x90c] ss:$16 sps:$4 sm:$0xff]  }
 0x3e2   :  { %7670 = vmatprep.subr.bf16.mxu1 %v9485_v52  ;;  %v7218_v52 = vadd.f32 %v7217_v30, %v7175_v45  ;;  %v7220_v17 = vadd.f32 %v7219_v26, %v7177_v50  ;;  %v9551_v45 = vld [vmem:[#allocation8 + $0xe8c] ss:$16 sps:$4 sm:$0xff]   ;;  %v9552_v50 = vld [vmem:[#allocation8 + $0xc68] ss:$16 sps:$4 sm:$0xff]  }
 0x3e3   :  { %7628 = vmatpush2.bf16.msra.mxu0 %v9480_v59  ;;  %v9527_v59 = vld [vmem:[#allocation8 + $0xb0c] ss:$16 sps:$4 sm:$0xff]  }
 0x3e4   :  { %7629 = vmatprep.subr.bf16.mxu0 %v9488_v8  ;;  %v9522_v8 = vld [vmem:[#allocation8 + $0x908] ss:$16 sps:$4 sm:$0xff]  }
 0x3e5   :  { %7671 = vmatpush2.bf16.msra.mxu1 %v9483_v62  ;;  %v7259_v62 = vadd.f32 %v10093_v14, %v7216_v47  ;;  %v9531_v14 = vld [vmem:[#allocation8 + $0xee8] ss:$16 sps:$4 sm:$0xff]  }
 0x3e6   :  { %7672 = vmatprep.subr.bf16.mxu1 %v9491_v2  ;;  %v7305_v2 = vpop.f32.mrf.mxu0 }
 0x3e7   :  { %7630 = vmatpush2.bf16.msra.mxu0 %v9486_v3  ;;  %v9525_v3 = vld [vmem:[#allocation8 + $0xb08] ss:$16 sps:$4 sm:$0xff]  }
 0x3e8   :  { %7631 = vmatprep.subr.bf16.mxu0 %v9494_v4  ;;  %v7222_v4 = vadd.f32 %v7221_v41, %v7179_v60  ;;  %v9558_v60 = vld [vmem:[#allocation8 + $0xc48] ss:$16 sps:$4 sm:$0xff]  }
 0x3e9   :  { %7673 = vmatpush2.bf16.msra.mxu1 %v9489_v22  ;;  %v7261_v22 = vadd.f32 %v7260_v23, %v7218_v52  ;;  %v9555_v52 = vld [vmem:[#allocation8 + $0xe68] ss:$16 sps:$4 sm:$0xff]  }
 0x3ea   :  { %7674 = vmatprep.subr.bf16.mxu1 %v9497_v40  ;;  %v7302_v40 = vadd.f32 %v7301_v46, %v7259_v62  ;;  %v9561_v62 = vld [vmem:[#allocation8 + $0xe48] ss:$16 sps:$4 sm:$0xff]  }
 0x3eb   :  { %7632 = vmatpush2.bf16.msra.mxu0 %v9492_v19  ;;  %v7263_v19 = vadd.f32 %v7262_v18, %v7220_v17  ;;  %v9566_v17 = vld [vmem:[#allocation8 + $0xc2c] ss:$16 sps:$4 sm:$0xff]  }
 0x3ec   :  { %7633 = vmatprep.subr.bf16.mxu0 %v9500_v21  ;;  %v7307_v21 = vpop.f32.mrf.mxu0  ;;  %v7345_v30 = vadd.f32 %v7344_v39, %v7302_v40  ;;  %v9548_v39 = vld [vmem:[#allocation8 + $0xc8c] ss:$16 sps:$4 sm:$0xff]   ;;  %v9573_v40 = vld [vmem:[#allocation8 + $0xe08] ss:$16 sps:$4 sm:$0xff]  }
 0x3ed   :  { %7675 = vmatpush2.bf16.msra.mxu1 %v9495_v48  ;;  %v7304_v48 = vadd.f32 %v7303_v49, %v7261_v22  ;;  %v9549_v49 = vld [vmem:[#allocation8 + $0xe88] ss:$16 sps:$4 sm:$0xff]   ;;  %v9575_v22 = vld [vmem:[#allocation8 + $0xe0c] ss:$16 sps:$4 sm:$0xff]  }
 0x3ee   :  { %7676 = vmatprep.subr.bf16.mxu1 %v9503_v11  ;;  %v7265_v11 = vadd.f32 %v7264_v55, %v7222_v4  ;;  %v9545_v55 = vld [vmem:[#allocation8 + $0xeac] ss:$16 sps:$4 sm:$0xff]   ;;  %v9570_v4 = vld [vmem:[#allocation8 + $0xc08] ss:$16 sps:$4 sm:$0xff]  }
 0x3ef   :  { %7634 = vmatpush2.bf16.msra.mxu0 %v9498_v27  ;;  %v7306_v27 = vadd.f32 %v7305_v2, %v7263_v19  ;;  %v9564_v2 = vld [vmem:[#allocation8 + $0xc28] ss:$16 sps:$4 sm:$0xff]  }
 0x3f0   :  { %7635 = vmatprep.subr.bf16.mxu0 %v9506_v34  ;;  %v9536_v34 = vld [vmem:[#allocation8 + $0xccc] ss:$16 sps:$4 sm:$0xff]   ;;  %v7308_v26 = vadd.f32 %v7307_v21, %v7265_v11  ;;  %v9576_v19 = vld [vmem:[#allocation8 + $0xde8] ss:$16 sps:$4 sm:$0xff]  }
 0x3f1   :  { %7677 = vmatpush2.bf16.msra.mxu1 %v9501_v29  ;;  %v7350_v29 = vpop.f32.mrf.mxu1  ;;  %v9587_v21 = vld [vmem:[#allocation8 + $0xfcc] ss:$16 sps:$4 sm:$0xff]   ;;  %v9585_v11 = vld [vmem:[#allocation8 + $0xfc8] ss:$16 sps:$4 sm:$0xff]  }
 0x3f2   :  { %7678 = vmatprep.subr.bf16.mxu1 %v9509_v31  ;;  %v7347_v31 = vadd.f32 %v7346_v6, %v7304_v48  ;;  %v7351_v46 = vadd.f32 %v7350_v29, %v7308_v26  ;;  %v9560_v6 = vld [vmem:[#allocation8 + $0xc4c] ss:$16 sps:$4 sm:$0xff]   ;;  %v9579_v48 = vld [vmem:[#allocation8 + $0xfe8] ss:$16 sps:$4 sm:$0xff]  }
 0x3f3   :  { %7636 = vmatpush2.bf16.msra.mxu0 %v9504_v7  ;;  %v9534_v7 = vld [vmem:[#allocation8 + $0xcc8] ss:$16 sps:$4 sm:$0xff]  }
 0x3f4   :  { %7637 = vmatprep.subr.bf16.mxu0 %v9512_v58  ;;  %v9537_v58 = vld [vmem:[#allocation8 + $0xec8] ss:$16 sps:$4 sm:$0xff]  }
 0x3f5   :  { %7679 = vmatpush2.bf16.msra.mxu1 %v9507_v1  ;;  %v9588_v29 = vld [vmem:[#allocation8 + $0xda8] ss:$16 sps:$4 sm:$0xff]  }
 0x3f6   :  { %7680 = vmatprep.subr.bf16.mxu1 %v9515_v37  ;;  %v7349_v37 = vadd.f32 %v7348_v24, %v7306_v27  ;;  %v9578_v24 = vld [vmem:[#allocation8 + $0xdec] ss:$16 sps:$4 sm:$0xff]   ;;  %v9597_v26 = vld [vmem:[#allocation8 + $0xf88] ss:$16 sps:$4 sm:$0xff]  }
 0x3f7   :  { %7638 = vmatpush2.bf16.msra.mxu0 %v9510_v9  ;;  %v9593_v27 = vld [vmem:[#allocation8 + $0xfac] ss:$16 sps:$4 sm:$0xff]  }
 0x3f8   :  { %7639 = vmatprep.subr.bf16.mxu0 %v9518_v13 }
 0x3f9   :  { %7681 = vmatpush2.bf16.msra.mxu1 %v9513_v33 }
 0x3fa   :  { %7682 = vmatprep.subr.bf16.mxu1 %v9521_v43 }
 0x3fb   :  { %7640 = vmatpush2.bf16.msra.mxu0 %v9516_v61  ;;  %v9546_v61 = vld [vmem:[#allocation8 + $0xc88] ss:$16 sps:$4 sm:$0xff]  }
 0x3fc   :  { %7641 = vmatprep.subr.bf16.mxu0 %v9524_v57  ;;  %v9557_v57 = vld [vmem:[#allocation8 + $0xe6c] ss:$16 sps:$4 sm:$0xff]  }
 0x3fd   :  { %7683 = vmatpush2.bf16.msra.mxu1 %v9519_v54  ;;  %v9554_v54 = vld [vmem:[#allocation8 + $0xc6c] ss:$16 sps:$4 sm:$0xff]  }
 0x3fe   :  { %7684 = vmatprep.subr.bf16.mxu1 %v9527_v59  ;;  %v9563_v59 = vld [vmem:[#allocation8 + $0xe4c] ss:$16 sps:$4 sm:$0xff]  }
 0x3ff   :  { %7642 = vmatpush2.bf16.msra.mxu0 %v9522_v8  ;;  %v9569_v8 = vld [vmem:[#allocation8 + $0xe2c] ss:$16 sps:$4 sm:$0xff]  }
 0x400   :  { %7697 = vmatprep.subr.bf16.mxu0 %v9530_v38  ;;  %v9572_v38 = vld [vmem:[#allocation8 + $0xc0c] ss:$16 sps:$4 sm:$0xff]  }
 0x401   :  { %7685 = vmatpush2.bf16.msra.mxu1 %v9525_v3  ;;  %v9567_v3 = vld [vmem:[#allocation8 + $0xe28] ss:$16 sps:$4 sm:$0xff]  }
 0x402   :  { %7740 = vmatprep.subr.bf16.mxu1 %v9533_v42  ;;  %v7387_v23 = vpop.f32.mrf.mxu0  ;;  %7644 = vmatmul.mubr.bf16.vlgmr.msra.gmra.mxu0 %v9972_v12  ;;  %v9581_v42 = vld [vmem:[#allocation8 + $0xfec] ss:$16 sps:$4 sm:$0xff]  }
 0x403   :  { %v7388_v56 = vadd.f32 %v7387_v23, %v7345_v30  ;;  %7698 = vmatpush1.bf16.msra.mxu0 %v9528_v16  ;;  %7729 = vmatprep.mubr.bf16.mxu0 %v10043_v44  ;;  %v9540_v44 = vld [vmem:[#allocation8 + $0xca8] ss:$16 sps:$4 sm:$0xff]   ;;  %v9584_v16 = vld [vmem:[#allocation8 + $0xdcc] ss:$16 sps:$4 sm:$0xff]  }
 0x404   :  { %v7430_v18 = vpop.f32.mrf.mxu1  ;;  %7687 = vmatmul.mubr.bf16.vlgmr.msra.gmra.mxu1 %v10006_v20  ;;  %v7389_v1 = vpop.f32.mrf.mxu0  ;;  %7699 = vmatprep.subr.bf16.mxu0 %v9536_v34  ;;  %v9590_v30 = vld [vmem:[#allocation8 + $0xdac] ss:$16 sps:$4 sm:$0xff]   ;;  %v9591_v34 = vld [vmem:[#allocation8 + $0xfa8] ss:$16 sps:$4 sm:$0xff]  }
 0x405   :  { %7741 = vmatpush1.bf16.msra.mxu1 %v9531_v14  ;;  %v7431_v41 = vadd.f32 %v7430_v18, %v7388_v56  ;;  %7772 = vmatprep.mubr.bf16.mxu1 %v10056_v5  ;;  %v7390_v12 = vadd.f32 %v7389_v1, %v7347_v31  ;;  %v9582_v14 = vld [vmem:[#allocation8 + $0xdc8] ss:$16 sps:$4 sm:$0xff]   ;;  %v9596_v23 = vld [vmem:[#allocation8 + $0xd8c] ss:$16 sps:$4 sm:$0xff]  }
 0x406   :  { %v7432_v28 = vpop.f32.mrf.mxu1  ;;  %v7391_v9 = vpop.f32.mrf.mxu0  ;;  %7742 = vmatprep.subr.bf16.mxu1 %v9539_v35  ;;  %v9599_v35 = vld [vmem:[#allocation8 + $0xf8c] ss:$16 sps:$4 sm:$0xff]   ;;  %v9594_v31 = vld [vmem:[#allocation8 + $0xd88] ss:$16 sps:$4 sm:$0xff]  }
 0x407   :  { %7783 = vst [vmem:[#allocation11] sm:$0xff] %v7431_v41  ;;  %v7433_v20 = vadd.f32 %v7432_v28, %v7390_v12  ;;  %v7392_v33 = vadd.f32 %v7391_v9, %v7349_v37  ;;  %7700 = vmatpush1.bf16.msra.mxu0 %v9534_v7  ;;  %v9602_v56 = vld [vmem:[#allocation8 + $0xd6c] ss:$16 sps:$4 sm:$0xff]   ;;  %v9600_v7 = vld [vmem:[#allocation8 + $0xd68] ss:$16 sps:$4 sm:$0xff]  }
 0x408   :  { %v7434_v13 = vpop.f32.mrf.mxu1  ;;  %v7393_v0 = vpop.f32.mrf.mxu0  ;;  %7701 = vmatprep.subr.bf16.mxu0 %v9542_v36  ;;  %v9605_v18 = vld [vmem:[#allocation8 + $0xf6c] ss:$16 sps:$4 sm:$0xff]   ;;  %v9603_v1 = vld [vmem:[#allocation8 + $0xf68] ss:$16 sps:$4 sm:$0xff]  }
 0x409   :  { %7743 = vmatpush1.bf16.msra.mxu1 %v9537_v58  ;;  %7784 = vst [vmem:[#allocation11 + $0x8] sm:$0xff] %v7433_v20  ;;  %v7435_v5 = vadd.f32 %v7434_v13, %v7392_v33  ;;  %v7394_v43 = vadd.f32 %v7393_v0, %v7351_v46  ;;  %v9608_v58 = vld [vmem:[#allocation8 + $0xd4c] ss:$16 sps:$4 sm:$0xff]   ;;  %v9606_v37 = vld [vmem:[#allocation8 + $0xd48] ss:$16 sps:$4 sm:$0xff]  }
 0x40a   :  { %7744 = vmatprep.subr.bf16.mxu1 %v9545_v55  ;;  %v7436_v10 = vpop.f32.mrf.mxu1  ;;  %v9611_v36 = vld [vmem:[#allocation8 + $0xf4c] ss:$16 sps:$4 sm:$0xff]   ;;  %v9609_v41 = vld [vmem:[#allocation8 + $0xf48] ss:$16 sps:$4 sm:$0xff]  }
 0x40b   :  { %7787 = vst [vmem:[#allocation11 + $0x20] sm:$0xff] %v7435_v5  ;;  %v7437_v47 = vadd.f32 %v7436_v10, %v7394_v43  ;;  %7702 = vmatpush1.bf16.msra.mxu0 %v9540_v44  ;;  %v9614_v12 = vld [vmem:[#allocation8 + $0xd2c] ss:$16 sps:$4 sm:$0xff]   ;;  %v9612_v55 = vld [vmem:[#allocation8 + $0xd28] ss:$16 sps:$4 sm:$0xff]  }
 0x40c   :  { %7703 = vmatprep.subr.bf16.mxu0 %v9548_v39  ;;  %v9617_v28 = vld [vmem:[#allocation8 + $0xf2c] ss:$16 sps:$4 sm:$0xff]   ;;  %v9615_v9 = vld [vmem:[#allocation8 + $0xf28] ss:$16 sps:$4 sm:$0xff]  }
 0x40d   :  { %7745 = vmatpush1.bf16.msra.mxu1 %v9543_v15  ;;  %7788 = vst [vmem:[#allocation11 + $0x28] sm:$0xff] %v7437_v47  ;;  %v9620_v46 = vld [vmem:[#allocation8 + $0xd0c] ss:$16 sps:$4 sm:$0xff]   ;;  %v9618_v33 = vld [vmem:[#allocation8 + $0xd08] ss:$16 sps:$4 sm:$0xff]  }
 0x40e   :  { %7746 = vmatprep.subr.bf16.mxu1 %v9551_v45  ;;  %v9623_v20 = vld [vmem:[#allocation8 + $0xf0c] ss:$16 sps:$4 sm:$0xff]   ;;  %v9621_v13 = vld [vmem:[#allocation8 + $0xf08] ss:$16 sps:$4 sm:$0xff]  }
 0x40f   :  { %7704 = vmatpush1.bf16.msra.mxu0 %v9546_v61 }
 0x410   :  { %7705 = vmatprep.subr.bf16.mxu0 %v9554_v54 }
 0x411   :  { %7747 = vmatpush1.bf16.msra.mxu1 %v9549_v49 }
 0x412   :  { %7748 = vmatprep.subr.bf16.mxu1 %v9557_v57  ;;  %v4526_v57 = vrot.slane %v10095_v25, %v9872_v53 }
 0x413   :  { %7706 = vmatpush1.bf16.msra.mxu0 %v9552_v50 }
 0x414   :  { %7707 = vmatprep.subr.bf16.mxu0 %v9560_v6 }
 0x415   :  { %7749 = vmatpush1.bf16.msra.mxu1 %v9555_v52 }
 0x416   :  { %7750 = vmatprep.subr.bf16.mxu1 %v9563_v59 }
 0x417   :  { %7708 = vmatpush1.bf16.msra.mxu0 %v9558_v60 }
 0x418   :  { %7709 = vmatprep.subr.bf16.mxu0 %v9566_v17 }
 0x419   :  { %7751 = vmatpush1.bf16.msra.mxu1 %v9561_v62 }
 0x41a   :  { %7752 = vmatprep.subr.bf16.mxu1 %v9569_v8 }
 0x41b   :  { %7710 = vmatpush1.bf16.msra.mxu0 %v9564_v2 }
 0x41c   :  { %7711 = vmatprep.subr.bf16.mxu0 %v9572_v38 }
 0x41d   :  { %7753 = vmatpush1.bf16.msra.mxu1 %v9567_v3 }
 0x41e   :  { %7754 = vmatprep.subr.bf16.mxu1 %v9575_v22 }
 0x41f   :  { %7712 = vmatpush1.bf16.msra.mxu0 %v9570_v4 }
 0x420   :  { %7713 = vmatprep.subr.bf16.mxu0 %v9578_v24 }
 0x421   :  { %7755 = vmatpush1.bf16.msra.mxu1 %v9573_v40 }
 0x422   :  { %7756 = vmatprep.subr.bf16.mxu1 %v9581_v42 }
 0x423   :  { %7714 = vmatpush2.bf16.msra.mxu0 %v9576_v19 }
 0x424   :  { %7715 = vmatprep.subr.bf16.mxu0 %v9584_v16 }
 0x425   :  { %7757 = vmatpush2.bf16.msra.mxu1 %v9579_v48 }
 0x426   :  { %7758 = vmatprep.subr.bf16.mxu1 %v9587_v21 }
 0x427   :  { %7716 = vmatpush2.bf16.msra.mxu0 %v9582_v14 }
 0x428   :  { %7717 = vmatprep.subr.bf16.mxu0 %v9590_v30 }
 0x429   :  { %7759 = vmatpush2.bf16.msra.mxu1 %v9585_v11 }
 0x42a   :  { %7760 = vmatprep.subr.bf16.mxu1 %v9593_v27 }
 0x42b   :  { %7718 = vmatpush2.bf16.msra.mxu0 %v9588_v29 }
 0x42c   :  { %7719 = vmatprep.subr.bf16.mxu0 %v9596_v23 }
 0x42d   :  { %7761 = vmatpush2.bf16.msra.mxu1 %v9591_v34 }
 0x42e   :  { %7762 = vmatprep.subr.bf16.mxu1 %v9599_v35 }
 0x42f   :  { %7720 = vmatpush2.bf16.msra.mxu0 %v9594_v31 }
 0x430   :  { %7721 = vmatprep.subr.bf16.mxu0 %v9602_v56 }
 0x431   :  { %7763 = vmatpush2.bf16.msra.mxu1 %v9597_v26 }
 0x432   :  { %7764 = vmatprep.subr.bf16.mxu1 %v9605_v18 }
 0x433   :  { %7722 = vmatpush2.bf16.msra.mxu0 %v9600_v7 }
 0x434   :  { %7723 = vmatprep.subr.bf16.mxu0 %v9608_v58 }
 0x435   :  { %7765 = vmatpush2.bf16.msra.mxu1 %v9603_v1 }
 0x436   :  { %7766 = vmatprep.subr.bf16.mxu1 %v9611_v36 }
 0x437   :  { %7724 = vmatpush2.bf16.msra.mxu0 %v9606_v37 }
 0x438   :  { %7725 = vmatprep.subr.bf16.mxu0 %v9614_v12 }
 0x439   :  { %7767 = vmatpush2.bf16.msra.mxu1 %v9609_v41 }
 0x43a   :  { %7768 = vmatprep.subr.bf16.mxu1 %v9617_v28 }
 0x43b   :  { %7726 = vmatpush2.bf16.msra.mxu0 %v9612_v55 }
 0x43c   :  { %7727 = vmatprep.subr.bf16.mxu0 %v9620_v46 }
 0x43d   :  { %7769 = vmatpush2.bf16.msra.mxu1 %v9615_v9 }
 0x43e   :  { %7770 = vmatprep.subr.bf16.mxu1 %v9623_v20 }
 0x43f   :  { %7728 = vmatpush2.bf16.msra.mxu0 %v9618_v33 }
 0x441   :  { %7771 = vmatpush2.bf16.msra.mxu1 %v9621_v13 }
 0x442   :  { %7730 = vmatmul.mubr.bf16.vlgmr.msra.gmra.mxu0 %v10033_v51  ;;  %v7473_v44 = vpop.f32.mrf.mxu0  ;;  %v4530_v51 = vrot.slane %v10095_v25, %v9940_v63 }
 0x443   :  { %v7474_v52 = vadd.f32 %v7473_v44, %v4526_v57 }
 0x444   :  { %7773 = vmatmul.mubr.bf16.vlgmr.msra.gmra.mxu1 %v10065_v32  ;;  %v7516_v0 = vpop.f32.mrf.mxu1  ;;  %v7475_v15 = vpop.f32.mrf.mxu0 }
 0x445   :  { %v7476_v59 = vadd.f32 %v7475_v15, %v4530_v51  ;;  %v7517_v17 = vadd.f32 %v7516_v0, %v7474_v52 }
 0x446   :  { %v7518_v39 = vpop.f32.mrf.mxu1  ;;  %v7477_v5 = vpop.f32.mrf.mxu0 }
 0x447   :  { %v7478_v8 = vadd.f32 %v7477_v5, %v4526_v57  ;;  %v7519_v3 = vadd.f32 %v7518_v39, %v7476_v59 }
 0x448   :  { %v7520_v43 = vpop.f32.mrf.mxu1  ;;  %v7479_v45 = vpop.f32.mrf.mxu0 }
 0x449   :  { %v7480_v38 = vadd.f32 %v7479_v45, %v4530_v51  ;;  %v7521_v40 = vadd.f32 %v7520_v43, %v7478_v8 }
 0x44a   :  { %v7522_v10 = vpop.f32.mrf.mxu1 }
 0x44b   :  { %v7523_v42 = vadd.f32 %v7522_v10, %v7480_v38 }
 0x482   :  { %v7559_v47 = vpop.f32.mrf.mxu0 }
 0x483   :  { %v7560_v22 = vadd.f32 %v7559_v47, %v7517_v17 }
 0x484   :  { %v7602_v61 = vpop.f32.mrf.mxu1  ;;  %v7561_v49 = vpop.f32.mrf.mxu0 }
 0x485   :  { %v7562_v24 = vadd.f32 %v7561_v49, %v7519_v3  ;;  %v7603_v19 = vadd.f32 %v7602_v61, %v7560_v22 }
 0x486   :  { %v7604_v54 = vpop.f32.mrf.mxu1  ;;  %v7563_v50 = vpop.f32.mrf.mxu0 }
 0x487   :  { %v7564_v48 = vadd.f32 %v7563_v50, %v7521_v40  ;;  %v7605_v25 = vadd.f32 %v7604_v54, %v7562_v24 }
 0x488   :  { %v7606_v32 = vpop.f32.mrf.mxu1  ;;  %v7565_v6 = vpop.f32.mrf.mxu0 }
 0x489   :  { %v7566_v16 = vadd.f32 %v7565_v6, %v7523_v42  ;;  %v7607_v11 = vadd.f32 %v7606_v32, %v7564_v48 }
 0x48a   :  { %v7608_v60 = vpop.f32.mrf.mxu1 }
 0x48b   :  { %v7609_v29 = vadd.f32 %v7608_v60, %v7566_v16 }
 0x4c2   :  { %v7645_v62 = vpop.f32.mrf.mxu0 }
 0x4c3   :  { %v7646_v21 = vadd.f32 %v7645_v62, %v7603_v19 }
 0x4c4   :  { %v7688_v2 = vpop.f32.mrf.mxu1  ;;  %v7647_v4 = vpop.f32.mrf.mxu0 }
 0x4c5   :  { %v7648_v30 = vadd.f32 %v7647_v4, %v7605_v25  ;;  %v7689_v34 = vadd.f32 %v7688_v2, %v7646_v21 }
 0x4c6   :  { %v7690_v53 = vpop.f32.mrf.mxu1  ;;  %v7649_v63 = vpop.f32.mrf.mxu0 }
 0x4c7   :  { %v7650_v23 = vadd.f32 %v7649_v63, %v7607_v11  ;;  %v7691_v26 = vadd.f32 %v7690_v53, %v7648_v30 }
 0x4c8   :  { %v7692_v14 = vpop.f32.mrf.mxu1  ;;  %v7651_v27 = vpop.f32.mrf.mxu0 }
 0x4c9   :  { %v7652_v56 = vadd.f32 %v7651_v27, %v7609_v29  ;;  %v7693_v58 = vadd.f32 %v7692_v14, %v7650_v23 }
 0x4ca   :  { %v7694_v35 = vpop.f32.mrf.mxu1 }
 0x4cb   :  { %v7695_v28 = vadd.f32 %v7694_v35, %v7652_v56 }
 0x502   :  { %v7731_v31 = vpop.f32.mrf.mxu0 }
 0x503   :  { %v7732_v18 = vadd.f32 %v7731_v31, %v7689_v34 }
 0x504   :  { %v7774_v7 = vpop.f32.mrf.mxu1  ;;  %v7733_v1 = vpop.f32.mrf.mxu0 }
 0x505   :  { %v7775_v36 = vadd.f32 %v7774_v7, %v7732_v18  ;;  %v7734_v37 = vadd.f32 %v7733_v1, %v7691_v26 }
 0x506   :  { %v7776_v41 = vpop.f32.mrf.mxu1  ;;  %v7735_v12 = vpop.f32.mrf.mxu0 }
 0x507   :  { %7785 = vst [vmem:[#allocation11 + $0x10] sm:$0xff] %v7775_v36  ;;  %v7777_v55 = vadd.f32 %v7776_v41, %v7734_v37  ;;  %v7736_v9 = vadd.f32 %v7735_v12, %v7693_v58 }
 0x508   :  { %v7778_v46 = vpop.f32.mrf.mxu1  ;;  %v7737_v20 = vpop.f32.mrf.mxu0 }
 0x509   :  { %7786 = vst [vmem:[#allocation11 + $0x18] sm:$0xff] %v7777_v55  ;;  %v7779_v33 = vadd.f32 %v7778_v46, %v7736_v9  ;;  %v7738_v13 = vadd.f32 %v7737_v20, %v7695_v28 }
 0x50a   :  { %v7780_v44 = vpop.f32.mrf.mxu1 }
 0x50b   :  { %7789 = vst [vmem:[#allocation11 + $0x30] sm:$0xff] %v7779_v33  ;;  %v7781_v0 = vadd.f32 %v7780_v44, %v7738_v13 }
 0x50d   :  { %7790 = vst [vmem:[#allocation11 + $0x38] sm:$0xff] %v7781_v0 }
 0x50e   :  { %9748 = shalt.err (!%p9745_p1)
}
 0x50f   :  { %s9775_s20 = smov 512   ;;  %s9776_s21 = smov 32  }
 0x510   :  { %7802 = dma.vmem_to_hbm [thread:$0]  %s7797_s4, 1024, %s10127_s5, [#allocation4], %s9775_s20, %s9775_s20, %s9776_s21  }
 0x511   :  { %9763 = dma.done.wait [#allocation4], 1024  }
 0x512   :  { %9764 = vsyncadd [#allocation4], 4294966272 }
 0x513   :  { %7806 = vsyncpa [#allocation3], 1 }
 0x514   :  { %7807 = vsyncpa [#allocation6], 1 }
 0x515   :  { %7808 = vsyncpa [#allocation9], 1 }
 0x516   :  { %7809 = vsyncpa [#allocation4], 1 }

</bundles_post_ra>
